<compile_context>
chip_gen: v6e
topology: v6e:2x2x1
jax: 0.10.0
libtpu: 0.0.40
codegen_flags: <defaults>
</compile_context>

<pallas_src>
import functools

import jax
import jax.numpy as jnp
from jax import lax
from jax.experimental import pallas as pl
from jax.experimental.pallas import tpu as pltpu


# -----------------------------------------------------------------------------
# Pallas kernel: whole bottleneck block for Nb images per grid step.
# -----------------------------------------------------------------------------
def _bottleneck_kernel(x_ref, w1_ref, b1_ref, w2_ref, b2_ref, w3_ref, b3_ref,
                       o_ref, pbuf, *, H, W, Nb, width, P):
    HW = H * W
    M = Nb * HW
    Cin = x_ref.shape[-1]
    cdt = pbuf.dtype                      # MXU input dtype (bf16 or f32)

    # ---- conv1 (1x1) + BN + ReLU --------------------------------------------
    x = x_ref[...].reshape(M, Cin)
    y1 = jnp.dot(x, w1_ref[...], preferred_element_type=jnp.float32)
    y1 = jnp.maximum(y1 + b1_ref[...], 0.0)                    # (M, width) f32

    # ---- stage y1 into the dy-fattened, zero-padded scratch buffer ----------
    # pbuf[n, r, d*width + c] = y1[n, r - (P - (d-1)*W), c]   (zero outside),
    # so that pbuf[:, P+dx : P+dx+HW, :] is the (dy=-1,0,+1 x channel)-stacked
    # neighborhood of every output pixel for horizontal offset dx.
    zpad = jnp.zeros((Nb, P + W, 3 * width), cdt)
    pbuf[:, :P + W, :] = zpad             # top padding rows (covers all slabs)
    pbuf[:, HW + P - W:, :] = zpad        # bottom padding rows
    y1c = y1.reshape(Nb, HW, width).astype(cdt)
    for d in range(3):                    # d <-> dy = d - 1
        s = P - (d - 1) * W
        pbuf[:, s:s + HW, d * width:(d + 1) * width] = y1c

    # ---- conv2 (3x3, pad=1) + BN + ReLU --------------------------------------
    # Border masks (only dx = +-1 need them), computed once; applied to the
    # matmul *outputs* (cheaper than masking the fat input slabs).
    col = lax.broadcasted_iota(jnp.int32, (M, 1), 0) % W        # output column
    mask_l = col > 0                       # left neighbor exists   (dx = -1)
    mask_r = col < (W - 1)                 # right neighbor exists  (dx = +1)

    acc = jnp.zeros((M, width), jnp.float32)
    for j, dx in enumerate((-1, 0, 1)):
        slab = pbuf[:, P + dx:P + dx + HW, :].reshape(M, 3 * width)
        part = jnp.dot(slab, w2_ref[j], preferred_element_type=jnp.float32)
        if dx == -1:
            part = jnp.where(mask_l, part, 0.0)
        elif dx == 1:
            part = jnp.where(mask_r, part, 0.0)
        acc = acc + part
    y2 = jnp.maximum(acc + b2_ref[...], 0.0)                    # (M, width) f32

    # ---- conv3 (1x1) + BN -----------------------------------------------------
    y3 = jnp.dot(y2.astype(cdt), w3_ref[...],
                 preferred_element_type=jnp.float32) + b3_ref[...]

    # ---- residual add + ReLU (re-read identity to keep its live range short) -
    xr = x_ref[...].reshape(M, Cin).astype(jnp.float32)
    out = jnp.maximum(y3 + xr, 0.0)
    o_ref[...] = out.reshape(Nb, HW, -1).astype(o_ref.dtype)


def _pick_images_per_block(n, requested):
    """Largest divisor of n that is <= requested (>= 1)."""
    nb = max(1, min(int(requested), int(n)))
    while n % nb != 0:
        nb -= 1
    return nb


# -----------------------------------------------------------------------------
# Wrapper: NCHW <-> [N, H*W, C] conversion, BN folding, pallas_call plumbing.
# -----------------------------------------------------------------------------
def bottleneck_pallas(x_nchw, params, *, eps=1e-5,
                      compute_dtype=jnp.bfloat16, images_per_block=2):
    N, Cin, H, W = x_nchw.shape
    w1_t = params["conv1_w"]   # (width, Cin, 1, 1)
    w2_t = params["conv2_w"]   # (width, width, 3, 3)
    w3_t = params["conv3_w"]   # (Cout, width, 1, 1)
    width = w1_t.shape[0]
    Cout = w3_t.shape[0]
    assert Cout == Cin, "residual add requires inplanes == planes * expansion"

    cdt = compute_dtype

    def fold(gamma, beta, mean, var):
        s = gamma / jnp.sqrt(var + eps)
        return s, beta - mean * s

    s1, b1 = fold(*params["bn1"])
    s2, b2 = fold(*params["bn2"])
    s3, b3 = fold(*params["bn3"])

    # conv weights -> matmul form, BN scale folded into the output channel.
    w1_k = (jnp.transpose(w1_t[:, :, 0, 0], (1, 0)) * s1[None, :]).astype(cdt)
    # OIHW -> (kw, kh, cin, cout) -> (3, 3*width, width); index [kx, ky*width+ci, co]
    w2_k = jnp.transpose(w2_t, (3, 2, 1, 0)).reshape(3, 3 * width, width)
    w2_k = (w2_k * s2[None, None, :]).astype(cdt)
    w3_k = (jnp.transpose(w3_t[:, :, 0, 0], (1, 0)) * s3[None, :]).astype(cdt)
    b1_k = b1[None, :].astype(jnp.float32)
    b2_k = b2[None, :].astype(jnp.float32)
    b3_k = b3[None, :].astype(jnp.float32)

    # NCHW -> [N, H*W, C], MXU inputs cast to the compute dtype.
    x_flat = jnp.transpose(x_nchw, (0, 2, 3, 1)).reshape(N, H * W, Cin).astype(cdt)

    HW = H * W
    P = ((W + 1 + 7) // 8) * 8             # >= W+1, sublane-aligned padding
    SEG = HW + 2 * P

    Nb = _pick_images_per_block(N, images_per_block)
    kernel = functools.partial(_bottleneck_kernel,
                               H=H, W=W, Nb=Nb, width=width, P=P)

    out_flat = pl.pallas_call(
        kernel,
        out_shape=jax.ShapeDtypeStruct((N, HW, Cout), cdt),
        grid_spec=pltpu.PrefetchScalarGridSpec(
            num_scalar_prefetch=0,
            grid=(N // Nb,),
            in_specs=[
                pl.BlockSpec((Nb, HW, Cin), lambda i: (i, 0, 0)),
                pl.BlockSpec((Cin, width), lambda i: (0, 0)),
                pl.BlockSpec((1, width), lambda i: (0, 0)),
                pl.BlockSpec((3, 3 * width, width), lambda i: (0, 0, 0)),
                pl.BlockSpec((1, width), lambda i: (0, 0)),
                pl.BlockSpec((width, Cout), lambda i: (0, 0)),
                pl.BlockSpec((1, Cout), lambda i: (0, 0)),
            ],
            out_specs=pl.BlockSpec((Nb, HW, Cout), lambda i: (i, 0, 0)),
            scratch_shapes=[pltpu.VMEM((Nb, SEG, 3 * width), cdt)],
        ),
        compiler_params=pltpu.CompilerParams(
            dimension_semantics=("parallel",)),
    )(x_flat, w1_k, b1_k, w2_k, b2_k, w3_k, b3_k)

    out = jnp.transpose(out_flat.reshape(N, H, W, Cout), (0, 3, 1, 2))
    return out.astype(x_nchw.dtype)


# -----------------------------------------------------------------------------
# Pure-JAX reference (mirrors PyTorch NCHW semantics) for validation.
# -----------------------------------------------------------------------------
def bottleneck_ref(x, params, *, eps=1e-5):
    dn = ("NCHW", "OIHW", "NCHW")

    def bn(y, gbmv):
        g, b, m, v = gbmv
        g, b, m, v = (t[None, :, None, None] for t in (g, b, m, v))
        return g * (y - m) / jnp.sqrt(v + eps) + b

    y = lax.conv_general_dilated(x, params["conv1_w"], (1, 1), "VALID",
                                 dimension_numbers=dn)
    y = jnp.maximum(bn(y, params["bn1"]), 0.0)
    y = lax.conv_general_dilated(y, params["conv2_w"], (1, 1),
                                 ((1, 1), (1, 1)), dimension_numbers=dn)
    y = jnp.maximum(bn(y, params["bn2"]), 0.0)
    y = lax.conv_general_dilated(y, params["conv3_w"], (1, 1), "VALID",
                                 dimension_numbers=dn)
    y = bn(y, params["bn3"])
    return jnp.maximum(y + x, 0.0)


# -----------------------------------------------------------------------------
if __name__ == "__main__":
    # Bottleneck(inplanes=16, planes=4): width=4, out channels = 4*4 = 16.
    N, inplanes, planes, H, W = 4, 16, 4, 16, 16
    width = planes          # base_width=64, groups=1 -> width = planes
    Cout = planes * 4       # expansion = 4

    key = jax.random.PRNGKey(0)
    ks = jax.random.split(key, 8)

    def make_bn(k, c):
        k1, k2, k3, k4 = jax.random.split(k, 4)
        gamma = jax.random.uniform(k1, (c,), minval=0.5, maxval=1.5)
        beta = 0.1 * jax.random.normal(k2, (c,))
        mean = 0.1 * jax.random.normal(k3, (c,))
        var = jax.random.uniform(k4, (c,), minval=0.5, maxval=1.5)
        return (gamma, beta, mean, var)

    params = {
        "conv1_w": 0.2 * jax.random.normal(ks[0], (width, inplanes, 1, 1), jnp.float32),
        "conv2_w": 0.2 * jax.random.normal(ks[1], (width, width, 3, 3), jnp.float32),
        "conv3_w": 0.2 * jax.random.normal(ks[2], (Cout, width, 1, 1), jnp.float32),
        "bn1": make_bn(ks[3], width),
        "bn2": make_bn(ks[4], width),
        "bn3": make_bn(ks[5], Cout),
    }

    x = jax.random.normal(ks[6], (N, inplanes, H, W), jnp.float32)

    ref = jax.block_until_ready(bottleneck_ref(x, params))

    # Strict check: f32 compute path must match the f32 reference tightly.
    out_f32 = jax.block_until_ready(
        bottleneck_pallas(x, params, compute_dtype=jnp.float32))
    assert out_f32.shape == (N, Cout, H, W)
    if not jnp.allclose(out_f32, ref, rtol=1e-4, atol=1e-4):
        max_err = float(jnp.max(jnp.abs(out_f32 - ref)))
        raise AssertionError(f"f32 Pallas output mismatch vs reference, max_err={max_err}")

    # Fast path: bf16 MXU inputs (default) -- bf16-appropriate error bound.
    out_bf16 = jax.block_until_ready(bottleneck_pallas(x, params))
    assert out_bf16.shape == (N, Cout, H, W)
    denom = float(jnp.max(jnp.abs(ref))) + 1e-6
    rel_err = float(jnp.max(jnp.abs(out_bf16.astype(jnp.float32) - ref))) / denom
    if rel_err > 0.05:
        raise AssertionError(f"bf16 Pallas output mismatch, normalized max err={rel_err}")

    print("KERNEL_OK")
</pallas_src>

<mosaic_0001>
module attributes {stable_mosaic.version = 11 : i64} {
  func.func @_bottleneck_kernel(%arg0: i32, %arg1: memref<2x256x16xf32, #tpu.memory_space<vmem>>, %arg2: memref<16x4xf32, #tpu.memory_space<vmem>>, %arg3: memref<1x4xf32, #tpu.memory_space<vmem>>, %arg4: memref<3x12x4xf32, #tpu.memory_space<vmem>>, %arg5: memref<1x4xf32, #tpu.memory_space<vmem>>, %arg6: memref<4x16xf32, #tpu.memory_space<vmem>>, %arg7: memref<1x16xf32, #tpu.memory_space<vmem>>, %arg8: memref<2x256x16xf32, #tpu.memory_space<vmem>>, %arg9: memref<2x304x12xf32, #tpu.memory_space<vmem>>) attributes {dimension_semantics = [#tpu.dimension_semantics<parallel>], iteration_bounds = array<i64: 2>, scalar_prefetch = 0 : i64, scratch_operands = 1 : i64, tpu.core_type = #tpu.core_type<tc>, window_params = [{transform_indices = @transform_0, window_bounds = array<i64: 2, 256, 16>}, {pipeline_mode = #tpu.pipeline_mode<synchronous>, transform_indices = @transform_1, window_bounds = array<i64: 16, 4>}, {pipeline_mode = #tpu.pipeline_mode<synchronous>, transform_indices = @transform_2, window_bounds = array<i64: 1, 4>}, {pipeline_mode = #tpu.pipeline_mode<synchronous>, transform_indices = @transform_3, window_bounds = array<i64: 3, 12, 4>}, {pipeline_mode = #tpu.pipeline_mode<synchronous>, transform_indices = @transform_4, window_bounds = array<i64: 1, 4>}, {pipeline_mode = #tpu.pipeline_mode<synchronous>, transform_indices = @transform_5, window_bounds = array<i64: 4, 16>}, {pipeline_mode = #tpu.pipeline_mode<synchronous>, transform_indices = @transform_6, window_bounds = array<i64: 1, 16>}, {transform_indices = @transform_7, window_bounds = array<i64: 2, 256, 16>}]} {
    %c0 = arith.constant 0 : index
    %c0_0 = arith.constant 0 : index
    %c0_1 = arith.constant 0 : index
    %0 = vector.load %arg1[%c0, %c0_0, %c0_1] : memref<2x256x16xf32, #tpu.memory_space<vmem>>, vector<2x256x16xf32>
    %1 = vector.shape_cast %0 : vector<2x256x16xf32> to vector<512x16xf32>
    %c0_2 = arith.constant 0 : index
    %c0_3 = arith.constant 0 : index
    %2 = vector.load %arg2[%c0_2, %c0_3] : memref<16x4xf32, #tpu.memory_space<vmem>>, vector<16x4xf32>
    %cst = arith.constant dense<0.000000e+00> : vector<512x4xf32>
    %3 = tpu.matmul %1, %2, %cst {dimension_numbers = #tpu.dot_dimension_numbers<[1], [0], [0], [1], [0, 0, 1, 1], [], []>} : vector<512x16xf32>, vector<16x4xf32>, vector<512x4xf32> -> vector<512x4xf32>
    %c0_4 = arith.constant 0 : index
    %c0_5 = arith.constant 0 : index
    %4 = vector.load %arg3[%c0_4, %c0_5] : memref<1x4xf32, #tpu.memory_space<vmem>>, vector<1x4xf32>
    %5 = vector.broadcast %4 : vector<1x4xf32> to vector<512x4xf32>
    %6 = arith.addf %3, %5 : vector<512x4xf32>
    %cst_6 = arith.constant 0.000000e+00 : f32
    %7 = vector.broadcast %cst_6 : f32 to vector<512x4xf32>
    %8 = arith.maximumf %6, %7 : vector<512x4xf32>
    %cst_7 = arith.constant 0.000000e+00 : f32
    %9 = vector.broadcast %cst_7 : f32 to vector<2x40x12xf32>
    %c0_8 = arith.constant 0 : index
    %c0_9 = arith.constant 0 : index
    %c0_10 = arith.constant 0 : index
    %10 = vector.load %arg9[%c0_8, %c0_9, %c0_10] : memref<2x304x12xf32, #tpu.memory_space<vmem>>, vector<2x40x12xf32>
    tpu.vector_store %arg9[%c0_8, %c0_9, %c0_10], %9 {strides = array<i32>} : memref<2x304x12xf32, #tpu.memory_space<vmem>>, vector<2x40x12xf32>,
    %c0_11 = arith.constant 0 : index
    %c264 = arith.constant 264 : index
    %c0_12 = arith.constant 0 : index
    %11 = vector.load %arg9[%c0_11, %c264, %c0_12] : memref<2x304x12xf32, #tpu.memory_space<vmem>>, vector<2x40x12xf32>
    tpu.vector_store %arg9[%c0_11, %c264, %c0_12], %9 {strides = array<i32>} : memref<2x304x12xf32, #tpu.memory_space<vmem>>, vector<2x40x12xf32>,
    %12 = vector.shape_cast %8 : vector<512x4xf32> to vector<2x256x4xf32>
    %c0_13 = arith.constant 0 : index
    %c40 = arith.constant 40 : index
    %c0_14 = arith.constant 0 : index
    %13 = vector.load %arg9[%c0_13, %c40, %c0_14] : memref<2x304x12xf32, #tpu.memory_space<vmem>>, vector<2x256x4xf32>
    tpu.vector_store %arg9[%c0_13, %c40, %c0_14], %12 {strides = array<i32>} : memref<2x304x12xf32, #tpu.memory_space<vmem>>, vector<2x256x4xf32>,
    %c0_15 = arith.constant 0 : index
    %c24 = arith.constant 24 : index
    %c4 = arith.constant 4 : index
    %14 = vector.load %arg9[%c0_15, %c24, %c4] : memref<2x304x12xf32, #tpu.memory_space<vmem>>, vector<2x256x4xf32>
    tpu.vector_store %arg9[%c0_15, %c24, %c4], %12 {strides = array<i32>} : memref<2x304x12xf32, #tpu.memory_space<vmem>>, vector<2x256x4xf32>,
    %c0_16 = arith.constant 0 : index
    %c8 = arith.constant 8 : index
    %c8_17 = arith.constant 8 : index
    %15 = vector.load %arg9[%c0_16, %c8, %c8_17] : memref<2x304x12xf32, #tpu.memory_space<vmem>>, vector<2x256x4xf32>
    tpu.vector_store %arg9[%c0_16, %c8, %c8_17], %12 {strides = array<i32>} : memref<2x304x12xf32, #tpu.memory_space<vmem>>, vector<2x256x4xf32>,
    %16 = tpu.iota {dimensions = array<i32: 0>} : vector<512x1xi32>
    %c16_i32 = arith.constant 16 : i32
    %c0_i32 = arith.constant 0 : i32
    %17 = arith.cmpi eq, %c16_i32, %c0_i32 : i32
    %c1_i32 = arith.constant 1 : i32
    %18 = arith.select %17, %c1_i32, %c16_i32 : i32
    %19 = vector.broadcast %18 : i32 to vector<512x1xi32>
    %20 = arith.remsi %16, %19 : vector<512x1xi32>
    %c0_i32_18 = arith.constant 0 : i32
    %21 = vector.broadcast %c0_i32_18 : i32 to vector<512x1xi32>
    %22 = arith.cmpi ne, %20, %21 : vector<512x1xi32>
    %c0_i32_19 = arith.constant 0 : i32
    %23 = vector.broadcast %c0_i32_19 : i32 to vector<512x1xi32>
    %24 = arith.cmpi slt, %20, %23 : vector<512x1xi32>
    %c0_i32_20 = arith.constant 0 : i32
    %25 = arith.cmpi slt, %18, %c0_i32_20 : i32
    %26 = vector.broadcast %25 : i1 to vector<512x1xi1>
    %27 = vector.broadcast %26 : vector<512x1xi1> to vector<512x1xi1>
    %28 = arith.xori %24, %27 : vector<512x1xi1>
    %29 = arith.andi %28, %22 : vector<512x1xi1>
    %30 = vector.broadcast %18 : i32 to vector<512x1xi32>
    %31 = arith.addi %20, %30 : vector<512x1xi32>
    %32 = arith.select %29, %31, %20 : vector<512x1xi1>, vector<512x1xi32>
    %c0_i32_21 = arith.constant 0 : i32
    %33 = vector.broadcast %c0_i32_21 : i32 to vector<512x1xi32>
    %34 = arith.cmpi sgt, %32, %33 : vector<512x1xi32>
    %c15_i32 = arith.constant 15 : i32
    %35 = vector.broadcast %c15_i32 : i32 to vector<512x1xi32>
    %36 = arith.cmpi slt, %32, %35 : vector<512x1xi32>
    %cst_22 = arith.constant 0.000000e+00 : f32
    %37 = vector.broadcast %cst_22 : f32 to vector<512x4xf32>
    %c0_23 = arith.constant 0 : index
    %c23 = arith.constant 23 : index
    %c0_24 = arith.constant 0 : index
    %38 = vector.load %arg9[%c0_23, %c23, %c0_24] : memref<2x304x12xf32, #tpu.memory_space<vmem>>, vector<2x256x12xf32>
    %39 = vector.shape_cast %38 : vector<2x256x12xf32> to vector<512x12xf32>
    %c0_25 = arith.constant 0 : index
    %c0_26 = arith.constant 0 : index
    %c0_27 = arith.constant 0 : index
    %40 = vector.load %arg4[%c0_25, %c0_26, %c0_27] : memref<3x12x4xf32, #tpu.memory_space<vmem>>, vector<1x12x4xf32>
    %41 = vector.shape_cast %40 : vector<1x12x4xf32> to vector<12x4xf32>
    %cst_28 = arith.constant dense<0.000000e+00> : vector<512x4xf32>
    %42 = tpu.matmul %39, %41, %cst_28 {dimension_numbers = #tpu.dot_dimension_numbers<[1], [0], [0], [1], [0, 0, 1, 1], [], []>} : vector<512x12xf32>, vector<12x4xf32>, vector<512x4xf32> -> vector<512x4xf32>
    %cst_29 = arith.constant 0.000000e+00 : f32
    %43 = vector.shape_cast %34 : vector<512x1xi1> to vector<512x1xi1>
    %44 = vector.broadcast %43 : vector<512x1xi1> to vector<512x4xi1>
    %45 = vector.broadcast %cst_29 : f32 to vector<512x4xf32>
    %46 = arith.select %44, %42, %45 : vector<512x4xi1>, vector<512x4xf32>
    %47 = arith.addf %37, %46 : vector<512x4xf32>
    %c0_30 = arith.constant 0 : index
    %c24_31 = arith.constant 24 : index
    %c0_32 = arith.constant 0 : index
    %48 = vector.load %arg9[%c0_30, %c24_31, %c0_32] : memref<2x304x12xf32, #tpu.memory_space<vmem>>, vector<2x256x12xf32>
    %49 = vector.shape_cast %48 : vector<2x256x12xf32> to vector<512x12xf32>
    %c1 = arith.constant 1 : index
    %c0_33 = arith.constant 0 : index
    %c0_34 = arith.constant 0 : index
    %50 = vector.load %arg4[%c1, %c0_33, %c0_34] : memref<3x12x4xf32, #tpu.memory_space<vmem>>, vector<1x12x4xf32>
    %51 = vector.shape_cast %50 : vector<1x12x4xf32> to vector<12x4xf32>
    %cst_35 = arith.constant dense<0.000000e+00> : vector<512x4xf32>
    %52 = tpu.matmul %49, %51, %cst_35 {dimension_numbers = #tpu.dot_dimension_numbers<[1], [0], [0], [1], [0, 0, 1, 1], [], []>} : vector<512x12xf32>, vector<12x4xf32>, vector<512x4xf32> -> vector<512x4xf32>
    %53 = arith.addf %47, %52 : vector<512x4xf32>
    %c0_36 = arith.constant 0 : index
    %c25 = arith.constant 25 : index
    %c0_37 = arith.constant 0 : index
    %54 = vector.load %arg9[%c0_36, %c25, %c0_37] : memref<2x304x12xf32, #tpu.memory_space<vmem>>, vector<2x256x12xf32>
    %55 = vector.shape_cast %54 : vector<2x256x12xf32> to vector<512x12xf32>
    %c2 = arith.constant 2 : index
    %c0_38 = arith.constant 0 : index
    %c0_39 = arith.constant 0 : index
    %56 = vector.load %arg4[%c2, %c0_38, %c0_39] : memref<3x12x4xf32, #tpu.memory_space<vmem>>, vector<1x12x4xf32>
    %57 = vector.shape_cast %56 : vector<1x12x4xf32> to vector<12x4xf32>
    %cst_40 = arith.constant dense<0.000000e+00> : vector<512x4xf32>
    %58 = tpu.matmul %55, %57, %cst_40 {dimension_numbers = #tpu.dot_dimension_numbers<[1], [0], [0], [1], [0, 0, 1, 1], [], []>} : vector<512x12xf32>, vector<12x4xf32>, vector<512x4xf32> -> vector<512x4xf32>
    %cst_41 = arith.constant 0.000000e+00 : f32
    %59 = vector.shape_cast %36 : vector<512x1xi1> to vector<512x1xi1>
    %60 = vector.broadcast %59 : vector<512x1xi1> to vector<512x4xi1>
    %61 = vector.broadcast %cst_41 : f32 to vector<512x4xf32>
    %62 = arith.select %60, %58, %61 : vector<512x4xi1>, vector<512x4xf32>
    %63 = arith.addf %53, %62 : vector<512x4xf32>
    %c0_42 = arith.constant 0 : index
    %c0_43 = arith.constant 0 : index
    %64 = vector.load %arg5[%c0_42, %c0_43] : memref<1x4xf32, #tpu.memory_space<vmem>>, vector<1x4xf32>
    %65 = vector.broadcast %64 : vector<1x4xf32> to vector<512x4xf32>
    %66 = arith.addf %63, %65 : vector<512x4xf32>
    %cst_44 = arith.constant 0.000000e+00 : f32
    %67 = vector.broadcast %cst_44 : f32 to vector<512x4xf32>
    %68 = arith.maximumf %66, %67 : vector<512x4xf32>
    %c0_45 = arith.constant 0 : index
    %c0_46 = arith.constant 0 : index
    %69 = vector.load %arg6[%c0_45, %c0_46] : memref<4x16xf32, #tpu.memory_space<vmem>>, vector<4x16xf32>
    %cst_47 = arith.constant dense<0.000000e+00> : vector<512x16xf32>
    %70 = tpu.matmul %68, %69, %cst_47 {dimension_numbers = #tpu.dot_dimension_numbers<[1], [0], [0], [1], [0, 0, 1, 1], [], []>} : vector<512x4xf32>, vector<4x16xf32>, vector<512x16xf32> -> vector<512x16xf32>
    %c0_48 = arith.constant 0 : index
    %c0_49 = arith.constant 0 : index
    %71 = vector.load %arg7[%c0_48, %c0_49] : memref<1x16xf32, #tpu.memory_space<vmem>>, vector<1x16xf32>
    %72 = vector.broadcast %71 : vector<1x16xf32> to vector<512x16xf32>
    %73 = arith.addf %70, %72 : vector<512x16xf32>
    %c0_50 = arith.constant 0 : index
    %c0_51 = arith.constant 0 : index
    %c0_52 = arith.constant 0 : index
    %74 = vector.load %arg1[%c0_50, %c0_51, %c0_52] : memref<2x256x16xf32, #tpu.memory_space<vmem>>, vector<2x256x16xf32>
    %75 = vector.shape_cast %74 : vector<2x256x16xf32> to vector<512x16xf32>
    %76 = arith.addf %73, %75 : vector<512x16xf32>
    %cst_53 = arith.constant 0.000000e+00 : f32
    %77 = vector.broadcast %cst_53 : f32 to vector<512x16xf32>
    %78 = arith.maximumf %76, %77 : vector<512x16xf32>
    %79 = vector.shape_cast %78 : vector<512x16xf32> to vector<2x256x16xf32>
    %c0_54 = arith.constant 0 : index
    %c0_55 = arith.constant 0 : index
    %c0_56 = arith.constant 0 : index
    %80 = vector.load %arg8[%c0_54, %c0_55, %c0_56] : memref<2x256x16xf32, #tpu.memory_space<vmem>>, vector<2x256x16xf32>
    tpu.vector_store %arg8[%c0_54, %c0_55, %c0_56], %79 {strides = array<i32>} : memref<2x256x16xf32, #tpu.memory_space<vmem>>, vector<2x256x16xf32>,
    return
  }
  func.func @transform_0(%arg0: i32) -> (i32, i32, i32) {
    %c0_i32 = arith.constant 0 : i32
    %c0_i32_0 = arith.constant 0 : i32
    %c0_i32_1 = arith.constant 0 : i32
    return %arg0, %c0_i32, %c0_i32_0 : i32, i32, i32
  }
  func.func @transform_1(%arg0: i32) -> (i32, i32) {
    %c0_i32 = arith.constant 0 : i32
    %c0_i32_0 = arith.constant 0 : i32
    %c0_i32_1 = arith.constant 0 : i32
    return %c0_i32, %c0_i32_0 : i32, i32
  }
  func.func @transform_2(%arg0: i32) -> (i32, i32) {
    %c0_i32 = arith.constant 0 : i32
    %c0_i32_0 = arith.constant 0 : i32
    %c0_i32_1 = arith.constant 0 : i32
    return %c0_i32, %c0_i32_0 : i32, i32
  }
  func.func @transform_3(%arg0: i32) -> (i32, i32, i32) {
    %c0_i32 = arith.constant 0 : i32
    %c0_i32_0 = arith.constant 0 : i32
    %c0_i32_1 = arith.constant 0 : i32
    %c0_i32_2 = arith.constant 0 : i32
    return %c0_i32, %c0_i32_0, %c0_i32_1 : i32, i32, i32
  }
  func.func @transform_4(%arg0: i32) -> (i32, i32) {
    %c0_i32 = arith.constant 0 : i32
    %c0_i32_0 = arith.constant 0 : i32
    %c0_i32_1 = arith.constant 0 : i32
    return %c0_i32, %c0_i32_0 : i32, i32
  }
  func.func @transform_5(%arg0: i32) -> (i32, i32) {
    %c0_i32 = arith.constant 0 : i32
    %c0_i32_0 = arith.constant 0 : i32
    %c0_i32_1 = arith.constant 0 : i32
    return %c0_i32, %c0_i32_0 : i32, i32
  }
  func.func @transform_6(%arg0: i32) -> (i32, i32) {
    %c0_i32 = arith.constant 0 : i32
    %c0_i32_0 = arith.constant 0 : i32
    %c0_i32_1 = arith.constant 0 : i32
    return %c0_i32, %c0_i32_0 : i32, i32
  }
  func.func @transform_7(%arg0: i32) -> (i32, i32, i32) {
    %c0_i32 = arith.constant 0 : i32
    %c0_i32_0 = arith.constant 0 : i32
    %c0_i32_1 = arith.constant 0 : i32
    return %arg0, %c0_i32, %c0_i32_0 : i32, i32, i32
  }
}

</mosaic_0001>

<bundles_post_ra>
// kernel: tpu_custom_call.1
= control target key start
LH: loop header
LB: loop body
LE: loop exit
PB: predicated region body
PF: predicated region fallthrough
CT: control target
= control target key end

     0   :  { %s7421_s24 = smov 0   ;;  %s9703_s0 = inlined_call_operand.vmem [shape: f32[4,256,16], index: 0, kind: input, shape index: {}]   ;;  %s9704_s1 = inlined_call_operand.vmem [shape: f32[16,4], index: 1, kind: input, shape index: {}]   ;;  %s9705_s2 = inlined_call_operand.vmem [shape: f32[1,4], index: 2, kind: input, shape index: {}]   ;;  %s9706_s3 = inlined_call_operand.vmem [shape: f32[3,12,4], index: 3, kind: input, shape index: {}]   ;;  %s9707_s4 = inlined_call_operand.vmem [shape: f32[1,4], index: 4, kind: input, shape index: {}]   ;;  %s9708_s5 = inlined_call_operand.vmem [shape: f32[4,16], index: 5, kind: input, shape index: {}]   ;;  %s9709_s6 = inlined_call_operand.vmem [shape: f32[1,16], index: 6, kind: input, shape index: {}]   ;;  %s9710_s7 = inlined_call_operand.vmem [shape: f32[4,256,16], index: 7, kind: output, shape index: {}]  }
   0x1 LB: > { %s6181_s25 = sadd.s32 4294967295, %s7376_s24   ;;  %p6185_p0 = scmp.ge.s32.totalorder %s7376_s24, 1  ;;  %s7376_s24 = sphi %s7421_s24, %s17_s24  }
   0x2   : > { %p239_p1 = scmp.lt.s32.totalorder %s7376_s24, 3 }
   0x4   : > { %p240_p2 = pnand %p6185_p0, %p239_p1 }
   0x6   : > { %243 = sbr.rel (%p240_p2) target bundleno = 1121 (0x461), region = 48 }
   0xb   : > { %v352_v0 = vld [vmem:[%s9704_s1 + $0x8] sm:$0xff]  ;;  %v351_v1 = vld [vmem:[%s9704_s1] sm:$0xff]  ;;  %s6186_s30 = sshll.u32 %s6181_s25, 1  ;;  %vm360_vm0 = vcmask 130048   ;;  %vm1002_vm1 = vcmask 97280   ;;  %vm1023_vm2 = vcmask 31744  }
   0xc   : > { %6856 = vmatprep.subr.mxu0 %v352_v0  ;;  %7354 = vmatprep.subr.mxu1 %v352_v0  ;;  %p274_p3 = scmp.lt.s32.totalorder %s6186_s30, 3  ;;  %s7379_s14 = smov 8   ;;  %vm2885_vm3 = vcmask 1043456   ;;  %vm1601_vm4 = vcmask 97344   ;;  %vm1344_vm5 = vcmask 64544  }
   0xd   : > { %6857 = vmatpush3.msra.mxu0 %v352_v0  ;;  %7356 = vmatpush3.msra.mxu1 %v352_v0  ;;  %s7380_s15 = smov 4  }
   0xe   : > { %6858 = vmatprep.subr.mxu0 %v351_v1  ;;  %s9932_s30 = smov (!%p274_p3, %s6186_s30), 3  ;;  %7355 = vmatprep.subr.mxu1 %v351_v1 }
   0xf   : > { %6859 = vmatpush3.msra.mxu0 %v351_v1  ;;  %7357 = vmatpush3.msra.mxu1 %v351_v1  ;;  %s6525_s8 = sshll.u32 %s9932_s30, 8 }
  0x10   : > { %s7443_s11 = scalar_lea.vmem %s9703_s0, %s6525_s8  ;;  %s9446_s19 = scalar_lea.vmem %s9710_s7, %s6525_s8 }
  0x11   : > { %v287_v2 = vld [vmem:[%s7443_s11] sm:$0xff]  ;;  %v288_v3 = vld [vmem:[%s7443_s11 + $0x8] sm:$0xff]  ;;  %v289_v6 = vld [vmem:[%s7443_s11 + $0x10] sm:$0xff] }
  0x12   : > { %v319_v4 = vld [vmem:[%s7443_s11 + $0x100] sm:$0xff]  ;;  %6860 = vmatprep.mubr.msk.f32.mxu0 %vm360_vm0, %v287_v2  ;;  %v320_v5 = vld [vmem:[%s7443_s11 + $0x108] sm:$0xff]  ;;  %v321_v7 = vld [vmem:[%s7443_s11 + $0x110] sm:$0xff]  ;;  %v7378_v2 = vmov 0.0  }
  0x13   : > { %6908 = vmatprep.mubr.msk.f32.mxu1 %vm360_vm0, %v319_v4  ;;  %6861 = vmatmul.mubr.msk.f32.vlgmr.msra.gmra.mxu0 %vm360_vm0, %v288_v3  ;;  %v290_v8 = vld [vmem:[%s7443_s11 + $0x18] sm:$0xff]  ;;  %v291_v10 = vld [vmem:[%s7443_s11 + $0x20] sm:$0xff]  ;;  %v292_v12 = vld [vmem:[%s7443_s11 + $0x28] sm:$0xff]  ;;  %1005 = vst.msk [vmem:[#allocation2 + $0x10] sm:$0xff] %vm1002_vm1, %v7378_v2 }
  0x14   : > { %6909 = vmatmul.mubr.msk.f32.vlgmr.msra.gmra.mxu1 %vm360_vm0, %v320_v5  ;;  %6863 = vmatprep.mubr.msk.f32.mxu0 %vm360_vm0, %v289_v6  ;;  %v322_v9 = vld [vmem:[%s7443_s11 + $0x118] sm:$0xff]  ;;  %v323_v11 = vld [vmem:[%s7443_s11 + $0x120] sm:$0xff]  ;;  %v324_v13 = vld [vmem:[%s7443_s11 + $0x128] sm:$0xff]  ;;  %1006 = vst.msk [vmem:[#allocation2 + $0x18] sm:$0xff] %vm1002_vm1, %v7378_v2 }
  0x15   : > { %6911 = vmatprep.mubr.msk.f32.mxu1 %vm360_vm0, %v321_v7  ;;  %v293_v14 = vld [vmem:[%s7443_s11 + $0x30] sm:$0xff]  ;;  %v294_v16 = vld [vmem:[%s7443_s11 + $0x38] sm:$0xff]  ;;  %v295_v18 = vld [vmem:[%s7443_s11 + $0x40] sm:$0xff]  ;;  %1007 = vst.msk [vmem:[#allocation2 + $0x20] sm:$0xff] %vm1002_vm1, %v7378_v2 }
  0x16   : > { %v325_v15 = vld [vmem:[%s7443_s11 + $0x130] sm:$0xff]  ;;  %v326_v17 = vld [vmem:[%s7443_s11 + $0x138] sm:$0xff]  ;;  %v327_v19 = vld [vmem:[%s7443_s11 + $0x140] sm:$0xff]  ;;  %1010 = vst.msk [vmem:[#allocation2 + $0x140] sm:$0xff] %vm1002_vm1, %v7378_v2 }
  0x17   : > { %6864 = vmatmul.mubr.msk.f32.gmra.mxu0 %vm360_vm0, %v290_v8  ;;  %v296_v20 = vld [vmem:[%s7443_s11 + $0x48] sm:$0xff]  ;;  %v297_v22 = vld [vmem:[%s7443_s11 + $0x50] sm:$0xff]  ;;  %v298_v24 = vld [vmem:[%s7443_s11 + $0x58] sm:$0xff]  ;;  %1011 = vst.msk [vmem:[#allocation2 + $0x148] sm:$0xff] %vm1002_vm1, %v7378_v2 }
  0x18   : > { %6912 = vmatmul.mubr.msk.f32.gmra.mxu1 %vm360_vm0, %v322_v9  ;;  %6866 = vmatprep.mubr.msk.f32.mxu0 %vm360_vm0, %v291_v10  ;;  %v328_v21 = vld [vmem:[%s7443_s11 + $0x148] sm:$0xff]  ;;  %v329_v23 = vld [vmem:[%s7443_s11 + $0x150] sm:$0xff]  ;;  %v330_v25 = vld [vmem:[%s7443_s11 + $0x158] sm:$0xff]  ;;  %1012 = vst.msk [vmem:[#allocation2 + $0x150] sm:$0xff] %vm1002_vm1, %v7378_v2 }
  0x19   : > { %6914 = vmatprep.mubr.msk.f32.mxu1 %vm360_vm0, %v323_v11  ;;  %v299_v26 = vld [vmem:[%s7443_s11 + $0x60] sm:$0xff]  ;;  %v300_v28 = vld [vmem:[%s7443_s11 + $0x68] sm:$0xff]  ;;  %v301_v30 = vld [vmem:[%s7443_s11 + $0x70] sm:$0xff]  ;;  %1013 = vst.msk [vmem:[#allocation2 + $0x108] sm:$0xff] %vm1002_vm1, %v7378_v2 }
  0x1a   : > { %v331_v27 = vld [vmem:[%s7443_s11 + $0x160] sm:$0xff]  ;;  %v332_v29 = vld [vmem:[%s7443_s11 + $0x168] sm:$0xff]  ;;  %v333_v31 = vld [vmem:[%s7443_s11 + $0x170] sm:$0xff]  ;;  %1014 = vst.msk [vmem:[#allocation2 + $0x110] sm:$0xff] %vm1002_vm1, %v7378_v2 }
  0x1b   : > { %6867 = vmatmul.mubr.msk.f32.gmra.mxu0 %vm360_vm0, %v292_v12  ;;  %v302_v32 = vld [vmem:[%s7443_s11 + $0x78] sm:$0xff]  ;;  %v303_v34 = vld [vmem:[%s7443_s11 + $0x80] sm:$0xff]  ;;  %v304_v36 = vld [vmem:[%s7443_s11 + $0x88] sm:$0xff]  ;;  %1015 = vst.msk [vmem:[#allocation2 + $0x118] sm:$0xff] %vm1002_vm1, %v7378_v2 }
  0x1c   : > { %6915 = vmatmul.mubr.msk.f32.gmra.mxu1 %vm360_vm0, %v324_v13  ;;  %6869 = vmatprep.mubr.msk.f32.mxu0 %vm360_vm0, %v293_v14  ;;  %v334_v33 = vld [vmem:[%s7443_s11 + $0x178] sm:$0xff]  ;;  %v335_v35 = vld [vmem:[%s7443_s11 + $0x180] sm:$0xff]  ;;  %v336_v37 = vld [vmem:[%s7443_s11 + $0x188] sm:$0xff]  ;;  %1018 = vst.msk [vmem:[#allocation2 + $0x238] sm:$0xff] %vm1002_vm1, %v7378_v2 }
  0x1d   : > { %6917 = vmatprep.mubr.msk.f32.mxu1 %vm360_vm0, %v325_v15  ;;  %v305_v38 = vld [vmem:[%s7443_s11 + $0x90] sm:$0xff]  ;;  %v306_v40 = vld [vmem:[%s7443_s11 + $0x98] sm:$0xff]  ;;  %v307_v41 = vld [vmem:[%s7443_s11 + $0xa0] sm:$0xff]  ;;  %1019 = vst.msk [vmem:[#allocation2 + $0x240] sm:$0xff] %vm1002_vm1, %v7378_v2 }
  0x1e   : > { %v337_v39 = vld [vmem:[%s7443_s11 + $0x190] sm:$0xff]  ;;  %v308_v42 = vld [vmem:[%s7443_s11 + $0xa8] sm:$0xff]  ;;  %v310_v44 = vld [vmem:[%s7443_s11 + $0xb8] sm:$0xff]  ;;  %1020 = vst.msk [vmem:[#allocation2 + $0x248] sm:$0xff] %vm1002_vm1, %v7378_v2 }
  0x1f   : > { %6870 = vmatmul.mubr.msk.f32.gmra.mxu0 %vm360_vm0, %v294_v16  ;;  %v309_v43 = vld [vmem:[%s7443_s11 + $0xb0] sm:$0xff]  ;;  %v311_v45 = vld [vmem:[%s7443_s11 + $0xc0] sm:$0xff]  ;;  %v312_v46 = vld [vmem:[%s7443_s11 + $0xc8] sm:$0xff] }
  0x20   : > { %6918 = vmatmul.mubr.msk.f32.gmra.mxu1 %vm360_vm0, %v326_v17  ;;  %6872 = vmatprep.mubr.msk.f32.mxu0 %vm360_vm0, %v295_v18  ;;  %v313_v47 = vld [vmem:[%s7443_s11 + $0xd0] sm:$0xff]  ;;  %v314_v48 = vld [vmem:[%s7443_s11 + $0xd8] sm:$0xff]  ;;  %v315_v49 = vld [vmem:[%s7443_s11 + $0xe0] sm:$0xff] }
  0x21   : > { %6920 = vmatprep.mubr.msk.f32.mxu1 %vm360_vm0, %v327_v19  ;;  %v316_v50 = vld [vmem:[%s7443_s11 + $0xe8] sm:$0xff]  ;;  %v317_v51 = vld [vmem:[%s7443_s11 + $0xf0] sm:$0xff]  ;;  %v318_v52 = vld [vmem:[%s7443_s11 + $0xf8] sm:$0xff] }
  0x22   : > { %v338_v53 = vld [vmem:[%s7443_s11 + $0x198] sm:$0xff]  ;;  %v339_v54 = vld [vmem:[%s7443_s11 + $0x1a0] sm:$0xff]  ;;  %v340_v55 = vld [vmem:[%s7443_s11 + $0x1a8] sm:$0xff] }
  0x23   : > { %6873 = vmatmul.mubr.msk.f32.gmra.mxu0 %vm360_vm0, %v296_v20  ;;  %v341_v56 = vld [vmem:[%s7443_s11 + $0x1b0] sm:$0xff]  ;;  %v342_v57 = vld [vmem:[%s7443_s11 + $0x1b8] sm:$0xff]  ;;  %v343_v58 = vld [vmem:[%s7443_s11 + $0x1c0] sm:$0xff] }
  0x24   : > { %6921 = vmatmul.mubr.msk.f32.gmra.mxu1 %vm360_vm0, %v328_v21  ;;  %6875 = vmatprep.mubr.msk.f32.mxu0 %vm360_vm0, %v297_v22  ;;  %v344_v59 = vld [vmem:[%s7443_s11 + $0x1c8] sm:$0xff]  ;;  %v345_v60 = vld [vmem:[%s7443_s11 + $0x1d0] sm:$0xff]  ;;  %v346_v61 = vld [vmem:[%s7443_s11 + $0x1d8] sm:$0xff] }
  0x25   : > { %6923 = vmatprep.mubr.msk.f32.mxu1 %vm360_vm0, %v329_v23  ;;  %v347_v62 = vld [vmem:[%s7443_s11 + $0x1e0] sm:$0xff]  ;;  %v348_v63 = vld [vmem:[%s7443_s11 + $0x1e8] sm:$0xff]  ;;  %v349_v0 = vld [vmem:[%s7443_s11 + $0x1f0] sm:$0xff] }
  0x26   : > { %v350_v1 = vld [vmem:[%s7443_s11 + $0x1f8] sm:$0xff]  ;;  %v7588_v3 = vld [vmem:[%s9705_s2] ss:$0 sm:$0xff] }
  0x27   : > { %6876 = vmatmul.mubr.msk.f32.gmra.mxu0 %vm360_vm0, %v298_v24 }
  0x28   : > { %6924 = vmatmul.mubr.msk.f32.gmra.mxu1 %vm360_vm0, %v330_v25  ;;  %6878 = vmatprep.mubr.msk.f32.mxu0 %vm360_vm0, %v299_v26 }
  0x29   : > { %6926 = vmatprep.mubr.msk.f32.mxu1 %vm360_vm0, %v331_v27 }
  0x2b   : > { %6879 = vmatmul.mubr.msk.f32.gmra.mxu0 %vm360_vm0, %v300_v28 }
  0x2c   : > { %6927 = vmatmul.mubr.msk.f32.gmra.mxu1 %vm360_vm0, %v332_v29  ;;  %6881 = vmatprep.mubr.msk.f32.mxu0 %vm360_vm0, %v301_v30 }
  0x2d   : > { %6929 = vmatprep.mubr.msk.f32.mxu1 %vm360_vm0, %v333_v31 }
  0x2f   : > { %6882 = vmatmul.mubr.msk.f32.gmra.mxu0 %vm360_vm0, %v302_v32 }
  0x30   : > { %6930 = vmatmul.mubr.msk.f32.gmra.mxu1 %vm360_vm0, %v334_v33  ;;  %6884 = vmatprep.mubr.msk.f32.mxu0 %vm360_vm0, %v303_v34 }
  0x31   : > { %6932 = vmatprep.mubr.msk.f32.mxu1 %vm360_vm0, %v335_v35 }
  0x33   : > { %6885 = vmatmul.mubr.msk.f32.gmra.mxu0 %vm360_vm0, %v304_v36 }
  0x34   : > { %6933 = vmatmul.mubr.msk.f32.gmra.mxu1 %vm360_vm0, %v336_v37  ;;  %6887 = vmatprep.mubr.msk.f32.mxu0 %vm360_vm0, %v305_v38 }
  0x35   : > { %6935 = vmatprep.mubr.msk.f32.mxu1 %vm360_vm0, %v337_v39 }
  0x37   : > { %6888 = vmatmul.mubr.msk.f32.gmra.mxu0 %vm360_vm0, %v306_v40 }
  0x38   : > { %6890 = vmatprep.mubr.msk.f32.mxu0 %vm360_vm0, %v307_v41  ;;  %6936 = vmatmul.mubr.msk.f32.gmra.mxu1 %vm360_vm0, %v338_v53  ;;  %v6323_v53 = vld [vmem:[%s9706_s3 + $0x18] sm:$0xf] }
  0x39   : > { %6938 = vmatprep.mubr.msk.f32.mxu1 %vm360_vm0, %v339_v54  ;;  %7056 = vmatprep.subr.msk.mxu0 %vm2885_vm3, %v6323_v53 }
  0x3a   : > { %7057 = vmatpush3.msk.msra.mxu0 %vm2885_vm3, %v6323_v53 }
  0x3b   : > { %6891 = vmatmul.mubr.msk.f32.gmra.mxu0 %vm360_vm0, %v308_v42 }
  0x3c   : > { %6893 = vmatprep.mubr.msk.f32.mxu0 %vm360_vm0, %v309_v43  ;;  %6939 = vmatmul.mubr.msk.f32.gmra.mxu1 %vm360_vm0, %v340_v55 }
  0x3d   : > { %6941 = vmatprep.mubr.msk.f32.mxu1 %vm360_vm0, %v341_v56 }
  0x3f   : > { %6894 = vmatmul.mubr.msk.f32.gmra.mxu0 %vm360_vm0, %v310_v44 }
  0x40   : > { %6896 = vmatprep.mubr.msk.f32.mxu0 %vm360_vm0, %v311_v45  ;;  %6942 = vmatmul.mubr.msk.f32.gmra.mxu1 %vm360_vm0, %v342_v57 }
  0x41   : > { %6944 = vmatprep.mubr.msk.f32.mxu1 %vm360_vm0, %v343_v58  ;;  %v2691_v58 = vld [vmem:[%s9706_s3] sm:$0xff] }
  0x43   : > { %6897 = vmatmul.mubr.msk.f32.gmra.mxu0 %vm360_vm0, %v312_v46 }
  0x44   : > { %6899 = vmatprep.mubr.msk.f32.mxu0 %vm360_vm0, %v313_v47  ;;  %6945 = vmatmul.mubr.msk.f32.gmra.mxu1 %vm360_vm0, %v344_v59  ;;  %v6322_v59 = vld [vmem:[%s9706_s3 + $0x10] sm:$0xff] }
  0x45   : > { %6947 = vmatprep.mubr.msk.f32.mxu1 %vm360_vm0, %v345_v60  ;;  %7058 = vmatprep.subr.mxu0 %v6322_v59 }
  0x46   : > { %7059 = vmatpush3.msra.mxu0 %v6322_v59 }
  0x47   : > { %6900 = vmatmul.mubr.msk.f32.gmra.mxu0 %vm360_vm0, %v314_v48 }
  0x48   : > { %6902 = vmatprep.mubr.msk.f32.mxu0 %vm360_vm0, %v315_v49  ;;  %6948 = vmatmul.mubr.msk.f32.gmra.mxu1 %vm360_vm0, %v346_v61 }
  0x49   : > { %6950 = vmatprep.mubr.msk.f32.mxu1 %vm360_vm0, %v347_v62 }
  0x4b   : > { %6903 = vmatmul.mubr.msk.f32.gmra.mxu0 %vm360_vm0, %v316_v50 }
  0x4c   : > { %6905 = vmatprep.mubr.msk.f32.mxu0 %vm360_vm0, %v317_v51  ;;  %6951 = vmatmul.mubr.msk.f32.gmra.mxu1 %vm360_vm0, %v348_v63 }
  0x4d   : > { %6953 = vmatprep.mubr.msk.f32.mxu1 %vm360_vm0, %v349_v0 }
  0x4f   : > { %6906 = vmatmul.mubr.msk.f32.gmra.mxu0 %vm360_vm0, %v318_v52  ;;  %v2692_v52 = vld [vmem:[%s9706_s3 + $0x8] sm:$0xf] }
  0x50   : > { %6954 = vmatmul.mubr.msk.f32.gmra.mxu1 %vm360_vm0, %v350_v1  ;;  %6956 = vmatprep.subr.msk.mxu1 %vm2885_vm3, %v2692_v52 }
  0x51   : > { %6957 = vmatpush3.msk.msra.mxu1 %vm2885_vm3, %v2692_v52 }
  0x52   : > { %6958 = vmatprep.subr.mxu1 %v2691_v58 }
  0x53   : > { %6959 = vmatpush3.msra.mxu1 %v2691_v58 }
  0xd3   : > { %v6862_v4 = vpop.f32.mrf.mxu0 }
  0xd4   : > { %v6910_v5 = vpop.f32.mrf.mxu1  ;;  %v625_v6 = vadd.f32 %v6862_v4, %v7588_v3 }
  0xd5   : > { %v785_v7 = vadd.f32 %v6910_v5, %v7588_v3  ;;  %v619_v8 = vpop.f32.mrf.mxu0 }
  0xd6   : > { %v779_v9 = vpop.f32.mrf.mxu1  ;;  %v939_v10 = vmax.f32 %v625_v6, 0.0  ;;  %v620_v11 = vadd.f32 %v7588_v3, %v619_v8 }
  0xd7   : > { %v971_v12 = vmax.f32 %v785_v7, 0.0  ;;  %v780_v13 = vadd.f32 %v7588_v3, %v779_v9  ;;  %v6865_v14 = vpop.f32.mrf.mxu0 }
  0xd8   : > { %v6913_v15 = vpop.f32.mrf.mxu1  ;;  %v7594_v16 = vmax.f32 %v620_v11, 0.0  ;;  %1411 = vrot.lane.b32.xlu1 %v939_v10, %s7379_s14  ;;  %1154 = vrot.lane.b32.xlu0 %v939_v10, %s7380_s15  ;;  %v635_v18 = vadd.f32 %v6865_v14, %v7588_v3  ;;  %1025 = vst.msk [vmem:[#allocation2 + $0x30] sm:$0xff] %vm1023_vm2, %v939_v10 }
  0xd9   : > { %v7596_v17 = vmax.f32 %v780_v13, 0.0  ;;  %v795_v19 = vadd.f32 %v6913_v15, %v7588_v3  ;;  %1057 = vst.msk [vmem:[#allocation2 + $0x160] sm:$0xff] %vm1023_vm2, %v971_v12  ;;  %v629_v20 = vpop.f32.mrf.mxu0 }
  0xda   : > { %v789_v21 = vpop.f32.mrf.mxu1  ;;  %v7604_v22 = vmax.f32 %v635_v18, 0.0  ;;  %v630_v24 = vadd.f32 %v7588_v3, %v629_v20  ;;  %1024 = vst.msk [vmem:[#allocation2 + $0x28] sm:$0xff] %vm1023_vm2, %v7594_v16 }
  0xdb   : > { %v7606_v23 = vmax.f32 %v795_v19, 0.0  ;;  %v790_v25 = vadd.f32 %v7588_v3, %v789_v21  ;;  %1056 = vst.msk [vmem:[#allocation2 + $0x158] sm:$0xff] %vm1023_vm2, %v7596_v17  ;;  %v6868_v26 = vpop.f32.mrf.mxu0 }
  0xdc   : > { %v6916_v27 = vpop.f32.mrf.mxu1  ;;  %1475 = vrot.lane.b32.xlu1 %v971_v12, %s7379_s14  ;;  %1218 = vrot.lane.b32.xlu0 %v971_v12, %s7380_s15  ;;  %v7616_v28 = vmax.f32 %v630_v24, 0.0  ;;  %v645_v30 = vadd.f32 %v6868_v26, %v7588_v3  ;;  %1027 = vst.msk [vmem:[#allocation2 + $0x40] sm:$0xff] %vm1023_vm2, %v7604_v22 }
  0xdd   : > { %v7618_v29 = vmax.f32 %v790_v25, 0.0  ;;  %v805_v31 = vadd.f32 %v6916_v27, %v7588_v3  ;;  %1059 = vst.msk [vmem:[#allocation2 + $0x170] sm:$0xff] %vm1023_vm2, %v7606_v23  ;;  %v639_v32 = vpop.f32.mrf.mxu0 }
  0xde   : > { %v799_v33 = vpop.f32.mrf.mxu1  ;;  %v7626_v34 = vmax.f32 %v645_v30, 0.0  ;;  %v640_v36 = vadd.f32 %v7588_v3, %v639_v32  ;;  %1026 = vst.msk [vmem:[#allocation2 + $0x38] sm:$0xff] %vm1023_vm2, %v7616_v28 }
  0xdf   : > { %v7628_v35 = vmax.f32 %v805_v31, 0.0  ;;  %v800_v37 = vadd.f32 %v7588_v3, %v799_v33  ;;  %1058 = vst.msk [vmem:[#allocation2 + $0x168] sm:$0xff] %vm1023_vm2, %v7618_v29  ;;  %v6871_v38 = vpop.f32.mrf.mxu0 }
  0xe0   : > { %v6919_v39 = vpop.f32.mrf.mxu1  ;;  %1216 = vrot.lane.b32.xlu1 %v7596_v17, %s7380_s15  ;;  %1152 = vrot.lane.b32.xlu0 %v7594_v16, %s7380_s15  ;;  %v7640_v40 = vmax.f32 %v640_v36, 0.0  ;;  %v655_v42 = vadd.f32 %v6871_v38, %v7588_v3  ;;  %1029 = vst.msk [vmem:[#allocation2 + $0x50] sm:$0xff] %vm1023_vm2, %v7626_v34 }
  0xe1   : > { %v7642_v41 = vmax.f32 %v800_v37, 0.0  ;;  %v815_v43 = vadd.f32 %v6919_v39, %v7588_v3  ;;  %1061 = vst.msk [vmem:[#allocation2 + $0x180] sm:$0xff] %vm1023_vm2, %v7628_v35  ;;  %v649_v44 = vpop.f32.mrf.mxu0 }
  0xe2   : > { %v809_v45 = vpop.f32.mrf.mxu1  ;;  %v7650_v46 = vmax.f32 %v655_v42, 0.0  ;;  %v650_v48 = vadd.f32 %v7588_v3, %v649_v44  ;;  %1028 = vst.msk [vmem:[#allocation2 + $0x48] sm:$0xff] %vm1023_vm2, %v7640_v40 }
  0xe3   : > { %v7652_v47 = vmax.f32 %v815_v43, 0.0  ;;  %v810_v49 = vadd.f32 %v7588_v3, %v809_v45  ;;  %1060 = vst.msk [vmem:[#allocation2 + $0x178] sm:$0xff] %vm1023_vm2, %v7642_v41  ;;  %v6874_v50 = vpop.f32.mrf.mxu0 }
  0xe4   : > { %v6922_v51 = vpop.f32.mrf.mxu1  ;;  %1479 = vrot.lane.b32.xlu1 %v7606_v23, %s7379_s14  ;;  %1415 = vrot.lane.b32.xlu0 %v7604_v22, %s7379_s14  ;;  %v7670_v54 = vmax.f32 %v650_v48, 0.0  ;;  %v665_v56 = vadd.f32 %v6874_v50, %v7588_v3  ;;  %1031 = vst.msk [vmem:[#allocation2 + $0x60] sm:$0xff] %vm1023_vm2, %v7650_v46 }
  0xe5   : > { %v7672_v55 = vmax.f32 %v810_v49, 0.0  ;;  %v825_v57 = vadd.f32 %v6922_v51, %v7588_v3  ;;  %1063 = vst.msk [vmem:[#allocation2 + $0x190] sm:$0xff] %vm1023_vm2, %v7652_v47  ;;  %v659_v60 = vpop.f32.mrf.mxu0 }
  0xe6   : > { %v819_v61 = vpop.f32.mrf.mxu1  ;;  %v7688_v62 = vmax.f32 %v665_v56, 0.0  ;;  %v660_v0 = vadd.f32 %v7588_v3, %v659_v60  ;;  %1030 = vst.msk [vmem:[#allocation2 + $0x58] sm:$0xff] %vm1023_vm2, %v7670_v54 }
  0xe7   : > { %v7690_v63 = vmax.f32 %v825_v57, 0.0  ;;  %v820_v1 = vadd.f32 %v7588_v3, %v819_v61  ;;  %1062 = vst.msk [vmem:[#allocation2 + $0x188] sm:$0xff] %vm1023_vm2, %v7672_v55  ;;  %v6877_v2 = vpop.f32.mrf.mxu0 }
  0xe8   : > { %v6925_v4 = vpop.f32.mrf.mxu1  ;;  %1222 = vrot.lane.b32.xlu1 %v7606_v23, %s7380_s15  ;;  %1158 = vrot.lane.b32.xlu0 %v7604_v22, %s7380_s15  ;;  %v7704_v5 = vmax.f32 %v660_v0, 0.0  ;;  %v675_v7 = vadd.f32 %v6877_v2, %v7588_v3  ;;  %1033 = vst.msk [vmem:[#allocation2 + $0x70] sm:$0xff] %vm1023_vm2, %v7688_v62 }
  0xe9   : > { %v7706_v6 = vmax.f32 %v820_v1, 0.0  ;;  %v835_v8 = vadd.f32 %v6925_v4, %v7588_v3  ;;  %1065 = vst.msk [vmem:[#allocation2 + $0x1a0] sm:$0xff] %vm1023_vm2, %v7690_v63  ;;  %v669_v9 = vpop.f32.mrf.mxu0 }
  0xea   : > { %v829_v10 = vpop.f32.mrf.mxu1  ;;  %v7714_v11 = vmax.f32 %v675_v7, 0.0  ;;  %v670_v13 = vadd.f32 %v7588_v3, %v669_v9  ;;  %1032 = vst.msk [vmem:[#allocation2 + $0x68] sm:$0xff] %vm1023_vm2, %v7704_v5 }
  0xeb   : > { %v7716_v12 = vmax.f32 %v835_v8, 0.0  ;;  %v830_v14 = vadd.f32 %v7588_v3, %v829_v10  ;;  %1064 = vst.msk [vmem:[#allocation2 + $0x198] sm:$0xff] %vm1023_vm2, %v7706_v6  ;;  %v6880_v15 = vpop.f32.mrf.mxu0 }
  0xec   : > { %v6928_v18 = vpop.f32.mrf.mxu1  ;;  %1413 = vrot.lane.b32.xlu1 %v7616_v28, %s7379_s14  ;;  %1477 = vrot.lane.b32.xlu0 %v7618_v29, %s7379_s14  ;;  %v7728_v19 = vmax.f32 %v670_v13, 0.0  ;;  %v685_v21 = vadd.f32 %v6880_v15, %v7588_v3  ;;  %1035 = vst.msk [vmem:[#allocation2 + $0x80] sm:$0xff] %vm1023_vm2, %v7714_v11 }
  0xed   : > { %v7730_v20 = vmax.f32 %v830_v14, 0.0  ;;  %v845_v22 = vadd.f32 %v6928_v18, %v7588_v3  ;;  %1067 = vst.msk [vmem:[#allocation2 + $0x1b0] sm:$0xff] %vm1023_vm2, %v7716_v12  ;;  %v679_v23 = vpop.f32.mrf.mxu0 }
  0xee   : > { %v839_v24 = vpop.f32.mrf.mxu1  ;;  %v7738_v25 = vmax.f32 %v685_v21, 0.0  ;;  %v680_v27 = vadd.f32 %v7588_v3, %v679_v23  ;;  %1034 = vst.msk [vmem:[#allocation2 + $0x78] sm:$0xff] %vm1023_vm2, %v7728_v19 }
  0xef   : > { %v7740_v26 = vmax.f32 %v845_v22, 0.0  ;;  %v840_v30 = vadd.f32 %v7588_v3, %v839_v24  ;;  %1066 = vst.msk [vmem:[#allocation2 + $0x1a8] sm:$0xff] %vm1023_vm2, %v7730_v20  ;;  %v6883_v31 = vpop.f32.mrf.mxu0 }
  0xf0   : > { %v6931_v32 = vpop.f32.mrf.mxu1  ;;  %1156 = vrot.lane.b32.xlu1 %v7616_v28, %s7380_s15  ;;  %1220 = vrot.lane.b32.xlu0 %v7618_v29, %s7380_s15  ;;  %v7752_v33 = vmax.f32 %v680_v27, 0.0  ;;  %v695_v37 = vadd.f32 %v6883_v31, %v7588_v3  ;;  %1037 = vst.msk [vmem:[#allocation2 + $0x90] sm:$0xff] %vm1023_vm2, %v7738_v25 }
  0xf1   : > { %v7754_v36 = vmax.f32 %v840_v30, 0.0  ;;  %v855_v38 = vadd.f32 %v6931_v32, %v7588_v3  ;;  %1069 = vst.msk [vmem:[#allocation2 + $0x1c0] sm:$0xff] %vm1023_vm2, %v7740_v26  ;;  %v689_v39 = vpop.f32.mrf.mxu0 }
  0xf2   : > { %v849_v42 = vpop.f32.mrf.mxu1  ;;  %v7762_v28 = vmax.f32 %v695_v37, 0.0  ;;  %v690_v29 = vadd.f32 %v7588_v3, %v689_v39  ;;  %1036 = vst.msk [vmem:[#allocation2 + $0x88] sm:$0xff] %vm1023_vm2, %v7752_v33 }
  0xf3   : > { %v7764_v43 = vmax.f32 %v855_v38, 0.0  ;;  %v850_v44 = vadd.f32 %v7588_v3, %v849_v42  ;;  %1068 = vst.msk [vmem:[#allocation2 + $0x1b8] sm:$0xff] %vm1023_vm2, %v7754_v36  ;;  %v6886_v45 = vpop.f32.mrf.mxu0 }
  0xf4   : > { %1483 = vrot.lane.b32.xlu1 %v7628_v35, %s7379_s14  ;;  %1419 = vrot.lane.b32.xlu0 %v7626_v34, %s7379_s14  ;;  %v7776_v48 = vmax.f32 %v690_v29, 0.0  ;;  %v705_v50 = vadd.f32 %v6886_v45, %v7588_v3  ;;  %1039 = vst.msk [vmem:[#allocation2 + $0xa0] sm:$0xff] %vm1023_vm2, %v7762_v28 }
  0xf5   : > { %v7778_v49 = vmax.f32 %v850_v44, 0.0  ;;  %1071 = vst.msk [vmem:[#allocation2 + $0x1d0] sm:$0xff] %vm1023_vm2, %v7764_v43  ;;  %v699_v51 = vpop.f32.mrf.mxu0 }
  0xf6   : > { %v7785_v52 = vmax.f32 %v705_v50, 0.0  ;;  %v700_v53 = vadd.f32 %v7588_v3, %v699_v51  ;;  %1038 = vst.msk [vmem:[#allocation2 + $0x98] sm:$0xff] %vm1023_vm2, %v7776_v48 }
  0xf7   : > { %1070 = vst.msk [vmem:[#allocation2 + $0x1c8] sm:$0xff] %vm1023_vm2, %v7778_v49  ;;  %v6889_v56 = vpop.f32.mrf.mxu0 }
  0xf8   : > { %1226 = vrot.lane.b32.xlu1 %v7628_v35, %s7380_s15  ;;  %1162 = vrot.lane.b32.xlu0 %v7626_v34, %s7380_s15  ;;  %v7796_v57 = vmax.f32 %v700_v53, 0.0  ;;  %v715_v58 = vadd.f32 %v6889_v56, %v7588_v3  ;;  %1041 = vst.msk [vmem:[#allocation2 + $0xb0] sm:$0xff] %vm1023_vm2, %v7785_v52 }
  0xf9   : > { %v709_v59 = vpop.f32.mrf.mxu0 }
  0xfa   : > { %v7801_v60 = vmax.f32 %v715_v58, 0.0  ;;  %v710_v61 = vadd.f32 %v7588_v3, %v709_v59  ;;  %1040 = vst.msk [vmem:[#allocation2 + $0xa8] sm:$0xff] %vm1023_vm2, %v7796_v57 }
  0xfb   : > { %v6892_v0 = vpop.f32.mrf.mxu0 }
  0xfc   : > { %1417 = vrot.lane.b32.xlu1 %v7640_v40, %s7379_s14  ;;  %1481 = vrot.lane.b32.xlu0 %v7642_v41, %s7379_s14  ;;  %v7810_v34 = vmax.f32 %v710_v61, 0.0  ;;  %v725_v35 = vadd.f32 %v6892_v0, %v7588_v3  ;;  %1043 = vst.msk [vmem:[#allocation2 + $0xc0] sm:$0xff] %vm1023_vm2, %v7801_v60 }
  0xfd   : > { %v719_v1 = vpop.f32.mrf.mxu0 }
  0xfe   : > { %v7815_v2 = vmax.f32 %v725_v35, 0.0  ;;  %1042 = vst.msk [vmem:[#allocation2 + $0xb8] sm:$0xff] %vm1023_vm2, %v7810_v34  ;;  %v720_v4 = vadd.f32 %v7588_v3, %v719_v1 }
  0xff   : > { %v6895_v7 = vpop.f32.mrf.mxu0 }
 0x100   : > { %1160 = vrot.lane.b32.xlu1 %v7640_v40, %s7380_s15  ;;  %1224 = vrot.lane.b32.xlu0 %v7642_v41, %s7380_s15  ;;  %1045 = vst.msk [vmem:[#allocation2 + $0xd0] sm:$0xff] %vm1023_vm2, %v7815_v2  ;;  %v7826_v8 = vmax.f32 %v720_v4, 0.0  ;;  %v735_v9 = vadd.f32 %v6895_v7, %v7588_v3 }
 0x101   : > { %v729_v10 = vpop.f32.mrf.mxu0 }
 0x102   : > { %1044 = vst.msk [vmem:[#allocation2 + $0xc8] sm:$0xff] %vm1023_vm2, %v7826_v8  ;;  %v7831_v13 = vmax.f32 %v735_v9, 0.0  ;;  %v730_v14 = vadd.f32 %v7588_v3, %v729_v10 }
 0x103   : > { %v6898_v15 = vpop.f32.mrf.mxu0 }
 0x104   : > { %1487 = vrot.lane.b32.xlu1 %v7652_v47, %s7379_s14  ;;  %1423 = vrot.lane.b32.xlu0 %v7650_v46, %s7379_s14  ;;  %1047 = vst.msk [vmem:[#allocation2 + $0xe0] sm:$0xff] %vm1023_vm2, %v7831_v13  ;;  %v7840_v40 = vmax.f32 %v730_v14, 0.0  ;;  %v745_v41 = vadd.f32 %v6898_v15, %v7588_v3 }
 0x105   : > { %v739_v18 = vpop.f32.mrf.mxu0 }
 0x106   : > { %1046 = vst.msk [vmem:[#allocation2 + $0xd8] sm:$0xff] %vm1023_vm2, %v7840_v40  ;;  %v7845_v21 = vmax.f32 %v745_v41, 0.0  ;;  %v740_v22 = vadd.f32 %v7588_v3, %v739_v18 }
 0x107   : > { %v6901_v23 = vpop.f32.mrf.mxu0 }
 0x108   : > { %1230 = vrot.lane.b32.xlu1 %v7652_v47, %s7380_s15  ;;  %1166 = vrot.lane.b32.xlu0 %v7650_v46, %s7380_s15  ;;  %1049 = vst.msk [vmem:[#allocation2 + $0xf0] sm:$0xff] %vm1023_vm2, %v7845_v21  ;;  %v7854_v24 = vmax.f32 %v740_v22, 0.0  ;;  %v755_v27 = vadd.f32 %v6901_v23, %v7588_v3  ;;  %v6934_v47 = vpop.f32.mrf.mxu1 }
 0x109   : > { %v749_v30 = vpop.f32.mrf.mxu0  ;;  %v865_v39 = vadd.f32 %v6934_v47, %v7588_v3 }
 0x10a   : > { %1048 = vst.msk [vmem:[#allocation2 + $0xe8] sm:$0xff] %vm1023_vm2, %v7854_v24  ;;  %v7859_v31 = vmax.f32 %v755_v27, 0.0  ;;  %v750_v32 = vadd.f32 %v7588_v3, %v749_v30  ;;  %v859_v29 = vpop.f32.mrf.mxu1 }
 0x10b   : > { %v6904_v37 = vpop.f32.mrf.mxu0  ;;  %v7877_v50 = vmax.f32 %v865_v39, 0.0  ;;  %v860_v51 = vadd.f32 %v7588_v3, %v859_v29 }
 0x10c   : > { %1421 = vrot.lane.b32.xlu1 %v7670_v54, %s7379_s14  ;;  %1485 = vrot.lane.b32.xlu0 %v7672_v55, %s7379_s14  ;;  %1051 = vst.msk [vmem:[#allocation2 + $0x100] sm:$0xff] %vm1023_vm2, %v7859_v31  ;;  %v7868_v46 = vmax.f32 %v750_v32, 0.0  ;;  %v765_v38 = vadd.f32 %v6904_v37, %v7588_v3  ;;  %v6937_v0 = vpop.f32.mrf.mxu1 }
 0x10d   : > { %v759_v42 = vpop.f32.mrf.mxu0  ;;  %1073 = vst.msk [vmem:[#allocation2 + $0x1e0] sm:$0xff] %vm1023_vm2, %v7877_v50  ;;  %v7893_v59 = vmax.f32 %v860_v51, 0.0  ;;  %v875_v1 = vadd.f32 %v6937_v0, %v7588_v3 }
 0x10e   : > { %1050 = vst.msk [vmem:[#allocation2 + $0xf8] sm:$0xff] %vm1023_vm2, %v7868_v46  ;;  %v7874_v44 = vmax.f32 %v765_v38, 0.0  ;;  %v760_v45 = vadd.f32 %v7588_v3, %v759_v42  ;;  %v869_v4 = vpop.f32.mrf.mxu1 }
 0x10f   : > { %v6907_v53 = vpop.f32.mrf.mxu0  ;;  %1072 = vst.msk [vmem:[#allocation2 + $0x1d8] sm:$0xff] %vm1023_vm2, %v7893_v59  ;;  %v7910_v7 = vmax.f32 %v875_v1, 0.0  ;;  %v870_v9 = vadd.f32 %v7588_v3, %v869_v4 }
 0x110   : > { %1164 = vrot.lane.b32.xlu1 %v7670_v54, %s7380_s15  ;;  %1228 = vrot.lane.b32.xlu0 %v7672_v55, %s7380_s15  ;;  %1053 = vst.msk [vmem:[#allocation2 + $0x110] sm:$0xff] %vm1023_vm2, %v7874_v44  ;;  %v7886_v56 = vmax.f32 %v760_v45, 0.0  ;;  %v7889_v58 = vadd.f32 %v6907_v53, %v7588_v3  ;;  %v6940_v14 = vpop.f32.mrf.mxu1 }
 0x111   : > { %v769_v61 = vpop.f32.mrf.mxu0  ;;  %1075 = vst.msk [vmem:[#allocation2 + $0x1f0] sm:$0xff] %vm1023_vm2, %v7910_v7  ;;  %v7919_v10 = vmax.f32 %v870_v9, 0.0 }
 0x112   : > { %1052 = vst.msk [vmem:[#allocation2 + $0x108] sm:$0xff] %vm1023_vm2, %v7886_v56  ;;  %v969_v54 = vmax.f32 %v7889_v58, 0.0  ;;  %v770_v55 = vadd.f32 %v7588_v3, %v769_v61  ;;  %v879_v15 = vpop.f32.mrf.mxu1 }
 0x113   : > { %1074 = vst.msk [vmem:[#allocation2 + $0x1e8] sm:$0xff] %vm1023_vm2, %v7919_v10 }
 0x114   : > { %1491 = vrot.lane.b32.xlu1 %v7690_v63, %s7379_s14  ;;  %1427 = vrot.lane.b32.xlu0 %v7688_v62, %s7379_s14  ;;  %v7905_v35 = vmax.f32 %v770_v55, 0.0  ;;  %v6943_v22 = vpop.f32.mrf.mxu1 }
 0x116   : > { %1054 = vst.msk [vmem:[#allocation2 + $0x118] sm:$0xff] %vm1023_vm2, %v7905_v35  ;;  %v889_v23 = vpop.f32.mrf.mxu1 }
 0x118   : > { %1234 = vrot.lane.b32.xlu1 %v7690_v63, %s7380_s15  ;;  %1170 = vrot.lane.b32.xlu0 %v7688_v62, %s7380_s15  ;;  %v885_v63 = vadd.f32 %v6940_v14, %v7588_v3  ;;  %v880_v62 = vadd.f32 %v7588_v3, %v879_v15  ;;  %v6946_v32 = vpop.f32.mrf.mxu1  ;;  %v6390_v15 = vld [vmem:[%s9706_s3 + $0x28] sm:$0xf] }
 0x119   : > { %7156 = vmatprep.subr.msk.mxu1 %vm2885_vm3, %v6390_v15 }
 0x11a   : > { %v7928_v41 = vmax.f32 %v885_v63, 0.0  ;;  %v7937_v18 = vmax.f32 %v880_v62, 0.0  ;;  %v899_v37 = vpop.f32.mrf.mxu1 }
 0x11c   : > { %1425 = vrot.lane.b32.xlu1 %v7704_v5, %s7379_s14  ;;  %1489 = vrot.lane.b32.xlu0 %v7706_v6, %s7379_s14  ;;  %1077 = vst.msk [vmem:[#allocation2 + $0x200] sm:$0xff] %vm1023_vm2, %v7928_v41  ;;  %1076 = vst.msk [vmem:[#allocation2 + $0x1f8] sm:$0xff] %vm1023_vm2, %v7937_v18  ;;  %v6949_v39 = vpop.f32.mrf.mxu1 }
 0x11e   : > { %v909_v42 = vpop.f32.mrf.mxu1 }
 0x120   : > { %1168 = vrot.lane.b32.xlu1 %v7704_v5, %s7380_s15  ;;  %1232 = vrot.lane.b32.xlu0 %v7706_v6, %s7380_s15  ;;  %v895_v5 = vadd.f32 %v6943_v22, %v7588_v3  ;;  %v890_v6 = vadd.f32 %v7588_v3, %v889_v23  ;;  %v6952_v51 = vpop.f32.mrf.mxu1 }
 0x122   : > { %v7946_v27 = vmax.f32 %v895_v5, 0.0  ;;  %v7955_v30 = vmax.f32 %v890_v6, 0.0  ;;  %v919_v53 = vpop.f32.mrf.mxu1 }
 0x124   : > { %1495 = vrot.lane.b32.xlu1 %v7716_v12, %s7379_s14  ;;  %1431 = vrot.lane.b32.xlu0 %v7714_v11, %s7379_s14  ;;  %1079 = vst.msk [vmem:[#allocation2 + $0x210] sm:$0xff] %vm1023_vm2, %v7946_v27  ;;  %1078 = vst.msk [vmem:[#allocation2 + $0x208] sm:$0xff] %vm1023_vm2, %v7955_v30  ;;  %v6955_v0 = vpop.f32.mrf.mxu1 }
 0x126   : > { %v929_v1 = vpop.f32.mrf.mxu1 }
 0x127   : > { %v930_v4 = vadd.f32 %v7588_v3, %v929_v1 }
 0x128   : > { %1238 = vrot.lane.b32.xlu1 %v7716_v12, %s7380_s15  ;;  %1174 = vrot.lane.b32.xlu0 %v7714_v11, %s7380_s15  ;;  %v905_v12 = vadd.f32 %v6946_v32, %v7588_v3  ;;  %v900_v11 = vadd.f32 %v7588_v3, %v899_v37 }
 0x129   : > { %v8026_v9 = vmax.f32 %v930_v4, 0.0 }
 0x12a   : > { %v7964_v47 = vmax.f32 %v905_v12, 0.0  ;;  %v7973_v38 = vmax.f32 %v900_v11, 0.0 }
 0x12b   : > { %1086 = vst.msk [vmem:[#allocation2 + $0x248] sm:$0xff] %vm1023_vm2, %v8026_v9 }
 0x12c   : > { %1429 = vrot.lane.b32.xlu1 %v7728_v19, %s7379_s14  ;;  %1493 = vrot.lane.b32.xlu0 %v7730_v20, %s7379_s14  ;;  %1081 = vst.msk [vmem:[#allocation2 + $0x220] sm:$0xff] %vm1023_vm2, %v7964_v47  ;;  %1080 = vst.msk [vmem:[#allocation2 + $0x218] sm:$0xff] %vm1023_vm2, %v7973_v38 }
 0x130   : > { %1172 = vrot.lane.b32.xlu1 %v7728_v19, %s7380_s15  ;;  %1236 = vrot.lane.b32.xlu0 %v7730_v20, %s7380_s15  ;;  %v915_v19 = vadd.f32 %v6949_v39, %v7588_v3  ;;  %v910_v20 = vadd.f32 %v7588_v3, %v909_v42 }
 0x132   : > { %v7982_v29 = vmax.f32 %v915_v19, 0.0  ;;  %v7991_v45 = vmax.f32 %v910_v20, 0.0 }
 0x134   : > { %1499 = vrot.lane.b32.xlu1 %v7740_v26, %s7379_s14  ;;  %1435 = vrot.lane.b32.xlu0 %v7738_v25, %s7379_s14  ;;  %1083 = vst.msk [vmem:[#allocation2 + $0x230] sm:$0xff] %vm1023_vm2, %v7982_v29  ;;  %1082 = vst.msk [vmem:[#allocation2 + $0x228] sm:$0xff] %vm1023_vm2, %v7991_v45 }
 0x138   : > { %1242 = vrot.lane.b32.xlu1 %v7740_v26, %s7380_s15  ;;  %1178 = vrot.lane.b32.xlu0 %v7738_v25, %s7380_s15  ;;  %v925_v26 = vadd.f32 %v6952_v51, %v7588_v3  ;;  %v920_v25 = vadd.f32 %v7588_v3, %v919_v53 }
 0x13a   : > { %v8000_v61 = vmax.f32 %v925_v26, 0.0  ;;  %v8009_v55 = vmax.f32 %v920_v25, 0.0 }
 0x13c   : > { %1433 = vrot.lane.b32.xlu1 %v7752_v33, %s7379_s14  ;;  %1497 = vrot.lane.b32.xlu0 %v7754_v36, %s7379_s14  ;;  %1085 = vst.msk [vmem:[#allocation2 + $0x240] sm:$0xff] %vm1023_vm2, %v8000_v61  ;;  %1084 = vst.msk [vmem:[#allocation2 + $0x238] sm:$0xff] %vm1023_vm2, %v8009_v55 }
 0x140   : > { %1176 = vrot.lane.b32.xlu1 %v7752_v33, %s7380_s15  ;;  %1240 = vrot.lane.b32.xlu0 %v7754_v36, %s7380_s15  ;;  %v8018_v33 = vadd.f32 %v6955_v0, %v7588_v3 }
 0x142   : > { %v1001_v36 = vmax.f32 %v8018_v33, 0.0 }
 0x144   : > { %1503 = vrot.lane.b32.xlu1 %v7764_v43, %s7379_s14  ;;  %1439 = vrot.lane.b32.xlu0 %v7762_v28, %s7379_s14 }
 0x148   : > { %1437 = vrot.lane.b32.xlu1 %v7776_v48, %s7379_s14  ;;  %1182 = vrot.lane.b32.xlu0 %v7762_v28, %s7380_s15 }
 0x14a   : > { %v1412_v14 = vpop.permute.xlu1 %1411  ;;  %v1155_v63 = vpop.permute.xlu0 %1154 }
 0x14b   : > { %1603 = vst.msk [vmem:[#allocation2 + $0x10] sm:$0xff] %vm1601_vm4, %v1412_v14 }
 0x14c   : > { %1346 = vst.msk [vmem:[#allocation2 + $0x20] sm:$0xff] %vm1344_vm5, %v1155_v63  ;;  %1180 = vrot.lane.b32.xlu1 %v7776_v48, %s7380_s15  ;;  %1501 = vrot.lane.b32.xlu0 %v7778_v49, %s7379_s14 }
 0x14e   : > { %v1476_v3 = vpop.permute.xlu1 %1475  ;;  %v1219_v28 = vpop.permute.xlu0 %1218 }
 0x14f   : > { %1635 = vst.msk [vmem:[#allocation2 + $0x140] sm:$0xff] %vm1601_vm4, %v1476_v3 }
 0x150   : > { %1378 = vst.msk [vmem:[#allocation2 + $0x150] sm:$0xff] %vm1344_vm5, %v1219_v28  ;;  %1441 = vrot.lane.b32.xlu1 %v7796_v57, %s7379_s14  ;;  %1244 = vrot.lane.b32.xlu0 %v7778_v49, %s7380_s15 }
 0x152   : > { %v1217_v48 = vpop.permute.xlu1 %1216  ;;  %v1153_v62 = vpop.permute.xlu0 %1152 }
 0x153   : > { %1377 = vst.msk [vmem:[#allocation2 + $0x148] sm:$0xff] %vm1344_vm5, %v1217_v48  ;;  %1345 = vst.msk [vmem:[#allocation2 + $0x18] sm:$0xff] %vm1344_vm5, %v1153_v62 }
 0x154   : > { %1184 = vrot.lane.b32.xlu1 %v7796_v57, %s7380_s15  ;;  %1443 = vrot.lane.b32.xlu0 %v7785_v52, %s7379_s14 }
 0x156   : > { %v1480_v22 = vpop.permute.xlu1 %1479  ;;  %v1416_v5 = vpop.permute.xlu0 %1415 }
 0x157   : > { %1637 = vst.msk [vmem:[#allocation2 + $0x150] sm:$0xff] %vm1601_vm4, %v1480_v22  ;;  %1605 = vst.msk [vmem:[#allocation2 + $0x20] sm:$0xff] %vm1601_vm4, %v1416_v5  ;;  %v6389_v5 = vld [vmem:[%s9706_s3 + $0x20] sm:$0xff] }
 0x158   : > { %1445 = vrot.lane.b32.xlu1 %v7810_v34, %s7379_s14  ;;  %1186 = vrot.lane.b32.xlu0 %v7785_v52, %s7380_s15 }
 0x15a   : > { %v1223_v49 = vpop.permute.xlu1 %1222  ;;  %v1159_v23 = vpop.permute.xlu0 %1158 }
 0x15b   : > { %1380 = vst.msk [vmem:[#allocation2 + $0x160] sm:$0xff] %vm1344_vm5, %v1223_v49  ;;  %1348 = vst.msk [vmem:[#allocation2 + $0x30] sm:$0xff] %vm1344_vm5, %v1159_v23 }
 0x15c   : > { %1188 = vrot.lane.b32.xlu1 %v7810_v34, %s7380_s15  ;;  %1447 = vrot.lane.b32.xlu0 %v7801_v60, %s7379_s14 }
 0x15e   : > { %v1414_v57 = vpop.permute.xlu1 %1413  ;;  %v1478_v6 = vpop.permute.xlu0 %1477 }
 0x15f   : > { %1604 = vst.msk [vmem:[#allocation2 + $0x18] sm:$0xff] %vm1601_vm4, %v1414_v57  ;;  %1636 = vst.msk [vmem:[#allocation2 + $0x148] sm:$0xff] %vm1601_vm4, %v1478_v6 }
 0x160   : > { %1449 = vrot.lane.b32.xlu1 %v7826_v8, %s7379_s14  ;;  %1190 = vrot.lane.b32.xlu0 %v7801_v60, %s7380_s15  ;;  %v3531_v60 = vld [vmem:[#allocation2 + $0x20] sm:$0xff] }
 0x162   : > { %v1157_v52 = vpop.permute.xlu1 %1156  ;;  %v1221_v32 = vpop.permute.xlu0 %1220 }
 0x163   : > { %1347 = vst.msk [vmem:[#allocation2 + $0x28] sm:$0xff] %vm1344_vm5, %v1157_v52  ;;  %1379 = vst.msk [vmem:[#allocation2 + $0x158] sm:$0xff] %vm1344_vm5, %v1221_v32 }
 0x164   : > { %1192 = vrot.lane.b32.xlu1 %v7826_v8, %s7380_s15  ;;  %1451 = vrot.lane.b32.xlu0 %v7815_v2, %s7379_s14 }
 0x166   : > { %v1484_v34 = vpop.permute.xlu1 %1483  ;;  %v1420_v12 = vpop.permute.xlu0 %1419  ;;  %v2627_v37 = vld [vmem:[#allocation2 + $0x17] sm:$0xff]  ;;  %v2628_v39 = vld [vmem:[#allocation2 + $0x1f] sm:$0xff] }
 0x167   : > { %v3530_v11 = vld [vmem:[#allocation2 + $0x18] sm:$0xff]  ;;  %1639 = vst.msk [vmem:[#allocation2 + $0x160] sm:$0xff] %vm1601_vm4, %v1484_v34  ;;  %1607 = vst.msk [vmem:[#allocation2 + $0x30] sm:$0xff] %vm1601_vm4, %v1420_v12  ;;  %6960 = vmatprep.mubr.msk.f32.mxu1 %vm1002_vm1, %v2627_v37 }
 0x168   : > { %7060 = vmatprep.mubr.msk.f32.mxu0 %vm1002_vm1, %v3530_v11  ;;  %1453 = vrot.lane.b32.xlu1 %v7840_v40, %s7379_s14 }
 0x169   : > { %1194 = vrot.lane.b32.xlu0 %v7815_v2, %s7380_s15  ;;  %6961 = vmatmul.mubr.msk.f32.vlgmr.msra.gmra.mxu1 %vm1002_vm1, %v2628_v39 }
 0x16a   : > { %7061 = vmatmul.mubr.msk.f32.vlgmr.msra.gmra.mxu0 %vm1002_vm1, %v3531_v60  ;;  %v1227_v8 = vpop.permute.xlu1 %1226  ;;  %v1163_v19 = vpop.permute.xlu0 %1162  ;;  %7157 = vmatpush3.msk.msra.mxu1 %vm2885_vm3, %v6390_v15 }
 0x16b   : > { %1382 = vst.msk [vmem:[#allocation2 + $0x170] sm:$0xff] %vm1344_vm5, %v1227_v8  ;;  %1350 = vst.msk [vmem:[#allocation2 + $0x40] sm:$0xff] %vm1344_vm5, %v1163_v19  ;;  %7158 = vmatprep.subr.mxu1 %v6389_v5 }
 0x16c   : > { %1196 = vrot.lane.b32.xlu1 %v7840_v40, %s7380_s15  ;;  %7159 = vmatpush3.msra.mxu1 %v6389_v5 }
 0x16d   : > { %1455 = vrot.lane.b32.xlu0 %v7831_v13, %s7379_s14 }
 0x16e   : > { %v1418_v2 = vpop.permute.xlu1 %1417  ;;  %v1482_v42 = vpop.permute.xlu0 %1481 }
 0x16f   : > { %1606 = vst.msk [vmem:[#allocation2 + $0x28] sm:$0xff] %vm1601_vm4, %v1418_v2  ;;  %1638 = vst.msk [vmem:[#allocation2 + $0x158] sm:$0xff] %vm1601_vm4, %v1482_v42 }
 0x170   : > { %1457 = vrot.lane.b32.xlu1 %v7854_v24, %s7379_s14 }
 0x171   : > { %1198 = vrot.lane.b32.xlu0 %v7831_v13, %s7380_s15  ;;  %v3533_v13 = vld [vmem:[#allocation2 + $0x30] sm:$0xff] }
 0x172   : > { %v1161_v20 = vpop.permute.xlu1 %1160  ;;  %v1225_v51 = vpop.permute.xlu0 %1224 }
 0x173   : > { %1349 = vst.msk [vmem:[#allocation2 + $0x38] sm:$0xff] %vm1344_vm5, %v1161_v20  ;;  %1381 = vst.msk [vmem:[#allocation2 + $0x168] sm:$0xff] %vm1344_vm5, %v1225_v51 }
 0x174   : > { %1200 = vrot.lane.b32.xlu1 %v7854_v24, %s7380_s15 }
 0x175   : > { %1459 = vrot.lane.b32.xlu0 %v7845_v21, %s7379_s14 }
 0x176   : > { %v1488_v40 = vpop.permute.xlu1 %1487  ;;  %v1424_v26 = vpop.permute.xlu0 %1423  ;;  %v2629_v53 = vld [vmem:[#allocation2 + $0x27] sm:$0xff]  ;;  %v2630_v0 = vld [vmem:[#allocation2 + $0x2f] sm:$0xff] }
 0x177   : > { %v3532_v25 = vld [vmem:[#allocation2 + $0x28] sm:$0xff]  ;;  %1641 = vst.msk [vmem:[#allocation2 + $0x170] sm:$0xff] %vm1601_vm4, %v1488_v40  ;;  %1609 = vst.msk [vmem:[#allocation2 + $0x40] sm:$0xff] %vm1601_vm4, %v1424_v26  ;;  %6963 = vmatprep.mubr.msk.f32.mxu1 %vm1002_vm1, %v2629_v53 }
 0x178   : > { %7063 = vmatprep.mubr.msk.f32.mxu0 %vm1002_vm1, %v3532_v25  ;;  %1461 = vrot.lane.b32.xlu1 %v7868_v46, %s7379_s14 }
 0x179   : > { %1202 = vrot.lane.b32.xlu0 %v7845_v21, %s7380_s15  ;;  %6964 = vmatmul.mubr.msk.f32.gmra.mxu1 %vm1002_vm1, %v2630_v0 }
 0x17a   : > { %7064 = vmatmul.mubr.msk.f32.gmra.mxu0 %vm1002_vm1, %v3533_v13  ;;  %v1231_v24 = vpop.permute.xlu1 %1230  ;;  %v1167_v1 = vpop.permute.xlu0 %1166 }
 0x17b   : > { %1384 = vst.msk [vmem:[#allocation2 + $0x180] sm:$0xff] %vm1344_vm5, %v1231_v24  ;;  %1352 = vst.msk [vmem:[#allocation2 + $0x50] sm:$0xff] %vm1344_vm5, %v1167_v1 }
 0x17c   : > { %1204 = vrot.lane.b32.xlu1 %v7868_v46, %s7380_s15 }
 0x17d   : > { %1463 = vrot.lane.b32.xlu0 %v7859_v31, %s7379_s14 }
 0x17e   : > { %v1422_v4 = vpop.permute.xlu1 %1421  ;;  %v1486_v14 = vpop.permute.xlu0 %1485 }
 0x17f   : > { %1608 = vst.msk [vmem:[#allocation2 + $0x38] sm:$0xff] %vm1601_vm4, %v1422_v4  ;;  %1640 = vst.msk [vmem:[#allocation2 + $0x168] sm:$0xff] %vm1601_vm4, %v1486_v14 }
 0x180   : > { %1465 = vrot.lane.b32.xlu1 %v7886_v56, %s7379_s14 }
 0x181   : > { %1206 = vrot.lane.b32.xlu0 %v7859_v31, %s7380_s15  ;;  %v3535_v31 = vld [vmem:[#allocation2 + $0x40] sm:$0xff] }
 0x182   : > { %v1165_v21 = vpop.permute.xlu1 %1164  ;;  %v1229_v63 = vpop.permute.xlu0 %1228 }
 0x183   : > { %1351 = vst.msk [vmem:[#allocation2 + $0x48] sm:$0xff] %vm1344_vm5, %v1165_v21  ;;  %1383 = vst.msk [vmem:[#allocation2 + $0x178] sm:$0xff] %vm1344_vm5, %v1229_v63 }
 0x184   : > { %1208 = vrot.lane.b32.xlu1 %v7886_v56, %s7380_s15 }
 0x185   : > { %1467 = vrot.lane.b32.xlu0 %v7874_v44, %s7379_s14 }
 0x186   : > { %v1492_v46 = vpop.permute.xlu1 %1491  ;;  %v1428_v3 = vpop.permute.xlu0 %1427  ;;  %v2631_v28 = vld [vmem:[#allocation2 + $0x37] sm:$0xff]  ;;  %v2632_v48 = vld [vmem:[#allocation2 + $0x3f] sm:$0xff] }
 0x187   : > { %v3534_v15 = vld [vmem:[#allocation2 + $0x38] sm:$0xff]  ;;  %1643 = vst.msk [vmem:[#allocation2 + $0x180] sm:$0xff] %vm1601_vm4, %v1492_v46  ;;  %1611 = vst.msk [vmem:[#allocation2 + $0x50] sm:$0xff] %vm1601_vm4, %v1428_v3  ;;  %6966 = vmatprep.mubr.msk.f32.mxu1 %vm1002_vm1, %v2631_v28 }
 0x188   : > { %7066 = vmatprep.mubr.msk.f32.mxu0 %vm1002_vm1, %v3534_v15  ;;  %1469 = vrot.lane.b32.xlu1 %v7905_v35, %s7379_s14 }
 0x189   : > { %1210 = vrot.lane.b32.xlu0 %v7874_v44, %s7380_s15  ;;  %6967 = vmatmul.mubr.msk.f32.gmra.mxu1 %vm1002_vm1, %v2632_v48 }
 0x18a   : > { %7067 = vmatmul.mubr.msk.f32.gmra.mxu0 %vm1002_vm1, %v3535_v31  ;;  %v1235_v56 = vpop.permute.xlu1 %1234  ;;  %v1171_v62 = vpop.permute.xlu0 %1170 }
 0x18b   : > { %1386 = vst.msk [vmem:[#allocation2 + $0x190] sm:$0xff] %vm1344_vm5, %v1235_v56  ;;  %1354 = vst.msk [vmem:[#allocation2 + $0x60] sm:$0xff] %vm1344_vm5, %v1171_v62 }
 0x18c   : > { %1212 = vrot.lane.b32.xlu1 %v7905_v35, %s7380_s15 }
 0x18d   : > { %1471 = vrot.lane.b32.xlu0 %v969_v54, %s7379_s14 }
 0x18e   : > { %v1426_v22 = vpop.permute.xlu1 %1425  ;;  %v1490_v44 = vpop.permute.xlu0 %1489 }
 0x18f   : > { %1610 = vst.msk [vmem:[#allocation2 + $0x48] sm:$0xff] %vm1601_vm4, %v1426_v22  ;;  %1642 = vst.msk [vmem:[#allocation2 + $0x178] sm:$0xff] %vm1601_vm4, %v1490_v44 }
 0x190   : > { %1246 = vrot.lane.b32.xlu1 %v7764_v43, %s7380_s15 }
 0x191   : > { %1214 = vrot.lane.b32.xlu0 %v969_v54, %s7380_s15  ;;  %v3537_v54 = vld [vmem:[#allocation2 + $0x50] sm:$0xff] }
 0x192   : > { %v1169_v35 = vpop.permute.xlu1 %1168  ;;  %v1233_v49 = vpop.permute.xlu0 %1232 }
 0x193   : > { %1353 = vst.msk [vmem:[#allocation2 + $0x58] sm:$0xff] %vm1344_vm5, %v1169_v35  ;;  %1385 = vst.msk [vmem:[#allocation2 + $0x188] sm:$0xff] %vm1344_vm5, %v1233_v49 }
 0x194   : > { %1507 = vrot.lane.b32.xlu1 %v7877_v50, %s7379_s14 }
 0x195   : > { %1505 = vrot.lane.b32.xlu0 %v7893_v59, %s7379_s14 }
 0x196   : > { %v1496_v23 = vpop.permute.xlu1 %1495  ;;  %v1432_v43 = vpop.permute.xlu0 %1431  ;;  %v2633_v57 = vld [vmem:[#allocation2 + $0x47] sm:$0xff]  ;;  %v2634_v58 = vld [vmem:[#allocation2 + $0x4f] sm:$0xff] }
 0x197   : > { %v3536_v6 = vld [vmem:[#allocation2 + $0x48] sm:$0xff]  ;;  %1645 = vst.msk [vmem:[#allocation2 + $0x190] sm:$0xff] %vm1601_vm4, %v1496_v23  ;;  %1613 = vst.msk [vmem:[#allocation2 + $0x60] sm:$0xff] %vm1601_vm4, %v1432_v43  ;;  %6969 = vmatprep.mubr.msk.f32.mxu1 %vm1002_vm1, %v2633_v57 }
 0x198   : > { %7069 = vmatprep.mubr.msk.f32.mxu0 %vm1002_vm1, %v3536_v6  ;;  %1250 = vrot.lane.b32.xlu1 %v7877_v50, %s7380_s15 }
 0x199   : > { %1248 = vrot.lane.b32.xlu0 %v7893_v59, %s7380_s15  ;;  %6970 = vmatmul.mubr.msk.f32.gmra.mxu1 %vm1002_vm1, %v2634_v58 }
 0x19a   : > { %7070 = vmatmul.mubr.msk.f32.gmra.mxu0 %vm1002_vm1, %v3537_v54  ;;  %v1239_v52 = vpop.permute.xlu1 %1238  ;;  %v1175_v32 = vpop.permute.xlu0 %1174 }
 0x19b   : > { %1388 = vst.msk [vmem:[#allocation2 + $0x1a0] sm:$0xff] %vm1344_vm5, %v1239_v52  ;;  %1356 = vst.msk [vmem:[#allocation2 + $0x70] sm:$0xff] %vm1344_vm5, %v1175_v32 }
 0x19c   : > { %1511 = vrot.lane.b32.xlu1 %v7910_v7, %s7379_s14 }
 0x19d   : > { %1509 = vrot.lane.b32.xlu0 %v7919_v10, %s7379_s14 }
 0x19e   : > { %v1430_v50 = vpop.permute.xlu1 %1429  ;;  %v1494_v34 = vpop.permute.xlu0 %1493 }
 0x19f   : > { %1612 = vst.msk [vmem:[#allocation2 + $0x58] sm:$0xff] %vm1601_vm4, %v1430_v50  ;;  %1644 = vst.msk [vmem:[#allocation2 + $0x188] sm:$0xff] %vm1601_vm4, %v1494_v34 }
 0x1a0   : > { %1254 = vrot.lane.b32.xlu1 %v7910_v7, %s7380_s15 }
 0x1a1   : > { %1252 = vrot.lane.b32.xlu0 %v7919_v10, %s7380_s15  ;;  %v3539_v10 = vld [vmem:[#allocation2 + $0x60] sm:$0xff] }
 0x1a2   : > { %v1173_v59 = vpop.permute.xlu1 %1172  ;;  %v1237_v12 = vpop.permute.xlu0 %1236 }
 0x1a3   : > { %1355 = vst.msk [vmem:[#allocation2 + $0x68] sm:$0xff] %vm1344_vm5, %v1173_v59  ;;  %1387 = vst.msk [vmem:[#allocation2 + $0x198] sm:$0xff] %vm1344_vm5, %v1237_v12 }
 0x1a4   : > { %1515 = vrot.lane.b32.xlu1 %v7928_v41, %s7379_s14 }
 0x1a5   : > { %1513 = vrot.lane.b32.xlu0 %v7937_v18, %s7379_s14 }
 0x1a6   : > { %v1500_v37 = vpop.permute.xlu1 %1499  ;;  %v1436_v11 = vpop.permute.xlu0 %1435  ;;  %v2635_v39 = vld [vmem:[#allocation2 + $0x57] sm:$0xff]  ;;  %v2636_v7 = vld [vmem:[#allocation2 + $0x5f] sm:$0xff] }
 0x1a7   : > { %v3538_v60 = vld [vmem:[#allocation2 + $0x58] sm:$0xff]  ;;  %1647 = vst.msk [vmem:[#allocation2 + $0x1a0] sm:$0xff] %vm1601_vm4, %v1500_v37  ;;  %1615 = vst.msk [vmem:[#allocation2 + $0x70] sm:$0xff] %vm1601_vm4, %v1436_v11  ;;  %6972 = vmatprep.mubr.msk.f32.mxu1 %vm1002_vm1, %v2635_v39 }
 0x1a8   : > { %7072 = vmatprep.mubr.msk.f32.mxu0 %vm1002_vm1, %v3538_v60  ;;  %1258 = vrot.lane.b32.xlu1 %v7928_v41, %s7380_s15 }
 0x1a9   : > { %1256 = vrot.lane.b32.xlu0 %v7937_v18, %s7380_s15  ;;  %6973 = vmatmul.mubr.msk.f32.gmra.mxu1 %vm1002_vm1, %v2636_v7 }
 0x1aa   : > { %7073 = vmatmul.mubr.msk.f32.gmra.mxu0 %vm1002_vm1, %v3539_v10  ;;  %v1243_v8 = vpop.permute.xlu1 %1242  ;;  %v1179_v19 = vpop.permute.xlu0 %1178 }
 0x1ab   : > { %1390 = vst.msk [vmem:[#allocation2 + $0x1b0] sm:$0xff] %vm1344_vm5, %v1243_v8  ;;  %1358 = vst.msk [vmem:[#allocation2 + $0x80] sm:$0xff] %vm1344_vm5, %v1179_v19 }
 0x1ac   : > { %1519 = vrot.lane.b32.xlu1 %v7946_v27, %s7379_s14 }
 0x1ad   : > { %1517 = vrot.lane.b32.xlu0 %v7955_v30, %s7379_s14 }
 0x1ae   : > { %v1434_v41 = vpop.permute.xlu1 %1433  ;;  %v1498_v2 = vpop.permute.xlu0 %1497 }
 0x1af   : > { %1614 = vst.msk [vmem:[#allocation2 + $0x68] sm:$0xff] %vm1601_vm4, %v1434_v41  ;;  %1646 = vst.msk [vmem:[#allocation2 + $0x198] sm:$0xff] %vm1601_vm4, %v1498_v2 }
 0x1b0   : > { %1262 = vrot.lane.b32.xlu1 %v7946_v27, %s7380_s15 }
 0x1b1   : > { %1260 = vrot.lane.b32.xlu0 %v7955_v30, %s7380_s15  ;;  %v3541_v30 = vld [vmem:[#allocation2 + $0x70] sm:$0xff] }
 0x1b2   : > { %v1177_v18 = vpop.permute.xlu1 %1176  ;;  %v1241_v42 = vpop.permute.xlu0 %1240 }
 0x1b3   : > { %1357 = vst.msk [vmem:[#allocation2 + $0x78] sm:$0xff] %vm1344_vm5, %v1177_v18  ;;  %1389 = vst.msk [vmem:[#allocation2 + $0x1a8] sm:$0xff] %vm1344_vm5, %v1241_v42 }
 0x1b4   : > { %1523 = vrot.lane.b32.xlu1 %v7964_v47, %s7379_s14 }
 0x1b5   : > { %1521 = vrot.lane.b32.xlu0 %v7973_v38, %s7379_s14 }
 0x1b6   : > { %v1504_v20 = vpop.permute.xlu1 %1503  ;;  %v1440_v51 = vpop.permute.xlu0 %1439  ;;  %v2637_v40 = vld [vmem:[#allocation2 + $0x67] sm:$0xff]  ;;  %v2638_v27 = vld [vmem:[#allocation2 + $0x6f] sm:$0xff] }
 0x1b7   : > { %v3540_v26 = vld [vmem:[#allocation2 + $0x68] sm:$0xff]  ;;  %1649 = vst.msk [vmem:[#allocation2 + $0x1b0] sm:$0xff] %vm1601_vm4, %v1504_v20  ;;  %1617 = vst.msk [vmem:[#allocation2 + $0x80] sm:$0xff] %vm1601_vm4, %v1440_v51  ;;  %6975 = vmatprep.mubr.msk.f32.mxu1 %vm1002_vm1, %v2637_v40 }
 0x1b8   : > { %7075 = vmatprep.mubr.msk.f32.mxu0 %vm1002_vm1, %v3540_v26  ;;  %1266 = vrot.lane.b32.xlu1 %v7964_v47, %s7380_s15 }
 0x1b9   : > { %1264 = vrot.lane.b32.xlu0 %v7973_v38, %s7380_s15  ;;  %6976 = vmatmul.mubr.msk.f32.gmra.mxu1 %vm1002_vm1, %v2638_v27 }
 0x1ba   : > { %7076 = vmatmul.mubr.msk.f32.gmra.mxu0 %vm1002_vm1, %v3541_v30  ;;  %v1438_v53 = vpop.permute.xlu1 %1437  ;;  %v1183_v25 = vpop.permute.xlu0 %1182 }
 0x1bb   : > { %1616 = vst.msk [vmem:[#allocation2 + $0x78] sm:$0xff] %vm1601_vm4, %v1438_v53 }
 0x1bc   : > { %1360 = vst.msk [vmem:[#allocation2 + $0x90] sm:$0xff] %vm1344_vm5, %v1183_v25  ;;  %1527 = vrot.lane.b32.xlu1 %v7982_v29, %s7379_s14 }
 0x1bd   : > { %1525 = vrot.lane.b32.xlu0 %v7991_v45, %s7379_s14 }
 0x1be   : > { %v1181_v47 = vpop.permute.xlu1 %1180  ;;  %v1502_v0 = vpop.permute.xlu0 %1501 }
 0x1bf   : > { %1359 = vst.msk [vmem:[#allocation2 + $0x88] sm:$0xff] %vm1344_vm5, %v1181_v47 }
 0x1c0   : > { %1648 = vst.msk [vmem:[#allocation2 + $0x1a8] sm:$0xff] %vm1601_vm4, %v1502_v0  ;;  %1270 = vrot.lane.b32.xlu1 %v7982_v29, %s7380_s15  ;;  %v3543_v29 = vld [vmem:[#allocation2 + $0x80] sm:$0xff] }
 0x1c1   : > { %1268 = vrot.lane.b32.xlu0 %v7991_v45, %s7380_s15 }
 0x1c2   : > { %v1442_v38 = vpop.permute.xlu1 %1441  ;;  %v1245_v13 = vpop.permute.xlu0 %1244  ;;  %v2639_v24 = vld [vmem:[#allocation2 + $0x77] sm:$0xff]  ;;  %v2640_v4 = vld [vmem:[#allocation2 + $0x7f] sm:$0xff] }
 0x1c3   : > { %v3542_v1 = vld [vmem:[#allocation2 + $0x78] sm:$0xff]  ;;  %1618 = vst.msk [vmem:[#allocation2 + $0x88] sm:$0xff] %vm1601_vm4, %v1442_v38  ;;  %6978 = vmatprep.mubr.msk.f32.mxu1 %vm1002_vm1, %v2639_v24 }
 0x1c4   : > { %1391 = vst.msk [vmem:[#allocation2 + $0x1b8] sm:$0xff] %vm1344_vm5, %v1245_v13  ;;  %7078 = vmatprep.mubr.msk.f32.mxu0 %vm1002_vm1, %v3542_v1  ;;  %1531 = vrot.lane.b32.xlu1 %v8000_v61, %s7379_s14 }
 0x1c5   : > { %1529 = vrot.lane.b32.xlu0 %v8009_v55, %s7379_s14  ;;  %6979 = vmatmul.mubr.msk.f32.gmra.mxu1 %vm1002_vm1, %v2640_v4 }
 0x1c6   : > { %7079 = vmatmul.mubr.msk.f32.gmra.mxu0 %vm1002_vm1, %v3543_v29  ;;  %v1185_v45 = vpop.permute.xlu1 %1184  ;;  %v1444_v14 = vpop.permute.xlu0 %1443 }
 0x1c7   : > { %1361 = vst.msk [vmem:[#allocation2 + $0x98] sm:$0xff] %vm1344_vm5, %v1185_v45 }
 0x1c8   : > { %1619 = vst.msk [vmem:[#allocation2 + $0x90] sm:$0xff] %vm1601_vm4, %v1444_v14  ;;  %1274 = vrot.lane.b32.xlu1 %v8000_v61, %s7380_s15 }
 0x1c9   : > { %1272 = vrot.lane.b32.xlu0 %v8009_v55, %s7380_s15 }
 0x1ca   : > { %v1446_v21 = vpop.permute.xlu1 %1445  ;;  %v1187_v63 = vpop.permute.xlu0 %1186  ;;  %v2641_v46 = vld [vmem:[#allocation2 + $0x87] sm:$0xff] }
 0x1cb   : > { %v3544_v3 = vld [vmem:[#allocation2 + $0x88] sm:$0xff]  ;;  %1620 = vst.msk [vmem:[#allocation2 + $0x98] sm:$0xff] %vm1601_vm4, %v1446_v21  ;;  %6981 = vmatprep.mubr.msk.f32.mxu1 %vm1002_vm1, %v2641_v46 }
 0x1cc   : > { %1362 = vst.msk [vmem:[#allocation2 + $0xa0] sm:$0xff] %vm1344_vm5, %v1187_v63  ;;  %7081 = vmatprep.mubr.msk.f32.mxu0 %vm1002_vm1, %v3544_v3  ;;  %1535 = vrot.lane.b32.xlu1 %v1001_v36, %s7379_s14 }
 0x1cd   : > { %1533 = vrot.lane.b32.xlu0 %v8026_v9, %s7379_s14 }
 0x1ce   : > { %v1189_v61 = vpop.permute.xlu1 %1188  ;;  %v1448_v55 = vpop.permute.xlu0 %1447 }
 0x1cf   : > { %v2642_v28 = vld [vmem:[#allocation2 + $0x8f] sm:$0xff]  ;;  %1363 = vst.msk [vmem:[#allocation2 + $0xa8] sm:$0xff] %vm1344_vm5, %v1189_v61 }
 0x1d0   : > { %v3545_v15 = vld [vmem:[#allocation2 + $0x90] sm:$0xff]  ;;  %1621 = vst.msk [vmem:[#allocation2 + $0xa0] sm:$0xff] %vm1601_vm4, %v1448_v55  ;;  %6982 = vmatmul.mubr.msk.f32.gmra.mxu1 %vm1002_vm1, %v2642_v28  ;;  %1278 = vrot.lane.b32.xlu1 %v1001_v36, %s7380_s15  ;;  %v2659_v28 = vld [vmem:[#allocation2 + $0x147] sm:$0xff] }
 0x1d1   : > { %7082 = vmatmul.mubr.msk.f32.gmra.mxu0 %vm1002_vm1, %v3545_v15  ;;  %1276 = vrot.lane.b32.xlu0 %v8026_v9, %s7380_s15  ;;  %v3562_v15 = vld [vmem:[#allocation2 + $0x148] sm:$0xff] }
 0x1d2   : > { %v1450_v48 = vpop.permute.xlu1 %1449  ;;  %v1191_v31 = vpop.permute.xlu0 %1190  ;;  %v2643_v56 = vld [vmem:[#allocation2 + $0x97] sm:$0xff] }
 0x1d3   : > { %v3546_v62 = vld [vmem:[#allocation2 + $0x98] sm:$0xff]  ;;  %1622 = vst.msk [vmem:[#allocation2 + $0xa8] sm:$0xff] %vm1601_vm4, %v1450_v48  ;;  %6984 = vmatprep.mubr.msk.f32.mxu1 %vm1002_vm1, %v2643_v56  ;;  %v2660_v56 = vld [vmem:[#allocation2 + $0x14f] sm:$0xff] }
 0x1d4   : > { %1364 = vst.msk [vmem:[#allocation2 + $0xb0] sm:$0xff] %vm1344_vm5, %v1191_v31  ;;  %7084 = vmatprep.mubr.msk.f32.mxu0 %vm1002_vm1, %v3546_v62  ;;  %1473 = vrot.lane.b32.xlu1 %v7596_v17, %s7379_s14  ;;  %v3563_v62 = vld [vmem:[#allocation2 + $0x150] sm:$0xff] }
 0x1d5   : > { %1409 = vrot.lane.b32.xlu0 %v7594_v16, %s7379_s14 }
 0x1d6   : > { %v1193_v33 = vpop.permute.xlu1 %1192  ;;  %v1452_v36 = vpop.permute.xlu0 %1451 }
 0x1d7   : > { %v2644_v9 = vld [vmem:[#allocation2 + $0x9f] sm:$0xff]  ;;  %1365 = vst.msk [vmem:[#allocation2 + $0xb8] sm:$0xff] %vm1344_vm5, %v1193_v33  ;;  %v2661_v33 = vld [vmem:[#allocation2 + $0x157] sm:$0xff] }
 0x1d8   : > { %v3547_v22 = vld [vmem:[#allocation2 + $0xa0] sm:$0xff]  ;;  %1623 = vst.msk [vmem:[#allocation2 + $0xb0] sm:$0xff] %vm1601_vm4, %v1452_v36  ;;  %6985 = vmatmul.mubr.msk.f32.gmra.mxu1 %vm1002_vm1, %v2644_v9  ;;  %v3564_v36 = vld [vmem:[#allocation2 + $0x158] sm:$0xff] }
 0x1d9   : > { %7085 = vmatmul.mubr.msk.f32.gmra.mxu0 %vm1002_vm1, %v3547_v22 }
 0x1da   : > { %v1454_v44 = vpop.permute.xlu1 %1453  ;;  %v2645_v35 = vld [vmem:[#allocation2 + $0xa7] sm:$0xff] }
 0x1db   : > { %v1195_v5 = vpop.permute.xlu0 %1194  ;;  %v3548_v49 = vld [vmem:[#allocation2 + $0xa8] sm:$0xff]  ;;  %1624 = vst.msk [vmem:[#allocation2 + $0xb8] sm:$0xff] %vm1601_vm4, %v1454_v44  ;;  %6987 = vmatprep.mubr.msk.f32.mxu1 %vm1002_vm1, %v2645_v35  ;;  %v2662_v44 = vld [vmem:[#allocation2 + $0x15f] sm:$0xff] }
 0x1dc   : > { %1366 = vst.msk [vmem:[#allocation2 + $0xc0] sm:$0xff] %vm1344_vm5, %v1195_v5  ;;  %7087 = vmatprep.mubr.msk.f32.mxu0 %vm1002_vm1, %v3548_v49  ;;  %v3565_v5 = vld [vmem:[#allocation2 + $0x160] sm:$0xff]  ;;  %v3566_v49 = vld [vmem:[#allocation2 + $0x168] sm:$0xff] }
 0x1dd   : > { %v2663_v35 = vld [vmem:[#allocation2 + $0x167] sm:$0xff] }
 0x1de   : > { %v1197_v16 = vpop.permute.xlu1 %1196 }
 0x1df   : > { %v1456_v17 = vpop.permute.xlu0 %1455  ;;  %v2646_v23 = vld [vmem:[#allocation2 + $0xaf] sm:$0xff]  ;;  %1367 = vst.msk [vmem:[#allocation2 + $0xc8] sm:$0xff] %vm1344_vm5, %v1197_v16 }
 0x1e0   : > { %v3549_v43 = vld [vmem:[#allocation2 + $0xb0] sm:$0xff]  ;;  %1625 = vst.msk [vmem:[#allocation2 + $0xc0] sm:$0xff] %vm1601_vm4, %v1456_v17  ;;  %6988 = vmatmul.mubr.msk.f32.gmra.mxu1 %vm1002_vm1, %v2646_v23 }
 0x1e1   : > { %7088 = vmatmul.mubr.msk.f32.gmra.mxu0 %vm1002_vm1, %v3549_v43  ;;  %v2664_v23 = vld [vmem:[#allocation2 + $0x16f] sm:$0xff] }
 0x1e2   : > { %v1458_v57 = vpop.permute.xlu1 %1457  ;;  %v2647_v58 = vld [vmem:[#allocation2 + $0xb7] sm:$0xff] }
 0x1e3   : > { %v1199_v6 = vpop.permute.xlu0 %1198  ;;  %v3550_v54 = vld [vmem:[#allocation2 + $0xb8] sm:$0xff]  ;;  %1626 = vst.msk [vmem:[#allocation2 + $0xc8] sm:$0xff] %vm1601_vm4, %v1458_v57  ;;  %6990 = vmatprep.mubr.msk.f32.mxu1 %vm1002_vm1, %v2647_v58  ;;  %v3567_v43 = vld [vmem:[#allocation2 + $0x170] sm:$0xff] }
 0x1e4   : > { %1368 = vst.msk [vmem:[#allocation2 + $0xd0] sm:$0xff] %vm1344_vm5, %v1199_v6  ;;  %7090 = vmatprep.mubr.msk.f32.mxu0 %vm1002_vm1, %v3550_v54  ;;  %v2665_v57 = vld [vmem:[#allocation2 + $0x177] sm:$0xff] }
 0x1e5   : > { %v3568_v6 = vld [vmem:[#allocation2 + $0x178] sm:$0xff] }
 0x1e6   : > { %v1201_v52 = vpop.permute.xlu1 %1200 }
 0x1e7   : > { %v1460_v32 = vpop.permute.xlu0 %1459  ;;  %v2648_v50 = vld [vmem:[#allocation2 + $0xbf] sm:$0xff]  ;;  %1369 = vst.msk [vmem:[#allocation2 + $0xd8] sm:$0xff] %vm1344_vm5, %v1201_v52 }
 0x1e8   : > { %v3551_v34 = vld [vmem:[#allocation2 + $0xc0] sm:$0xff]  ;;  %1627 = vst.msk [vmem:[#allocation2 + $0xd0] sm:$0xff] %vm1601_vm4, %v1460_v32  ;;  %6991 = vmatmul.mubr.msk.f32.gmra.mxu1 %vm1002_vm1, %v2648_v50 }
 0x1e9   : > { %7091 = vmatmul.mubr.msk.f32.gmra.mxu0 %vm1002_vm1, %v3551_v34  ;;  %v2666_v52 = vld [vmem:[#allocation2 + $0x17f] sm:$0xff]  ;;  %v2667_v50 = vld [vmem:[#allocation2 + $0x187] sm:$0xff] }
 0x1ea   : > { %v1462_v59 = vpop.permute.xlu1 %1461  ;;  %v2649_v37 = vld [vmem:[#allocation2 + $0xc7] sm:$0xff] }
 0x1eb   : > { %v1203_v12 = vpop.permute.xlu0 %1202  ;;  %v3552_v11 = vld [vmem:[#allocation2 + $0xc8] sm:$0xff]  ;;  %1628 = vst.msk [vmem:[#allocation2 + $0xd8] sm:$0xff] %vm1601_vm4, %v1462_v59  ;;  %6993 = vmatprep.mubr.msk.f32.mxu1 %vm1002_vm1, %v2649_v37  ;;  %v3569_v32 = vld [vmem:[#allocation2 + $0x180] sm:$0xff] }
 0x1ec   : > { %1370 = vst.msk [vmem:[#allocation2 + $0xe0] sm:$0xff] %vm1344_vm5, %v1203_v12  ;;  %7093 = vmatprep.mubr.msk.f32.mxu0 %vm1002_vm1, %v3552_v11  ;;  %v3570_v34 = vld [vmem:[#allocation2 + $0x188] sm:$0xff]  ;;  %v5279_v59 = vld [vmem:[%s9708_s5] sm:$0xf] }
 0x1ed   : > { %7256 = vmatprep.subr.msk.mxu0 %vm2885_vm3, %v5279_v59  ;;  %v2668_v11 = vld [vmem:[#allocation2 + $0x18f] sm:$0xff] }
 0x1ee   : > { %v1205_v39 = vpop.permute.xlu1 %1204  ;;  %7257 = vmatpush3.msk.msra.mxu0 %vm2885_vm3, %v5279_v59 }
 0x1ef   : > { %v1464_v60 = vpop.permute.xlu0 %1463  ;;  %v2650_v7 = vld [vmem:[#allocation2 + $0xcf] sm:$0xff]  ;;  %1371 = vst.msk [vmem:[#allocation2 + $0xe8] sm:$0xff] %vm1344_vm5, %v1205_v39 }
 0x1f0   : > { %v3553_v10 = vld [vmem:[#allocation2 + $0xd0] sm:$0xff]  ;;  %1629 = vst.msk [vmem:[#allocation2 + $0xe0] sm:$0xff] %vm1601_vm4, %v1464_v60  ;;  %6994 = vmatmul.mubr.msk.f32.gmra.mxu1 %vm1002_vm1, %v2650_v7  ;;  %v3572_v7 = vld [vmem:[#allocation2 + $0x198] sm:$0xff] }
 0x1f1   : > { %7094 = vmatmul.mubr.msk.f32.gmra.mxu0 %vm1002_vm1, %v3553_v10  ;;  %v3571_v39 = vld [vmem:[#allocation2 + $0x190] sm:$0xff] }
 0x1f2   : > { %v1466_v8 = vpop.permute.xlu1 %1465  ;;  %v2651_v41 = vld [vmem:[#allocation2 + $0xd7] sm:$0xff] }
 0x1f3   : > { %v1207_v19 = vpop.permute.xlu0 %1206  ;;  %v3554_v2 = vld [vmem:[#allocation2 + $0xd8] sm:$0xff]  ;;  %1630 = vst.msk [vmem:[#allocation2 + $0xe8] sm:$0xff] %vm1601_vm4, %v1466_v8  ;;  %6996 = vmatprep.mubr.msk.f32.mxu1 %vm1002_vm1, %v2651_v41  ;;  %v3573_v41 = vld [vmem:[#allocation2 + $0x1a0] sm:$0xff] }
 0x1f4   : > { %1372 = vst.msk [vmem:[#allocation2 + $0xf0] sm:$0xff] %vm1344_vm5, %v1207_v19  ;;  %7096 = vmatprep.mubr.msk.f32.mxu0 %vm1002_vm1, %v3554_v2  ;;  %v2669_v60 = vld [vmem:[#allocation2 + $0x197] sm:$0xff]  ;;  %v2670_v19 = vld [vmem:[#allocation2 + $0x19f] sm:$0xff]  ;;  %v2671_v2 = vld [vmem:[#allocation2 + $0x1a7] sm:$0xff] }
 0x1f6   : > { %v1209_v18 = vpop.permute.xlu1 %1208 }
 0x1f7   : > { %v1468_v42 = vpop.permute.xlu0 %1467  ;;  %v2652_v20 = vld [vmem:[#allocation2 + $0xdf] sm:$0xff]  ;;  %1373 = vst.msk [vmem:[#allocation2 + $0xf8] sm:$0xff] %vm1344_vm5, %v1209_v18  ;;  %v3574_v18 = vld [vmem:[#allocation2 + $0x1a8] sm:$0xff] }
 0x1f8   : > { %v3555_v51 = vld [vmem:[#allocation2 + $0xe0] sm:$0xff]  ;;  %1631 = vst.msk [vmem:[#allocation2 + $0xf0] sm:$0xff] %vm1601_vm4, %v1468_v42  ;;  %6997 = vmatmul.mubr.msk.f32.gmra.mxu1 %vm1002_vm1, %v2652_v20 }
 0x1f9   : > { %7097 = vmatmul.mubr.msk.f32.gmra.mxu0 %vm1002_vm1, %v3555_v51  ;;  %v2672_v51 = vld [vmem:[#allocation2 + $0x1af] sm:$0xff] }
 0x1fa   : > { %v1470_v40 = vpop.permute.xlu1 %1469  ;;  %v2653_v27 = vld [vmem:[#allocation2 + $0xe7] sm:$0xff] }
 0x1fb   : > { %v1211_v26 = vpop.permute.xlu0 %1210  ;;  %v3556_v30 = vld [vmem:[#allocation2 + $0xe8] sm:$0xff]  ;;  %1632 = vst.msk [vmem:[#allocation2 + $0xf8] sm:$0xff] %vm1601_vm4, %v1470_v40  ;;  %6999 = vmatprep.mubr.msk.f32.mxu1 %vm1002_vm1, %v2653_v27  ;;  %v3575_v40 = vld [vmem:[#allocation2 + $0x1b0] sm:$0xff] }
 0x1fc   : > { %1374 = vst.msk [vmem:[#allocation2 + $0x100] sm:$0xff] %vm1344_vm5, %v1211_v26  ;;  %7099 = vmatprep.mubr.msk.f32.mxu0 %vm1002_vm1, %v3556_v30 }
 0x1fe   : > { %v1213_v53 = vpop.permute.xlu1 %1212 }
 0x1ff   : > { %v1472_v25 = vpop.permute.xlu0 %1471  ;;  %v2654_v47 = vld [vmem:[#allocation2 + $0xef] sm:$0xff]  ;;  %1375 = vst.msk [vmem:[#allocation2 + $0x108] sm:$0xff] %vm1344_vm5, %v1213_v53 }
 0x200   : > { %v3557_v0 = vld [vmem:[#allocation2 + $0xf0] sm:$0xff]  ;;  %1633 = vst.msk [vmem:[#allocation2 + $0x100] sm:$0xff] %vm1601_vm4, %v1472_v25  ;;  %7000 = vmatmul.mubr.msk.f32.gmra.mxu1 %vm1002_vm1, %v2654_v47 }
 0x201   : > { %7100 = vmatmul.mubr.msk.f32.gmra.mxu0 %vm1002_vm1, %v3557_v0 }
 0x202   : > { %v1247_v38 = vpop.permute.xlu1 %1246  ;;  %v2655_v24 = vld [vmem:[#allocation2 + $0xf7] sm:$0xff] }
 0x203   : > { %v1215_v13 = vpop.permute.xlu0 %1214  ;;  %v3558_v1 = vld [vmem:[#allocation2 + $0xf8] sm:$0xff]  ;;  %1392 = vst.msk [vmem:[#allocation2 + $0x1c0] sm:$0xff] %vm1344_vm5, %v1247_v38  ;;  %7002 = vmatprep.mubr.msk.f32.mxu1 %vm1002_vm1, %v2655_v24 }
 0x204   : > { %1376 = vst.msk [vmem:[#allocation2 + $0x110] sm:$0xff] %vm1344_vm5, %v1215_v13  ;;  %7102 = vmatprep.mubr.msk.f32.mxu0 %vm1002_vm1, %v3558_v1 }
 0x206   : > { %v1508_v4 = vpop.permute.xlu1 %1507  ;;  %v3560_v63 = vld [vmem:[#allocation2 + $0x108] sm:$0xff] }
 0x207   : > { %v1506_v29 = vpop.permute.xlu0 %1505  ;;  %v2656_v45 = vld [vmem:[#allocation2 + $0xff] sm:$0xff]  ;;  %v2657_v21 = vld [vmem:[#allocation2 + $0x107] sm:$0xff]  ;;  %1651 = vst.msk [vmem:[#allocation2 + $0x1c0] sm:$0xff] %vm1601_vm4, %v1508_v4 }
 0x208   : > { %v3559_v14 = vld [vmem:[#allocation2 + $0x100] sm:$0xff]  ;;  %1650 = vst.msk [vmem:[#allocation2 + $0x1b8] sm:$0xff] %vm1601_vm4, %v1506_v29  ;;  %7003 = vmatmul.mubr.msk.f32.gmra.mxu1 %vm1002_vm1, %v2656_v45 }
 0x209   : > { %7103 = vmatmul.mubr.msk.f32.gmra.mxu0 %vm1002_vm1, %v3559_v14  ;;  %7005 = vmatprep.mubr.msk.f32.mxu1 %vm1002_vm1, %v2657_v21 }
 0x20a   : > { %7105 = vmatprep.mubr.msk.f32.mxu0 %vm1002_vm1, %v3560_v63  ;;  %v1251_v46 = vpop.permute.xlu1 %1250 }
 0x20b   : > { %v1249_v3 = vpop.permute.xlu0 %1248  ;;  %v2658_v61 = vld [vmem:[#allocation2 + $0x10f] sm:$0xff]  ;;  %1394 = vst.msk [vmem:[#allocation2 + $0x1d0] sm:$0xff] %vm1344_vm5, %v1251_v46 }
 0x20c   : > { %v3561_v55 = vld [vmem:[#allocation2 + $0x110] sm:$0xff]  ;;  %1393 = vst.msk [vmem:[#allocation2 + $0x1c8] sm:$0xff] %vm1344_vm5, %v1249_v3  ;;  %7006 = vmatmul.mubr.msk.f32.gmra.mxu1 %vm1002_vm1, %v2658_v61 }
 0x20d   : > { %7106 = vmatmul.mubr.msk.f32.gmra.mxu0 %vm1002_vm1, %v3561_v55  ;;  %7008 = vmatprep.mubr.msk.f32.mxu1 %vm1002_vm1, %v2659_v28 }
 0x20e   : > { %7108 = vmatprep.mubr.msk.f32.mxu0 %vm1002_vm1, %v3562_v15  ;;  %v1512_v48 = vpop.permute.xlu1 %1511  ;;  %v3577_v47 = vld [vmem:[#allocation2 + $0x1c0] sm:$0xff] }
 0x20f   : > { %v1510_v31 = vpop.permute.xlu0 %1509  ;;  %1653 = vst.msk [vmem:[#allocation2 + $0x1d0] sm:$0xff] %vm1601_vm4, %v1512_v48  ;;  %v2673_v26 = vld [vmem:[#allocation2 + $0x1b7] sm:$0xff]  ;;  %v2674_v25 = vld [vmem:[#allocation2 + $0x1bf] sm:$0xff] }
 0x210   : > { %1652 = vst.msk [vmem:[#allocation2 + $0x1c8] sm:$0xff] %vm1601_vm4, %v1510_v31  ;;  %7009 = vmatmul.mubr.msk.f32.gmra.mxu1 %vm1002_vm1, %v2660_v56  ;;  %v3576_v27 = vld [vmem:[#allocation2 + $0x1b8] sm:$0xff] }
 0x211   : > { %7109 = vmatmul.mubr.msk.f32.gmra.mxu0 %vm1002_vm1, %v3563_v62  ;;  %7011 = vmatprep.mubr.msk.f32.mxu1 %vm1002_vm1, %v2661_v33 }
 0x212   : > { %7111 = vmatprep.mubr.msk.f32.mxu0 %vm1002_vm1, %v3564_v36  ;;  %v1255_v9 = vpop.permute.xlu1 %1254 }
 0x213   : > { %v1253_v22 = vpop.permute.xlu0 %1252  ;;  %1396 = vst.msk [vmem:[#allocation2 + $0x1e0] sm:$0xff] %vm1344_vm5, %v1255_v9 }
 0x214   : > { %1395 = vst.msk [vmem:[#allocation2 + $0x1d8] sm:$0xff] %vm1344_vm5, %v1253_v22  ;;  %7012 = vmatmul.mubr.msk.f32.gmra.mxu1 %vm1002_vm1, %v2662_v44 }
 0x215   : > { %7112 = vmatmul.mubr.msk.f32.gmra.mxu0 %vm1002_vm1, %v3565_v5  ;;  %7014 = vmatprep.mubr.msk.f32.mxu1 %vm1002_vm1, %v2663_v35 }
 0x216   : > { %7114 = vmatprep.mubr.msk.f32.mxu0 %vm1002_vm1, %v3566_v49  ;;  %v1516_v16 = vpop.permute.xlu1 %1515  ;;  %v3579_v4 = vld [vmem:[#allocation2 + $0x1d0] sm:$0xff] }
 0x217   : > { %v1514_v17 = vpop.permute.xlu0 %1513  ;;  %1655 = vst.msk [vmem:[#allocation2 + $0x1e0] sm:$0xff] %vm1601_vm4, %v1516_v16  ;;  %v2675_v0 = vld [vmem:[#allocation2 + $0x1c7] sm:$0xff]  ;;  %v2676_v1 = vld [vmem:[#allocation2 + $0x1cf] sm:$0xff] }
 0x218   : > { %1654 = vst.msk [vmem:[#allocation2 + $0x1d8] sm:$0xff] %vm1601_vm4, %v1514_v17  ;;  %7015 = vmatmul.mubr.msk.f32.gmra.mxu1 %vm1002_vm1, %v2664_v23  ;;  %v3578_v38 = vld [vmem:[#allocation2 + $0x1c8] sm:$0xff] }
 0x219   : > { %7115 = vmatmul.mubr.msk.f32.gmra.mxu0 %vm1002_vm1, %v3567_v43  ;;  %7017 = vmatprep.mubr.msk.f32.mxu1 %vm1002_vm1, %v2665_v57 }
 0x21a   : > { %7117 = vmatprep.mubr.msk.f32.mxu0 %vm1002_vm1, %v3568_v6  ;;  %v1259_v58 = vpop.permute.xlu1 %1258 }
 0x21b   : > { %v1257_v54 = vpop.permute.xlu0 %1256  ;;  %1398 = vst.msk [vmem:[#allocation2 + $0x1f0] sm:$0xff] %vm1344_vm5, %v1259_v58 }
 0x21c   : > { %1397 = vst.msk [vmem:[#allocation2 + $0x1e8] sm:$0xff] %vm1344_vm5, %v1257_v54  ;;  %7018 = vmatmul.mubr.msk.f32.gmra.mxu1 %vm1002_vm1, %v2666_v52 }
 0x21d   : > { %7118 = vmatmul.mubr.msk.f32.gmra.mxu0 %vm1002_vm1, %v3569_v32  ;;  %7020 = vmatprep.mubr.msk.f32.mxu1 %vm1002_vm1, %v2667_v50 }
 0x21e   : > { %7120 = vmatprep.mubr.msk.f32.mxu0 %vm1002_vm1, %v3570_v34  ;;  %v1520_v12 = vpop.permute.xlu1 %1519  ;;  %v3581_v46 = vld [vmem:[#allocation2 + $0x1e0] sm:$0xff] }
 0x21f   : > { %v1518_v37 = vpop.permute.xlu0 %1517  ;;  %1657 = vst.msk [vmem:[#allocation2 + $0x1f0] sm:$0xff] %vm1601_vm4, %v1520_v12  ;;  %v2677_v29 = vld [vmem:[#allocation2 + $0x1d7] sm:$0xff]  ;;  %v2678_v63 = vld [vmem:[#allocation2 + $0x1df] sm:$0xff] }
 0x220   : > { %1656 = vst.msk [vmem:[#allocation2 + $0x1e8] sm:$0xff] %vm1601_vm4, %v1518_v37  ;;  %7021 = vmatmul.mubr.msk.f32.gmra.mxu1 %vm1002_vm1, %v2668_v11  ;;  %v3580_v45 = vld [vmem:[#allocation2 + $0x1d8] sm:$0xff] }
 0x221   : > { %7121 = vmatmul.mubr.msk.f32.gmra.mxu0 %vm1002_vm1, %v3571_v39  ;;  %7023 = vmatprep.mubr.msk.f32.mxu1 %vm1002_vm1, %v2669_v60  ;;  %v4241_v60 = vld [vmem:[#allocation2 + $0x19] sm:$0xff] }
 0x222   : > { %7123 = vmatprep.mubr.msk.f32.mxu0 %vm1002_vm1, %v3572_v7  ;;  %v1263_v10 = vpop.permute.xlu1 %1262  ;;  %v4242_v7 = vld [vmem:[#allocation2 + $0x21] sm:$0xff] }
 0x223   : > { %v1261_v8 = vpop.permute.xlu0 %1260  ;;  %1400 = vst.msk [vmem:[#allocation2 + $0x200] sm:$0xff] %vm1344_vm5, %v1263_v10  ;;  %v4243_v10 = vld [vmem:[#allocation2 + $0x29] sm:$0xff] }
 0x224   : > { %1399 = vst.msk [vmem:[#allocation2 + $0x1f8] sm:$0xff] %vm1344_vm5, %v1261_v8  ;;  %7024 = vmatmul.mubr.msk.f32.gmra.mxu1 %vm1002_vm1, %v2670_v19  ;;  %v4244_v8 = vld [vmem:[#allocation2 + $0x31] sm:$0xff]  ;;  %v4245_v19 = vld [vmem:[#allocation2 + $0x39] sm:$0xff] }
 0x225   : > { %7124 = vmatmul.mubr.msk.f32.gmra.mxu0 %vm1002_vm1, %v3573_v41  ;;  %7026 = vmatprep.mubr.msk.f32.mxu1 %vm1002_vm1, %v2671_v2  ;;  %v4246_v41 = vld [vmem:[#allocation2 + $0x41] sm:$0xff]  ;;  %v4247_v2 = vld [vmem:[#allocation2 + $0x49] sm:$0xff] }
 0x226   : > { %7126 = vmatprep.mubr.msk.f32.mxu0 %vm1002_vm1, %v3574_v18  ;;  %v1524_v42 = vpop.permute.xlu1 %1523  ;;  %v3583_v48 = vld [vmem:[#allocation2 + $0x1f0] sm:$0xff] }
 0x227   : > { %v1522_v20 = vpop.permute.xlu0 %1521  ;;  %1659 = vst.msk [vmem:[#allocation2 + $0x200] sm:$0xff] %vm1601_vm4, %v1524_v42  ;;  %v2679_v3 = vld [vmem:[#allocation2 + $0x1e7] sm:$0xff]  ;;  %v2680_v15 = vld [vmem:[#allocation2 + $0x1ef] sm:$0xff]  ;;  %v4249_v42 = vld [vmem:[#allocation2 + $0x59] sm:$0xff] }
 0x228   : > { %1658 = vst.msk [vmem:[#allocation2 + $0x1f8] sm:$0xff] %vm1601_vm4, %v1522_v20  ;;  %7027 = vmatmul.mubr.msk.f32.gmra.mxu1 %vm1002_vm1, %v2672_v51  ;;  %v3582_v61 = vld [vmem:[#allocation2 + $0x1e8] sm:$0xff]  ;;  %v4248_v18 = vld [vmem:[#allocation2 + $0x51] sm:$0xff] }
 0x229   : > { %7127 = vmatmul.mubr.msk.f32.gmra.mxu0 %vm1002_vm1, %v3575_v40  ;;  %7029 = vmatprep.mubr.msk.f32.mxu1 %vm1002_vm1, %v2673_v26  ;;  %v4250_v20 = vld [vmem:[#allocation2 + $0x61] sm:$0xff]  ;;  %v4251_v51 = vld [vmem:[#allocation2 + $0x69] sm:$0xff]  ;;  %v4252_v40 = vld [vmem:[#allocation2 + $0x71] sm:$0xff] }
 0x22a   : > { %7129 = vmatprep.mubr.msk.f32.mxu0 %vm1002_vm1, %v3576_v27  ;;  %v1267_v30 = vpop.permute.xlu1 %1266  ;;  %v4253_v26 = vld [vmem:[#allocation2 + $0x79] sm:$0xff]  ;;  %v4254_v27 = vld [vmem:[#allocation2 + $0x81] sm:$0xff] }
 0x22b   : > { %v1265_v53 = vpop.permute.xlu0 %1264  ;;  %1402 = vst.msk [vmem:[#allocation2 + $0x210] sm:$0xff] %vm1344_vm5, %v1267_v30  ;;  %v4255_v30 = vld [vmem:[#allocation2 + $0x89] sm:$0xff] }
 0x22c   : > { %1401 = vst.msk [vmem:[#allocation2 + $0x208] sm:$0xff] %vm1344_vm5, %v1265_v53  ;;  %7030 = vmatmul.mubr.msk.f32.gmra.mxu1 %vm1002_vm1, %v2674_v25  ;;  %v4256_v53 = vld [vmem:[#allocation2 + $0x91] sm:$0xff]  ;;  %v4257_v25 = vld [vmem:[#allocation2 + $0x99] sm:$0xff] }
 0x22d   : > { %7130 = vmatmul.mubr.msk.f32.gmra.mxu0 %vm1002_vm1, %v3577_v47  ;;  %7032 = vmatprep.mubr.msk.f32.mxu1 %vm1002_vm1, %v2675_v0  ;;  %v4258_v47 = vld [vmem:[#allocation2 + $0xa1] sm:$0xff]  ;;  %v4259_v0 = vld [vmem:[#allocation2 + $0xa9] sm:$0xff] }
 0x22e   : > { %7132 = vmatprep.mubr.msk.f32.mxu0 %vm1002_vm1, %v3578_v38  ;;  %v1528_v13 = vpop.permute.xlu1 %1527  ;;  %v3585_v9 = vld [vmem:[#allocation2 + $0x200] sm:$0xff]  ;;  %v8460_v38 = vpop.f32.mrf.mxu1 }
 0x22f   : > { %v1526_v24 = vpop.permute.xlu0 %1525  ;;  %1661 = vst.msk [vmem:[#allocation2 + $0x210] sm:$0xff] %vm1601_vm4, %v1528_v13  ;;  %v2681_v31 = vld [vmem:[#allocation2 + $0x1f7] sm:$0xff]  ;;  %v2682_v36 = vld [vmem:[#allocation2 + $0x1ff] sm:$0xff] }
 0x230   : > { %1660 = vst.msk [vmem:[#allocation2 + $0x208] sm:$0xff] %vm1601_vm4, %v1526_v24  ;;  %7033 = vmatmul.mubr.msk.f32.gmra.mxu1 %vm1002_vm1, %v2676_v1  ;;  %v3584_v56 = vld [vmem:[#allocation2 + $0x1f8] sm:$0xff]  ;;  %v8464_v1 = vpop.f32.mrf.mxu1 }
 0x231   : > { %7133 = vmatmul.mubr.msk.f32.gmra.mxu0 %vm1002_vm1, %v3579_v4  ;;  %7035 = vmatprep.mubr.msk.f32.mxu1 %vm1002_vm1, %v2677_v29  ;;  %v4260_v13 = vld [vmem:[#allocation2 + $0xb1] sm:$0xff]  ;;  %v4261_v24 = vld [vmem:[#allocation2 + $0xb9] sm:$0xff]  ;;  %v4262_v4 = vld [vmem:[#allocation2 + $0xc1] sm:$0xff] }
 0x232   : > { %7135 = vmatprep.mubr.msk.f32.mxu0 %vm1002_vm1, %v3580_v45  ;;  %v1271_v14 = vpop.permute.xlu1 %1270  ;;  %v4263_v29 = vld [vmem:[#allocation2 + $0xc9] sm:$0xff] }
 0x233   : > { %v1269_v21 = vpop.permute.xlu0 %1268  ;;  %1404 = vst.msk [vmem:[#allocation2 + $0x220] sm:$0xff] %vm1344_vm5, %v1271_v14  ;;  %v4264_v14 = vld [vmem:[#allocation2 + $0xd1] sm:$0xff] }
 0x234   : > { %1403 = vst.msk [vmem:[#allocation2 + $0x218] sm:$0xff] %vm1344_vm5, %v1269_v21  ;;  %7036 = vmatmul.mubr.msk.f32.gmra.mxu1 %vm1002_vm1, %v2678_v63  ;;  %v4265_v21 = vld [vmem:[#allocation2 + $0xd9] sm:$0xff] }
 0x235   : > { %7136 = vmatmul.mubr.msk.f32.gmra.mxu0 %vm1002_vm1, %v3581_v46  ;;  %7038 = vmatprep.mubr.msk.f32.mxu1 %vm1002_vm1, %v2679_v3  ;;  %v4266_v3 = vld [vmem:[#allocation2 + $0xe1] sm:$0xff] }
 0x236   : > { %7138 = vmatprep.mubr.msk.f32.mxu0 %vm1002_vm1, %v3582_v61  ;;  %v1532_v55 = vpop.permute.xlu1 %1531  ;;  %v3587_v16 = vld [vmem:[#allocation2 + $0x210] sm:$0xff] }
 0x237   : > { %v1530_v28 = vpop.permute.xlu0 %1529  ;;  %1663 = vst.msk [vmem:[#allocation2 + $0x220] sm:$0xff] %vm1601_vm4, %v1532_v55  ;;  %v2683_v22 = vld [vmem:[#allocation2 + $0x207] sm:$0xff]  ;;  %v2684_v5 = vld [vmem:[#allocation2 + $0x20f] sm:$0xff] }
 0x238   : > { %1662 = vst.msk [vmem:[#allocation2 + $0x218] sm:$0xff] %vm1601_vm4, %v1530_v28  ;;  %7039 = vmatmul.mubr.msk.f32.gmra.mxu1 %vm1002_vm1, %v2680_v15  ;;  %v3586_v44 = vld [vmem:[#allocation2 + $0x208] sm:$0xff]  ;;  %v4268_v28 = vld [vmem:[#allocation2 + $0xf1] sm:$0xff]  ;;  %v4269_v15 = vld [vmem:[#allocation2 + $0xf9] sm:$0xff] }
 0x239   : > { %7139 = vmatmul.mubr.msk.f32.gmra.mxu0 %vm1002_vm1, %v3583_v48  ;;  %7041 = vmatprep.mubr.msk.f32.mxu1 %vm1002_vm1, %v2681_v31  ;;  %v8467_v45 = vpop.f32.mrf.mxu1  ;;  %v4267_v61 = vld [vmem:[#allocation2 + $0xe9] sm:$0xff]  ;;  %v4270_v31 = vld [vmem:[#allocation2 + $0x101] sm:$0xff] }
 0x23a   : > { %7141 = vmatprep.mubr.msk.f32.mxu0 %vm1002_vm1, %v3584_v56  ;;  %v1275_v62 = vpop.permute.xlu1 %1274  ;;  %v4271_v56 = vld [vmem:[#allocation2 + $0x109] sm:$0xff] }
 0x23b   : > { %v1273_v33 = vpop.permute.xlu0 %1272  ;;  %1406 = vst.msk [vmem:[#allocation2 + $0x230] sm:$0xff] %vm1344_vm5, %v1275_v62  ;;  %v8471_v63 = vpop.f32.mrf.mxu1 }
 0x23c   : > { %1405 = vst.msk [vmem:[#allocation2 + $0x228] sm:$0xff] %vm1344_vm5, %v1273_v33  ;;  %7042 = vmatmul.mubr.msk.f32.gmra.mxu1 %vm1002_vm1, %v2682_v36  ;;  %v4272_v36 = vld [vmem:[#allocation2 + $0x111] sm:$0xff] }
 0x23d   : > { %7142 = vmatmul.mubr.msk.f32.gmra.mxu0 %vm1002_vm1, %v3585_v9  ;;  %7044 = vmatprep.mubr.msk.f32.mxu1 %vm1002_vm1, %v2683_v22  ;;  %v4273_v9 = vld [vmem:[#allocation2 + $0x149] sm:$0xff] }
 0x23e   : > { %7144 = vmatprep.mubr.msk.f32.mxu0 %vm1002_vm1, %v3586_v44  ;;  %v1536_v35 = vpop.permute.xlu1 %1535  ;;  %v3589_v58 = vld [vmem:[#allocation2 + $0x220] sm:$0xff]  ;;  %v4274_v44 = vld [vmem:[#allocation2 + $0x151] sm:$0xff] }
 0x23f   : > { %v1534_v49 = vpop.permute.xlu0 %1533  ;;  %v2685_v17 = vld [vmem:[#allocation2 + $0x217] sm:$0xff]  ;;  %1665 = vst.msk [vmem:[#allocation2 + $0x230] sm:$0xff] %vm1601_vm4, %v1536_v35  ;;  %v2686_v6 = vld [vmem:[#allocation2 + $0x21f] sm:$0xff] }
 0x240   : > { %v3588_v23 = vld [vmem:[#allocation2 + $0x218] sm:$0xff]  ;;  %1664 = vst.msk [vmem:[#allocation2 + $0x228] sm:$0xff] %vm1601_vm4, %v1534_v49  ;;  %7045 = vmatmul.mubr.msk.f32.gmra.mxu1 %vm1002_vm1, %v2684_v5  ;;  %v4276_v49 = vld [vmem:[#allocation2 + $0x161] sm:$0xff] }
 0x241   : > { %7145 = vmatmul.mubr.msk.f32.gmra.mxu0 %vm1002_vm1, %v3587_v16  ;;  %7047 = vmatprep.mubr.msk.f32.mxu1 %vm1002_vm1, %v2685_v17  ;;  %v4275_v5 = vld [vmem:[#allocation2 + $0x159] sm:$0xff]  ;;  %v4277_v16 = vld [vmem:[#allocation2 + $0x169] sm:$0xff] }
 0x242   : > { %7147 = vmatprep.mubr.msk.f32.mxu0 %vm1002_vm1, %v3588_v23  ;;  %v1279_v43 = vpop.permute.xlu1 %1278 }
 0x243   : > { %v1277_v57 = vpop.permute.xlu0 %1276  ;;  %1408 = vst.msk [vmem:[#allocation2 + $0x240] sm:$0xff] %vm1344_vm5, %v1279_v43  ;;  %v4278_v43 = vld [vmem:[#allocation2 + $0x171] sm:$0xff] }
 0x244   : > { %1407 = vst.msk [vmem:[#allocation2 + $0x238] sm:$0xff] %vm1344_vm5, %v1277_v57  ;;  %7048 = vmatmul.mubr.msk.f32.gmra.mxu1 %vm1002_vm1, %v2686_v6  ;;  %v4279_v57 = vld [vmem:[#allocation2 + $0x179] sm:$0xff] }
 0x245   : > { %7148 = vmatmul.mubr.msk.f32.gmra.mxu0 %vm1002_vm1, %v3589_v58  ;;  %v4280_v58 = vld [vmem:[#allocation2 + $0x181] sm:$0xff] }
 0x246   : > { %v1474_v54 = vpop.permute.xlu1 %1473  ;;  %v3591_v59 = vld [vmem:[#allocation2 + $0x230] sm:$0xff] }
 0x247   : > { %v1410_v52 = vpop.permute.xlu0 %1409  ;;  %v2687_v32 = vld [vmem:[#allocation2 + $0x227] sm:$0xff]  ;;  %v2688_v34 = vld [vmem:[#allocation2 + $0x22f] sm:$0xff] }
 0x248   : > { %v3590_v50 = vld [vmem:[#allocation2 + $0x228] sm:$0xff]  ;;  %7050 = vmatprep.mubr.msk.f32.mxu1 %vm1002_vm1, %v2687_v32  ;;  %v4282_v32 = vld [vmem:[#allocation2 + $0x191] sm:$0xff] }
 0x249   : > { %7150 = vmatprep.mubr.msk.f32.mxu0 %vm1002_vm1, %v3590_v50  ;;  %7051 = vmatmul.mubr.msk.f32.gmra.mxu1 %vm1002_vm1, %v2688_v34  ;;  %v8474_v46 = vpop.f32.mrf.mxu1  ;;  %v4281_v54 = vld [vmem:[#allocation2 + $0x189] sm:$0xff]  ;;  %v4283_v50 = vld [vmem:[#allocation2 + $0x199] sm:$0xff] }
 0x24a   : > { %7151 = vmatmul.mubr.msk.f32.gmra.mxu0 %vm1002_vm1, %v3591_v59  ;;  %v3593_v39 = vld [vmem:[#allocation2 + $0x240] sm:$0xff] }
 0x24b   : > { %v2689_v12 = vld [vmem:[#allocation2 + $0x237] sm:$0xff]  ;;  %v2690_v11 = vld [vmem:[#allocation2 + $0x23f] sm:$0xff]  ;;  %v8478_v55 = vpop.f32.mrf.mxu1 }
 0x24c   : > { %v3592_v37 = vld [vmem:[#allocation2 + $0x238] sm:$0xff]  ;;  %7053 = vmatprep.mubr.msk.f32.mxu1 %vm1002_vm1, %v2689_v12  ;;  %v4284_v12 = vld [vmem:[#allocation2 + $0x1a1] sm:$0xff] }
 0x24d   : > { %7153 = vmatprep.mubr.msk.f32.mxu0 %vm1002_vm1, %v3592_v37  ;;  %7054 = vmatmul.mubr.msk.f32.gmra.mxu1 %vm1002_vm1, %v2690_v11  ;;  %v4285_v37 = vld [vmem:[#allocation2 + $0x1a9] sm:$0xff] }
 0x24e   : > { %7154 = vmatmul.mubr.msk.f32.gmra.mxu0 %vm1002_vm1, %v3593_v39  ;;  %7160 = vmatprep.mubr.msk.f32.mxu1 %vm1002_vm1, %v4241_v60  ;;  %v4286_v39 = vld [vmem:[#allocation2 + $0x1b1] sm:$0xff]  ;;  %v4287_v60 = vld [vmem:[#allocation2 + $0x1b9] sm:$0xff] }
 0x251   : > { %7161 = vmatmul.mubr.msk.f32.vlgmr.msra.gmra.mxu1 %vm1002_vm1, %v4242_v7 }
 0x252   : > { %7163 = vmatprep.mubr.msk.f32.mxu1 %vm1002_vm1, %v4243_v10  ;;  %v8526_v10 = vpop.f32.mrf.mxu0 }
 0x255   : > { %7164 = vmatmul.mubr.msk.f32.gmra.mxu1 %vm1002_vm1, %v4244_v8  ;;  %v4288_v8 = vld [vmem:[#allocation2 + $0x1c1] sm:$0xff] }
 0x256   : > { %7166 = vmatprep.mubr.msk.f32.mxu1 %vm1002_vm1, %v4245_v19  ;;  %v4289_v19 = vld [vmem:[#allocation2 + $0x1c9] sm:$0xff] }
 0x259   : > { %7167 = vmatmul.mubr.msk.f32.gmra.mxu1 %vm1002_vm1, %v4246_v41  ;;  %v8481_v48 = vpop.f32.mrf.mxu1 }
 0x25a   : > { %7169 = vmatprep.mubr.msk.f32.mxu1 %vm1002_vm1, %v4247_v2  ;;  %v8532_v2 = vpop.f32.mrf.mxu0 }
 0x25b   : > { %v8485_v62 = vpop.f32.mrf.mxu1 }
 0x25d   : > { %7170 = vmatmul.mubr.msk.f32.gmra.mxu1 %vm1002_vm1, %v4248_v18 }
 0x25e   : > { %7172 = vmatprep.mubr.msk.f32.mxu1 %vm1002_vm1, %v4249_v42  ;;  %v4290_v42 = vld [vmem:[#allocation2 + $0x1d1] sm:$0xff] }
 0x261   : > { %7173 = vmatmul.mubr.msk.f32.gmra.mxu1 %vm1002_vm1, %v4250_v20  ;;  %v8536_v20 = vpop.f32.mrf.mxu0 }
 0x262   : > { %7175 = vmatprep.mubr.msk.f32.mxu1 %vm1002_vm1, %v4251_v51  ;;  %v4291_v51 = vld [vmem:[#allocation2 + $0x1d9] sm:$0xff] }
 0x265   : > { %7176 = vmatmul.mubr.msk.f32.gmra.mxu1 %vm1002_vm1, %v4252_v40 }
 0x266   : > { %7178 = vmatprep.mubr.msk.f32.mxu1 %vm1002_vm1, %v4253_v26  ;;  %v4292_v26 = vld [vmem:[#allocation2 + $0x1e1] sm:$0xff] }
 0x269   : > { %7179 = vmatmul.mubr.msk.f32.gmra.mxu1 %vm1002_vm1, %v4254_v27  ;;  %v8488_v33 = vpop.f32.mrf.mxu1  ;;  %v8542_v27 = vpop.f32.mrf.mxu0 }
 0x26a   : > { %7181 = vmatprep.mubr.msk.f32.mxu1 %vm1002_vm1, %v4255_v30  ;;  %v4293_v30 = vld [vmem:[#allocation2 + $0x1e9] sm:$0xff] }
 0x26b   : > { %v8492_v22 = vpop.f32.mrf.mxu1 }
 0x26d   : > { %7182 = vmatmul.mubr.msk.f32.gmra.mxu1 %vm1002_vm1, %v4256_v53 }
 0x26e   : > { %7184 = vmatprep.mubr.msk.f32.mxu1 %vm1002_vm1, %v4257_v25  ;;  %v8548_v25 = vpop.f32.mrf.mxu0 }
 0x271   : > { %7185 = vmatmul.mubr.msk.f32.gmra.mxu1 %vm1002_vm1, %v4258_v47  ;;  %v4294_v47 = vld [vmem:[#allocation2 + $0x1f1] sm:$0xff] }
 0x272   : > { %7187 = vmatprep.mubr.msk.f32.mxu1 %vm1002_vm1, %v4259_v0  ;;  %v4295_v0 = vld [vmem:[#allocation2 + $0x1f9] sm:$0xff] }
 0x275   : > { %7188 = vmatmul.mubr.msk.f32.gmra.mxu1 %vm1002_vm1, %v4260_v13 }
 0x276   : > { %7190 = vmatprep.mubr.msk.f32.mxu1 %vm1002_vm1, %v4261_v24  ;;  %v8554_v24 = vpop.f32.mrf.mxu0 }
 0x279   : > { %7191 = vmatmul.mubr.msk.f32.gmra.mxu1 %vm1002_vm1, %v4262_v4  ;;  %v8495_v35 = vpop.f32.mrf.mxu1 }
 0x27a   : > { %7193 = vmatprep.mubr.msk.f32.mxu1 %vm1002_vm1, %v4263_v29  ;;  %v4296_v29 = vld [vmem:[#allocation2 + $0x201] sm:$0xff] }
 0x27b   : > { %v8499_v17 = vpop.f32.mrf.mxu1 }
 0x27d   : > { %7194 = vmatmul.mubr.msk.f32.gmra.mxu1 %vm1002_vm1, %v4264_v14  ;;  %v8558_v14 = vpop.f32.mrf.mxu0 }
 0x27e   : > { %7196 = vmatprep.mubr.msk.f32.mxu1 %vm1002_vm1, %v4265_v21  ;;  %v4297_v21 = vld [vmem:[#allocation2 + $0x209] sm:$0xff] }
 0x281   : > { %7197 = vmatmul.mubr.msk.f32.gmra.mxu1 %vm1002_vm1, %v4266_v3 }
 0x282   : > { %7199 = vmatprep.mubr.msk.f32.mxu1 %vm1002_vm1, %v4267_v61  ;;  %v4298_v61 = vld [vmem:[#allocation2 + $0x211] sm:$0xff] }
 0x285   : > { %7200 = vmatmul.mubr.msk.f32.gmra.mxu1 %vm1002_vm1, %v4268_v28  ;;  %v8502_v23 = vpop.f32.mrf.mxu1  ;;  %v8564_v28 = vpop.f32.mrf.mxu0 }
 0x286   : > { %7202 = vmatprep.mubr.msk.f32.mxu1 %vm1002_vm1, %v4269_v15  ;;  %v4299_v15 = vld [vmem:[#allocation2 + $0x219] sm:$0xff] }
 0x287   : > { %v8506_v6 = vpop.f32.mrf.mxu1 }
 0x289   : > { %7203 = vmatmul.mubr.msk.f32.gmra.mxu1 %vm1002_vm1, %v4270_v31 }
 0x28a   : > { %7205 = vmatprep.mubr.msk.f32.mxu1 %vm1002_vm1, %v4271_v56  ;;  %v8570_v56 = vpop.f32.mrf.mxu0 }
 0x28d   : > { %7206 = vmatmul.mubr.msk.f32.gmra.mxu1 %vm1002_vm1, %v4272_v36  ;;  %v4300_v36 = vld [vmem:[#allocation2 + $0x221] sm:$0xff] }
 0x28e   : > { %7208 = vmatprep.mubr.msk.f32.mxu1 %vm1002_vm1, %v4273_v9  ;;  %v4301_v9 = vld [vmem:[#allocation2 + $0x229] sm:$0xff] }
 0x290   : > { %v8509_v52 = vpop.f32.mrf.mxu1 }
 0x291   : > { %7209 = vmatmul.mubr.msk.f32.gmra.mxu1 %vm1002_vm1, %v4274_v44 }
 0x292   : > { %7211 = vmatprep.mubr.msk.f32.mxu1 %vm1002_vm1, %v4275_v5  ;;  %v8513_v34 = vpop.f32.mrf.mxu1  ;;  %v8576_v5 = vpop.f32.mrf.mxu0 }
 0x295   : > { %7212 = vmatmul.mubr.msk.f32.gmra.mxu1 %vm1002_vm1, %v4276_v49 }
 0x296   : > { %7214 = vmatprep.mubr.msk.f32.mxu1 %vm1002_vm1, %v4277_v16  ;;  %v4302_v16 = vld [vmem:[#allocation2 + $0x231] sm:$0xff] }
 0x298   : > { %v8516_v59 = vpop.f32.mrf.mxu1 }
 0x299   : > { %7215 = vmatmul.mubr.msk.f32.gmra.mxu1 %vm1002_vm1, %v4278_v43  ;;  %v8580_v43 = vpop.f32.mrf.mxu0 }
 0x29a   : > { %7217 = vmatprep.mubr.msk.f32.mxu1 %vm1002_vm1, %v4279_v57  ;;  %v8520_v11 = vpop.f32.mrf.mxu1  ;;  %v4303_v57 = vld [vmem:[#allocation2 + $0x239] sm:$0xff] }
 0x29d   : > { %7218 = vmatmul.mubr.msk.f32.gmra.mxu1 %vm1002_vm1, %v4280_v58 }
 0x29e   : > { %7220 = vmatprep.mubr.msk.f32.mxu1 %vm1002_vm1, %v4281_v54 }
 0x2a0   : > { %v8523_v7 = vpop.f32.mrf.mxu1 }
 0x2a1   : > { %7221 = vmatmul.mubr.msk.f32.gmra.mxu1 %vm1002_vm1, %v4282_v32  ;;  %v4304_v32 = vld [vmem:[#allocation2 + $0x241] sm:$0xff] }
 0x2a2   : > { %7223 = vmatprep.mubr.msk.f32.mxu1 %vm1002_vm1, %v4283_v50  ;;  %v8529_v41 = vpop.f32.mrf.mxu1  ;;  %v8588_v50 = vpop.f32.mrf.mxu0 }
 0x2a5   : > { %7224 = vmatmul.mubr.msk.f32.gmra.mxu1 %vm1002_vm1, %v4284_v12 }
 0x2a6   : > { %7226 = vmatprep.mubr.msk.f32.mxu1 %vm1002_vm1, %v4285_v37  ;;  %v8593_v37 = vpop.f32.mrf.mxu0 }
 0x2a8   : > { %v8534_v18 = vpop.f32.mrf.mxu1 }
 0x2a9   : > { %7227 = vmatmul.mubr.msk.f32.gmra.mxu1 %vm1002_vm1, %v4286_v39 }
 0x2aa   : > { %7229 = vmatprep.mubr.msk.f32.mxu1 %vm1002_vm1, %v4287_v60  ;;  %v8540_v40 = vpop.f32.mrf.mxu1 }
 0x2ad   : > { %7230 = vmatmul.mubr.msk.f32.gmra.mxu1 %vm1002_vm1, %v4288_v8  ;;  %v8599_v8 = vpop.f32.mrf.mxu0 }
 0x2ae   : > { %7232 = vmatprep.mubr.msk.f32.mxu1 %vm1002_vm1, %v4289_v19 }
 0x2b0   : > { %v8545_v53 = vpop.f32.mrf.mxu1 }
 0x2b1   : > { %7233 = vmatmul.mubr.msk.f32.gmra.mxu1 %vm1002_vm1, %v4290_v42  ;;  %v8603_v42 = vpop.f32.mrf.mxu0 }
 0x2b2   : > { %7235 = vmatprep.mubr.msk.f32.mxu1 %vm1002_vm1, %v4291_v51  ;;  %v8551_v13 = vpop.f32.mrf.mxu1 }
 0x2b5   : > { %7236 = vmatmul.mubr.msk.f32.gmra.mxu1 %vm1002_vm1, %v4292_v26 }
 0x2b6   : > { %7238 = vmatprep.mubr.msk.f32.mxu1 %vm1002_vm1, %v4293_v30  ;;  %v8609_v30 = vpop.f32.mrf.mxu0 }
 0x2b8   : > { %v8556_v4 = vpop.f32.mrf.mxu1 }
 0x2b9   : > { %7239 = vmatmul.mubr.msk.f32.gmra.mxu1 %vm1002_vm1, %v4294_v47  ;;  %9711 = vst [vmem:[#allocation3_spill] sm:$0xff] %v8556_v4 }
 0x2ba   : > { %7241 = vmatprep.mubr.msk.f32.mxu1 %vm1002_vm1, %v4295_v0  ;;  %v8562_v3 = vpop.f32.mrf.mxu1  ;;  %v8613_v0 = vpop.f32.mrf.mxu0 }
 0x2bb   : > { %9712 = vst [vmem:[#allocation4_spill] sm:$0xff] %v8562_v3 }
 0x2bd   : > { %7242 = vmatmul.mubr.msk.f32.gmra.mxu1 %vm1002_vm1, %v4296_v29 }
 0x2be   : > { %7244 = vmatprep.mubr.msk.f32.mxu1 %vm1002_vm1, %v4297_v21 }
 0x2c0   : > { %v8567_v31 = vpop.f32.mrf.mxu1 }
 0x2c1   : > { %7245 = vmatmul.mubr.msk.f32.gmra.mxu1 %vm1002_vm1, %v4298_v61  ;;  %9713 = vst [vmem:[#allocation5_spill] sm:$0xff] %v8567_v31  ;;  %v8619_v61 = vpop.f32.mrf.mxu0 }
 0x2c2   : > { %7247 = vmatprep.mubr.msk.f32.mxu1 %vm1002_vm1, %v4299_v15  ;;  %v8573_v44 = vpop.f32.mrf.mxu1 }
 0x2c3   : > { %9714 = vst [vmem:[#allocation6_spill] sm:$0xff] %v8573_v44 }
 0x2c5   : > { %7248 = vmatmul.mubr.msk.f32.gmra.mxu1 %vm1002_vm1, %v4300_v36  ;;  %v8623_v36 = vpop.f32.mrf.mxu0 }
 0x2c6   : > { %7250 = vmatprep.mubr.msk.f32.mxu1 %vm1002_vm1, %v4301_v9 }
 0x2c8   : > { %v8578_v49 = vpop.f32.mrf.mxu1 }
 0x2c9   : > { %9715 = vst [vmem:[#allocation7_spill] sm:$0xff] %v8578_v49  ;;  %7251 = vmatmul.mubr.msk.f32.gmra.mxu1 %vm1002_vm1, %v4302_v16 }
 0x2ca   : > { %v8583_v58 = vpop.f32.mrf.mxu1  ;;  %7253 = vmatprep.mubr.msk.f32.mxu1 %vm1002_vm1, %v4303_v57  ;;  %v8629_v57 = vpop.f32.mrf.mxu0 }
 0x2cb   : > { %9716 = vst [vmem:[#allocation8_spill] sm:$0xff] %v8583_v58  ;;  %v1666_v58 = vlaneseq }
 0x2cc   : > { %v8586_v54 = vpop.f32.mrf.mxu1 }
 0x2cd   : > { %9717 = vst [vmem:[#allocation9_spill] sm:$0xff] %v8586_v54  ;;  %7254 = vmatmul.mubr.msk.f32.gmra.mxu1 %vm1002_vm1, %v4304_v32 }
 0x2ce   : > { %v8591_v12 = vpop.f32.mrf.mxu1 }
 0x2cf   : > { %9718 = vst [vmem:[#allocation10_spill] sm:$0xff] %v8591_v12 }
 0x2d0   : > { %v8595_v39 = vpop.f32.mrf.mxu1 }
 0x2d1   : > { %9719 = vst [vmem:[#allocation11_spill] sm:$0xff] %v8595_v39 }
 0x2d2   : > { %v8597_v60 = vpop.f32.mrf.mxu1 }
 0x2d3   : > { %9720 = vst [vmem:[#allocation12_spill] sm:$0xff] %v8597_v60 }
 0x2d4   : > { %v8601_v19 = vpop.f32.mrf.mxu1 }
 0x2d5   : > { %9721 = vst [vmem:[#allocation13_spill] sm:$0xff] %v8601_v19 }
 0x2d6   : > { %v8605_v51 = vpop.f32.mrf.mxu1 }
 0x2d7   : > { %9722 = vst [vmem:[#allocation14_spill] sm:$0xff] %v8605_v51 }
 0x2d8   : > { %v8607_v26 = vpop.f32.mrf.mxu1 }
 0x2d9   : > { %9723 = vst [vmem:[#allocation15_spill] sm:$0xff] %v8607_v26  ;;  %v8633_v26 = vpop.f32.mrf.mxu0 }
 0x2da   : > { %v8611_v47 = vpop.f32.mrf.mxu1 }
 0x2db   : > { %9724 = vst [vmem:[#allocation16_spill] sm:$0xff] %v8611_v47 }
 0x2dc   : > { %v8615_v29 = vpop.f32.mrf.mxu1 }
 0x2dd   : > { %9725 = vst [vmem:[#allocation17_spill] sm:$0xff] %v8615_v29 }
 0x2de   : > { %v8617_v21 = vpop.f32.mrf.mxu1 }
 0x2df   : > { %9726 = vst [vmem:[#allocation18_spill] sm:$0xff] %v8617_v21  ;;  %v8639_v21 = vpop.f32.mrf.mxu0 }
 0x2e0   : > { %v8621_v15 = vpop.f32.mrf.mxu1 }
 0x2e1   : > { %9727 = vst [vmem:[#allocation19_spill] sm:$0xff] %v8621_v15  ;;  %v8643_v15 = vpop.f32.mrf.mxu0 }
 0x2e2   : > { %v8625_v9 = vpop.f32.mrf.mxu1 }
 0x2e3   : > { %9728 = vst [vmem:[#allocation20_spill] sm:$0xff] %v8625_v9 }
 0x2e4   : > { %v8627_v16 = vpop.f32.mrf.mxu1 }
 0x2e5   : > { %9729 = vst [vmem:[#allocation21_spill] sm:$0xff] %v8627_v16  ;;  %v8649_v16 = vpop.f32.mrf.mxu0 }
 0x2e6   : > { %v8631_v32 = vpop.f32.mrf.mxu1  ;;  %9736 = vst [vmem:[#allocation28_spill] sm:$0xff] %v8649_v16 }
 0x2e7   : > { %9730 = vst [vmem:[#allocation22_spill] sm:$0xff] %v8631_v32  ;;  %v8653_v32 = vpop.f32.mrf.mxu0 }
 0x2e8   : > { %v8635_v47 = vpop.f32.mrf.mxu1  ;;  %9738 = vst [vmem:[#allocation30_spill] sm:$0xff] %v8653_v32 }
 0x2e9   : > { %9731 = vst [vmem:[#allocation23_spill] sm:$0xff] %v8635_v47 }
 0x2ea   : > { %v8637_v29 = vpop.f32.mrf.mxu1 }
 0x2eb   : > { %9732 = vst [vmem:[#allocation24_spill] sm:$0xff] %v8637_v29  ;;  %v8659_v29 = vpop.f32.mrf.mxu0 }
 0x2ec   : > { %v8641_v19 = vpop.f32.mrf.mxu1  ;;  %9741 = vst [vmem:[#allocation33_spill] sm:$0xff] %v8659_v29 }
 0x2ed   : > { %9733 = vst [vmem:[#allocation25_spill] sm:$0xff] %v8641_v19  ;;  %v8663_v19 = vpop.f32.mrf.mxu0 }
 0x2ee   : > { %v8645_v51 = vpop.f32.mrf.mxu1  ;;  %9743 = vst [vmem:[#allocation35_spill] sm:$0xff] %v8663_v19 }
 0x2ef   : > { %9734 = vst [vmem:[#allocation26_spill] sm:$0xff] %v8645_v51 }
 0x2f0   : > { %v8647_v9 = vpop.f32.mrf.mxu1 }
 0x2f1   : > { %9735 = vst [vmem:[#allocation27_spill] sm:$0xff] %v8647_v9  ;;  %v8669_v9 = vpop.f32.mrf.mxu0 }
 0x2f2   : > { %v8651_v39 = vpop.f32.mrf.mxu1  ;;  %9746 = vst [vmem:[#allocation38_spill] sm:$0xff] %v8669_v9 }
 0x2f3   : > { %9737 = vst [vmem:[#allocation29_spill] sm:$0xff] %v8651_v39  ;;  %v8673_v39 = vpop.f32.mrf.mxu0 }
 0x2f4   : > { %v8655_v60 = vpop.f32.mrf.mxu1  ;;  %9748 = vst [vmem:[#allocation40_spill] sm:$0xff] %v8673_v39 }
 0x2f5   : > { %9739 = vst [vmem:[#allocation31_spill] sm:$0xff] %v8655_v60  ;;  %v8679_v31 = vpop.f32.mrf.mxu0 }
 0x2f6   : > { %v8657_v47 = vpop.f32.mrf.mxu1  ;;  %9751 = vst [vmem:[#allocation43_spill] sm:$0xff] %v8679_v31 }
 0x2f7   : > { %9740 = vst [vmem:[#allocation32_spill] sm:$0xff] %v8657_v47  ;;  %v8688_v9 = vpop.f32.mrf.mxu0 }
 0x2f8   : > { %v8661_v54 = vpop.f32.mrf.mxu1  ;;  %9754 = vst [vmem:[#allocation46_spill] sm:$0xff] %v8688_v9 }
 0x2f9   : > { %9742 = vst [vmem:[#allocation34_spill] sm:$0xff] %v8661_v54  ;;  %v8681_v54 = vshrl.u32 %v1666_v58, 7  ;;  %v8695_v31 = vpop.f32.mrf.mxu0 }
 0x2fa   : > { %v8665_v12 = vpop.f32.mrf.mxu1  ;;  %9756 = vst [vmem:[#allocation48_spill] sm:$0xff] %v8695_v31 }
 0x2fb   : > { %9744 = vst [vmem:[#allocation36_spill] sm:$0xff] %v8665_v12  ;;  %v1669_v12 = vadd.s32 16, %v8681_v54  ;;  %v1735_v39 = vand.u32 15, %v8681_v54  ;;  %v1670_v29 = vadd.s32 24, %v8681_v54  ;;  %v8708_v4 = vpop.f32.mrf.mxu0 }
 0x2fc   : > { %v8667_v51 = vpop.f32.mrf.mxu1  ;;  %9761 = vst [vmem:[#allocation51_spill] sm:$0xff] %v8708_v4 }
 0x2fd   : > { %9745 = vst [vmem:[#allocation37_spill] sm:$0xff] %v8667_v51  ;;  %vm2499_vm6 = vcmp.gt.s32.totalorder %v1735_v39, 0  ;;  %v1675_v39 = vadd.s32 64, %v8681_v54 }
 0x2fe   : > { %v8671_v49 = vpop.f32.mrf.mxu1 }
 0x2ff   : > { %9747 = vst [vmem:[#allocation39_spill] sm:$0xff] %v8671_v49  ;;  %v1668_v49 = vadd.s32 8, %v8681_v54  ;;  %v1791_v32 = vand.u32 15, %v1675_v39 }
 0x300   : > { %v8675_v60 = vpop.f32.mrf.mxu1 }
 0x301   : > { %9749 = vst [vmem:[#allocation41_spill] sm:$0xff] %v8675_v60  ;;  %v1749_v60 = vand.u32 15, %v1669_v12  ;;  %v3402_v12 = vsel %vm2499_vm6, %v8464_v1, 0.0  ;;  %vm8752_vm13 = vcmp.gt.s32.totalorder %v1791_v32, 0 }
 0x302   : > { %v8677_v47 = vpop.f32.mrf.mxu1  ;;  %v4177_v16 = vadd.f32 %v8532_v2, %v3402_v12  ;;  %v1677_v12 = vadd.s32 80, %v8681_v54 }
 0x303   : > { %9750 = vst [vmem:[#allocation42_spill] sm:$0xff] %v8677_v47  ;;  %v1671_v47 = vadd.s32 32, %v8681_v54  ;;  %vm8703_vm7 = vcmp.gt.s32.totalorder %v1749_v60, 0 }
 0x304   : > { %v8683_v19 = vpop.f32.mrf.mxu1  ;;  %v3404_v1 = vsel %vm8703_vm7, %v8471_v63, 0.0 }
 0x305   : > { %9752 = vst [vmem:[#allocation44_spill] sm:$0xff] %v8683_v19  ;;  %v1742_v19 = vand.u32 15, %v1668_v49  ;;  %v1756_v49 = vand.u32 15, %v1670_v29  ;;  %v8727_v29 = vld [vmem:[%s9707_s4] ss:$0 sm:$0xff] }
 0x306   : > { %v8686_v51 = vpop.f32.mrf.mxu1 }
 0x307   : > { %9753 = vst [vmem:[#allocation45_spill] sm:$0xff] %v8686_v51  ;;  %v1673_v51 = vadd.s32 48, %v8681_v54  ;;  %vm2564_vm8 = vcmp.lt.s32.totalorder %v1742_v19, 15  ;;  %vm2566_vm10 = vcmp.lt.s32.totalorder %v1756_v49, 15 }
 0x309   : > { %v8692_v44 = vpop.f32.mrf.mxu1  ;;  %v1777_v60 = vand.u32 15, %v1673_v51  ;;  %v1674_v51 = vadd.s32 56, %v8681_v54 }
 0x30a   : > { %9755 = vst [vmem:[#allocation47_spill] sm:$0xff] %v8692_v44  ;;  %v1763_v44 = vand.u32 15, %v1671_v47 }
 0x30b   : > { %v8697_v58 = vpop.f32.mrf.mxu1  ;;  %vm8734_vm11 = vcmp.gt.s32.totalorder %v1777_v60, 0  ;;  %v1685_v60 = vadd.s32 144, %v8681_v54 }
 0x30c   : > { %9757 = vst [vmem:[#allocation49_spill] sm:$0xff] %v8697_v58  ;;  %v1672_v58 = vadd.s32 40, %v8681_v54  ;;  %vm8720_vm9 = vcmp.gt.s32.totalorder %v1763_v44, 0  ;;  %v4180_v44 = vadd.f32 %v8536_v20, %v8467_v45  ;;  %v3408_v32 = vsel %vm8734_vm11, %v8485_v62, 0.0 }
 0x30d   : > { %v8701_v9 = vpop.f32.mrf.mxu1  ;;  %v1678_v62 = vadd.s32 88, %v8681_v54 }
 0x30e   : > { %9758 = vst [vmem:[#allocation50_spill] sm:$0xff] %v8701_v9  ;;  %v4178_v9 = vadd.f32 %v8526_v10, %v8460_v38  ;;  %v1770_v2 = vand.u32 15, %v1672_v58  ;;  %v3406_v58 = vsel %vm8720_vm9, %v8478_v55, 0.0  ;;  %v1679_v55 = vadd.s32 96, %v8681_v54 }
 0x30f   : > { %v8710_v31 = vpop.f32.mrf.mxu1 }
 0x310   : > { %9762 = vst [vmem:[#allocation52_spill] sm:$0xff] %v8710_v31  ;;  %v8729_v31 = vpop.f32.mrf.mxu0  ;;  %vm8747_vm12 = vcmp.lt.s32.totalorder %v1770_v2, 15 }
 0x311   : > { %v7162_v3 = vpop.f32.mrf.mxu1  ;;  %9765 = vst [vmem:[#allocation53_spill] sm:$0xff] %v8729_v31 }
 0x312   : > { %v5017_v19 = vsel %vm2564_vm8, %v7162_v3, 0.0  ;;  %v8745_v39 = vpop.f32.mrf.mxu0  ;;  %v1819_v3 = vand.u32 15, %v1679_v55  ;;  %v3410_v55 = vsel %vm8752_vm13, %v8492_v22, 0.0  ;;  %v1680_v22 = vadd.s32 104, %v8681_v54 }
 0x313   : > { %v5081_v38 = vadd.f32 %v5017_v19, %v4178_v9  ;;  %v4569_v10 = vpop.f32.mrf.mxu1  ;;  %v4179_v9 = vadd.f32 %v8542_v27, %v3404_v1  ;;  %v1784_v19 = vand.u32 15, %v1674_v51  ;;  %v4181_v51 = vadd.f32 %v8554_v24, %v3406_v58 }
 0x314   : > { %v5080_v63 = vadd.f32 %v4569_v10, %v4177_v16  ;;  %v1805_v10 = vand.u32 15, %v1677_v12  ;;  %v1681_v12 = vadd.s32 112, %v8681_v54  ;;  %vm8800_vm3 = vcmp.gt.s32.totalorder %v1819_v3, 0 }
 0x315   : > { %v5152_v4 = vadd.f32 %v8727_v29, %v5081_v38  ;;  %v7165_v31 = vpop.f32.mrf.mxu1  ;;  %v1676_v38 = vadd.s32 72, %v8681_v54  ;;  %vm8771_vm14 = vcmp.lt.s32.totalorder %v1784_v19, 15  ;;  %v1861_v27 = vand.u32 15, %v1685_v60 }
 0x316   : > { %v5151_v16 = vadd.f32 %v8727_v29, %v5080_v63  ;;  %v5019_v49 = vsel %vm2566_vm10, %v7165_v31, 0.0  ;;  %v4182_v31 = vadd.f32 %v8548_v25, %v8474_v46  ;;  %vm8779_vm15 = vcmp.gt.s32.totalorder %v1805_v10, 0 }
 0x317   : > { %v5083_v45 = vadd.f32 %v5019_v49, %v4180_v44  ;;  %v4579_v20 = vpop.f32.mrf.mxu1  ;;  %v5216_v63 = vmax.f32 %v5152_v4, 0.0  ;;  %v1798_v24 = vand.u32 15, %v1676_v38  ;;  %v4183_v38 = vadd.f32 %v8564_v28, %v3408_v32 }
 0x318   : > { %v5215_v1 = vmax.f32 %v5151_v16, 0.0  ;;  %v5082_v47 = vadd.f32 %v4579_v20, %v4179_v9  ;;  %v8768_v9 = vpop.f32.mrf.mxu0  ;;  %v4184_v20 = vadd.f32 %v8558_v14, %v8481_v48  ;;  %v1812_v28 = vand.u32 15, %v1678_v62 }
 0x319   : > { %v5154_v2 = vadd.f32 %v8727_v29, %v5083_v45  ;;  %v7168_v44 = vpop.f32.mrf.mxu1  ;;  %vm8795_vm1 = vcmp.lt.s32.totalorder %v1798_v24, 15  ;;  %v4185_v24 = vadd.f32 %v8576_v5, %v3410_v55  ;;  %v3412_v62 = vsel %vm8779_vm15, %v8499_v17, 0.0 }
 0x31a   : > { %v5153_v49 = vadd.f32 %v8727_v29, %v5082_v47  ;;  %v5021_v16 = vsel %vm8747_vm12, %v7168_v44, 0.0  ;;  %7258 = vmatprep.mubr.msk.f32.mxu0 %vm1023_vm2, %v5215_v1  ;;  %v8792_v48 = vpop.f32.mrf.mxu0  ;;  %v1833_v44 = vand.u32 15, %v1681_v12  ;;  %vm8819_vm4 = vcmp.lt.s32.totalorder %v1812_v28, 15 }
 0x31b   : > { %v5085_v46 = vadd.f32 %v5021_v16, %v4182_v31  ;;  %v4589_v25 = vpop.f32.mrf.mxu1  ;;  %7259 = vmatmul.mubr.msk.f32.vlgmr.msra.gmra.mxu0 %vm1023_vm2, %v5216_v63  ;;  %v5218_v1 = vmax.f32 %v5154_v2, 0.0  ;;  %v1683_v16 = vadd.s32 128, %v8681_v54  ;;  %v1826_v5 = vand.u32 15, %v1680_v22 }
 0x31c   : > { %v5217_v58 = vmax.f32 %v5153_v49, 0.0  ;;  %v5084_v45 = vadd.f32 %v4589_v25, %v4181_v51  ;;  %v4186_v49 = vadd.f32 %v8570_v56, %v8488_v33  ;;  %v8816_v33 = vpop.f32.mrf.mxu0  ;;  %v1682_v17 = vadd.s32 120, %v8681_v54 }
 0x31d   : > { %v5156_v19 = vadd.f32 %v8727_v29, %v5085_v46  ;;  %v7171_v47 = vpop.f32.mrf.mxu1  ;;  %vm8824_vm5 = vcmp.gt.s32.totalorder %v1833_v44, 0  ;;  %vm8843_vm6 = vcmp.lt.s32.totalorder %v1826_v5, 15  ;;  %vm8872_vm9 = vcmp.gt.s32.totalorder %v1861_v27, 0 }
 0x31e   : > { %v5155_v31 = vadd.f32 %v8727_v29, %v5084_v45  ;;  %v5023_v63 = vsel %vm8771_vm14, %v7171_v47, 0.0  ;;  %7261 = vmatprep.mubr.msk.f32.mxu0 %vm1023_vm2, %v5217_v58  ;;  %v4188_v47 = vadd.f32 %v8580_v43, %v8495_v35  ;;  %v8840_v22 = vpop.f32.mrf.mxu0 }
 0x31f   : > { %v5087_v14 = vadd.f32 %v5023_v63, %v4184_v20  ;;  %v4599_v10 = vpop.f32.mrf.mxu1  ;;  %7262 = vmatmul.mubr.msk.f32.gmra.mxu0 %vm1023_vm2, %v5218_v1  ;;  %v5220_v46 = vmax.f32 %v5156_v19, 0.0 }
 0x320   : > { %v5219_v51 = vmax.f32 %v5155_v31, 0.0  ;;  %v5086_v32 = vadd.f32 %v4599_v10, %v4183_v38  ;;  %v1847_v38 = vand.u32 15, %v1683_v16  ;;  %v3414_v10 = vsel %vm8800_vm3, %v8506_v6, 0.0 }
 0x321   : > { %v5158_v25 = vadd.f32 %v8727_v29, %v5087_v14  ;;  %v7174_v4 = vpop.f32.mrf.mxu1  ;;  %v4187_v14 = vadd.f32 %v8588_v50, %v3412_v62  ;;  %v1840_v50 = vand.u32 15, %v1682_v17  ;;  %v1684_v6 = vadd.s32 136, %v8681_v54 }
 0x322   : > { %v5157_v3 = vadd.f32 %v8727_v29, %v5086_v32  ;;  %v5025_v12 = vsel %vm8795_vm1, %v7174_v4, 0.0  ;;  %7264 = vmatprep.mubr.msk.f32.mxu0 %vm1023_vm2, %v5219_v51  ;;  %v1687_v51 = vadd.s32 160, %v8681_v54  ;;  %v4190_v16 = vadd.f32 %v8593_v37, %v8502_v23  ;;  %v8864_v23 = vpop.f32.mrf.mxu0 }
 0x323   : > { %v5089_v56 = vadd.f32 %v5025_v12, %v4186_v49  ;;  %v4609_v58 = vpop.f32.mrf.mxu1  ;;  %7265 = vmatmul.mubr.msk.f32.gmra.mxu0 %vm1023_vm2, %v5220_v46  ;;  %v5222_v55 = vmax.f32 %v5158_v25, 0.0  ;;  %vm8851_vm7 = vcmp.gt.s32.totalorder %v1847_v38, 0  ;;  %v4189_v62 = vadd.f32 %v8599_v8, %v3414_v10 }
 0x324   : > { %v5221_v1 = vmax.f32 %v5157_v3, 0.0  ;;  %v5088_v19 = vadd.f32 %v4609_v58, %v4185_v24  ;;  %v3416_v3 = vsel %vm8824_vm5, %v8513_v34, 0.0  ;;  %vm8867_vm8 = vcmp.lt.s32.totalorder %v1840_v50, 15 }
 0x325   : > { %v5160_v31 = vadd.f32 %v8727_v29, %v5089_v56  ;;  %v7177_v63 = vpop.f32.mrf.mxu1  ;;  %v1854_v8 = vand.u32 15, %v1684_v6  ;;  %v1686_v34 = vadd.s32 152, %v8681_v54  ;;  %v1875_v17 = vand.u32 15, %v1687_v51 }
 0x326   : > { %v5159_v2 = vadd.f32 %v8727_v29, %v5088_v19  ;;  %v5027_v28 = vsel %vm8819_vm4, %v7177_v63, 0.0  ;;  %7267 = vmatprep.mubr.msk.f32.mxu0 %vm1023_vm2, %v5221_v1  ;;  %v4192_v1 = vadd.f32 %v8603_v42, %v8509_v52  ;;  %v1689_v19 = vadd.s32 176, %v8681_v54  ;;  %v8888_v52 = vpop.f32.mrf.mxu0 }
 0x327   : > { %v5091_v35 = vadd.f32 %v5027_v28, %v4188_v47  ;;  %v4619_v43 = vpop.f32.mrf.mxu1  ;;  %7268 = vmatmul.mubr.msk.f32.gmra.mxu0 %vm1023_vm2, %v5222_v55  ;;  %v5224_v25 = vmax.f32 %v5160_v31, 0.0  ;;  %v4191_v31 = vadd.f32 %v8609_v30, %v3416_v3  ;;  %v3418_v63 = vsel %vm8851_vm7, %v8520_v11, 0.0 }
 0x328   : > { %v5223_v32 = vmax.f32 %v5159_v2, 0.0  ;;  %v5090_v49 = vadd.f32 %v4619_v43, %v4187_v14  ;;  %vm8891_vm10 = vcmp.lt.s32.totalorder %v1854_v8, 15  ;;  %v1868_v30 = vand.u32 15, %v1686_v34 }
 0x329   : > { %v5162_v4 = vadd.f32 %v8727_v29, %v5091_v35  ;;  %v7180_v24 = vpop.f32.mrf.mxu1  ;;  %v1688_v11 = vadd.s32 168, %v8681_v54  ;;  %vm8896_vm11 = vcmp.gt.s32.totalorder %v1875_v17, 0  ;;  %v1691_v43 = vadd.s32 192, %v8681_v54 }
 0x32a   : > { %v5161_v12 = vadd.f32 %v8727_v29, %v5090_v49  ;;  %v5029_v56 = vsel %vm8843_vm6, %v7180_v24, 0.0  ;;  %7270 = vmatprep.mubr.msk.f32.mxu0 %vm1023_vm2, %v5223_v32  ;;  %v4194_v6 = vadd.f32 %v8613_v0, %v8516_v59  ;;  %v1889_v27 = vand.u32 15, %v1689_v19  ;;  %v8912_v24 = vpop.f32.mrf.mxu0 }
 0x32b   : > { %v5093_v37 = vadd.f32 %v5029_v56, %v4190_v16  ;;  %v4629_v58 = vpop.f32.mrf.mxu1  ;;  %7271 = vmatmul.mubr.msk.f32.gmra.mxu0 %vm1023_vm2, %v5224_v25  ;;  %v5226_v47 = vmax.f32 %v5162_v4, 0.0  ;;  %v4193_v16 = vadd.f32 %v8619_v61, %v3418_v63  ;;  %v3420_v46 = vsel %vm8872_vm9, %v8529_v41, 0.0 }
 0x32c   : > { %v5225_v20 = vmax.f32 %v5161_v12, 0.0  ;;  %v5092_v60 = vadd.f32 %v4629_v58, %v4189_v62  ;;  %vm8915_vm12 = vcmp.lt.s32.totalorder %v1868_v30, 15  ;;  %v1882_v61 = vand.u32 15, %v1688_v11  ;;  %v9809_v62 = vld [vmem:[#allocation4_spill] sm:$0xff] }
 0x32d   : > { %v5164_v38 = vadd.f32 %v8727_v29, %v5093_v37  ;;  %v7183_v55 = vpop.f32.mrf.mxu1  ;;  %v1690_v41 = vadd.s32 184, %v8681_v54  ;;  %v1903_v3 = vand.u32 15, %v1691_v43  ;;  %v1693_v12 = vadd.s32 208, %v8681_v54 }
 0x32e   : > { %v5163_v14 = vadd.f32 %v8727_v29, %v5092_v60  ;;  %v5031_v10 = vsel %vm8867_vm8, %v7183_v55, 0.0  ;;  %7273 = vmatprep.mubr.msk.f32.mxu0 %vm1023_vm2, %v5225_v20  ;;  %v4196_v58 = vadd.f32 %v8623_v36, %v8523_v7  ;;  %vm8923_vm13 = vcmp.gt.s32.totalorder %v1889_v27, 0  ;;  %v8936_v7 = vpop.f32.mrf.mxu0 }
 0x32f   : > { %v5095_v42 = vadd.f32 %v5031_v10, %v4192_v1  ;;  %v4639_v2 = vpop.f32.mrf.mxu1  ;;  %7274 = vmatmul.mubr.msk.f32.gmra.mxu0 %vm1023_vm2, %v5226_v47  ;;  %v5228_v51 = vmax.f32 %v5164_v38, 0.0  ;;  %v4195_v17 = vadd.f32 %v8629_v57, %v3420_v46  ;;  %v3422_v20 = vsel %vm8896_vm11, %v8540_v40, 0.0  ;;  %v9817_v38 = vld [vmem:[#allocation6_spill] sm:$0xff] }
 0x330   : > { %v5227_v44 = vmax.f32 %v5163_v14, 0.0  ;;  %v5094_v50 = vadd.f32 %v4639_v2, %v4191_v31  ;;  %vm8939_vm14 = vcmp.lt.s32.totalorder %v1882_v61, 15  ;;  %v1896_v57 = vand.u32 15, %v1690_v41 }
 0x331   : > { %v5166_v32 = vadd.f32 %v8727_v29, %v5095_v42  ;;  %v7186_v49 = vpop.f32.mrf.mxu1  ;;  %v1692_v40 = vadd.s32 200, %v8681_v54  ;;  %vm8944_vm15 = vcmp.gt.s32.totalorder %v1903_v3, 0  ;;  %v1917_v55 = vand.u32 15, %v1693_v12 }
 0x332   : > { %v5165_v25 = vadd.f32 %v8727_v29, %v5094_v50  ;;  %v5033_v4 = vsel %vm8891_vm10, %v7186_v49, 0.0  ;;  %7276 = vmatprep.mubr.msk.f32.mxu0 %vm1023_vm2, %v5227_v44  ;;  %v4198_v14 = vadd.f32 %v8633_v26, %v8534_v18  ;;  %v1695_v10 = vadd.s32 224, %v8681_v54  ;;  %v8960_v18 = vpop.f32.mrf.mxu0  ;;  %v9823_v50 = vld [vmem:[#allocation35_spill] sm:$0xff] }
 0x333   : > { %v5097_v59 = vadd.f32 %v5033_v4, %v4194_v6  ;;  %v4649_v0 = vpop.f32.mrf.mxu1  ;;  %7277 = vmatmul.mubr.msk.f32.gmra.mxu0 %vm1023_vm2, %v5228_v51  ;;  %v5230_v8 = vmax.f32 %v5166_v32, 0.0  ;;  %v4197_v30 = vadd.f32 %v8639_v21, %v3422_v20  ;;  %v3424_v11 = vsel %vm8923_vm13, %v8551_v13, 0.0  ;;  %v9813_v20 = vld [vmem:[#allocation30_spill] sm:$0xff] }
 0x334   : > { %v5229_v56 = vmax.f32 %v5165_v25, 0.0  ;;  %v5096_v37 = vadd.f32 %v4649_v0, %v4193_v16  ;;  %vm8963_vm1 = vcmp.lt.s32.totalorder %v1896_v57, 15  ;;  %v1910_v21 = vand.u32 15, %v1692_v40  ;;  %v8984_v12 = vpop.f32.mrf.mxu0  ;;  %v9816_v57 = vld [vmem:[#allocation33_spill] sm:$0xff] }
 0x335   : > { %v5168_v34 = vadd.f32 %v8727_v29, %v5097_v59  ;;  %v7189_v5 = vpop.f32.mrf.mxu1  ;;  %v1694_v13 = vadd.s32 216, %v8681_v54  ;;  %vm8968_vm3 = vcmp.gt.s32.totalorder %v1917_v55, 0  ;;  %v1697_v27 = vadd.s32 240, %v8681_v54  ;;  %v9808_v59 = vld [vmem:[#allocation28_spill] sm:$0xff] }
 0x336   : > { %v5167_v60 = vadd.f32 %v8727_v29, %v5096_v37  ;;  %v5035_v1 = vsel %vm8915_vm12, %v7189_v5, 0.0  ;;  %7279 = vmatprep.mubr.msk.f32.mxu0 %vm1023_vm2, %v5229_v56  ;;  %v4200_v49 = vadd.f32 %v8643_v15, %v8545_v53  ;;  %v1931_v16 = vand.u32 15, %v1695_v10 }
 0x337   : > { %v5099_v36 = vadd.f32 %v5035_v1, %v4196_v58  ;;  %v4659_v19 = vpop.f32.mrf.mxu1  ;;  %7280 = vmatmul.mubr.msk.f32.gmra.mxu0 %vm1023_vm2, %v5230_v8  ;;  %v5232_v42 = vmax.f32 %v5168_v34, 0.0  ;;  %v4199_v0 = vadd.f32 %v9808_v59, %v3424_v11  ;;  %v3426_v61 = vsel %vm8944_vm15, %v9809_v62, 0.0  ;;  %v9836_v11 = vld [vmem:[#allocation9_spill] sm:$0xff] }
 0x338   : > { %v5231_v31 = vmax.f32 %v5167_v60, 0.0  ;;  %v5098_v63 = vadd.f32 %v4659_v19, %v4195_v17  ;;  %vm8987_vm4 = vcmp.lt.s32.totalorder %v1910_v21, 15  ;;  %v1924_v37 = vand.u32 15, %v1694_v13  ;;  %v9812_v17 = vld [vmem:[#allocation3_spill] sm:$0xff] }
 0x339   : > { %v5170_v2 = vadd.f32 %v8727_v29, %v5099_v36  ;;  %v7192_v28 = vpop.f32.mrf.mxu1  ;;  %v1696_v58 = vadd.s32 232, %v8681_v54  ;;  %v1945_v45 = vand.u32 15, %v1697_v27  ;;  %v1699_v8 = vadd.s32 256, %v8681_v54 }
 0x33a   : > { %v5169_v35 = vadd.f32 %v8727_v29, %v5098_v63  ;;  %v5037_v43 = vsel %vm8939_vm14, %v7192_v28, 0.0  ;;  %7282 = vmatprep.mubr.msk.f32.mxu0 %vm1023_vm2, %v5231_v31  ;;  %v4202_v60 = vadd.f32 %v9813_v20, %v9812_v17  ;;  %vm8995_vm5 = vcmp.gt.s32.totalorder %v1931_v16, 0  ;;  %v9825_v16 = vld [vmem:[#allocation8_spill] sm:$0xff] }
 0x33b   : > { %v5101_v26 = vadd.f32 %v5037_v43, %v4198_v14  ;;  %v4669_v44 = vpop.f32.mrf.mxu1  ;;  %7283 = vmatmul.mubr.msk.f32.gmra.mxu0 %vm1023_vm2, %v5232_v42  ;;  %v5234_v46 = vmax.f32 %v5170_v2, 0.0  ;;  %v4201_v40 = vadd.f32 %v9816_v57, %v3426_v61  ;;  %v3428_v55 = vsel %vm8968_vm3, %v9817_v38, 0.0  ;;  %v9008_v14 = vpop.f32.mrf.mxu0 }
 0x33c   : > { %v5233_v51 = vmax.f32 %v5169_v35, 0.0  ;;  %v5100_v32 = vadd.f32 %v4669_v44, %v4197_v30  ;;  %vm9011_vm6 = vcmp.lt.s32.totalorder %v1924_v37, 15  ;;  %v1938_v28 = vand.u32 15, %v1696_v58  ;;  %v9822_v44 = vld [vmem:[#allocation5_spill] sm:$0xff]  ;;  %v9830_v58 = vld [vmem:[#allocation7_spill] sm:$0xff] }
 0x33d   : > { %v5172_v25 = vadd.f32 %v8727_v29, %v5101_v26  ;;  %v7195_v4 = vpop.f32.mrf.mxu1  ;;  %v1698_v30 = vadd.s32 248, %v8681_v54  ;;  %vm9016_vm7 = vcmp.gt.s32.totalorder %v1945_v45, 0  ;;  %v1959_v35 = vand.u32 15, %v1699_v8  ;;  %v9032_v59 = vpop.f32.mrf.mxu0  ;;  %v9831_v45 = vld [vmem:[#allocation40_spill] sm:$0xff] }
 0x33e   : > { %v5171_v41 = vadd.f32 %v8727_v29, %v5100_v32  ;;  %v5039_v3 = vsel %vm8963_vm1, %v7195_v4, 0.0  ;;  %7285 = vmatprep.mubr.msk.f32.mxu0 %vm1023_vm2, %v5233_v51  ;;  %v4204_v21 = vadd.f32 %v9823_v50, %v9822_v44  ;;  %v1701_v13 = vadd.s32 272, %v8681_v54  ;;  %v9824_v32 = vld [vmem:[#allocation38_spill] sm:$0xff] }
 0x33f   : > { %v5103_v53 = vadd.f32 %v5039_v3, %v4200_v49  ;;  %v4679_v15 = vpop.f32.mrf.mxu1  ;;  %7286 = vmatmul.mubr.msk.f32.gmra.mxu0 %vm1023_vm2, %v5234_v46  ;;  %v5236_v36 = vmax.f32 %v5172_v25, 0.0  ;;  %v4203_v49 = vadd.f32 %v9824_v32, %v3428_v55  ;;  %v3430_v46 = vsel %vm8995_vm5, %v9825_v16, 0.0 }
 0x340   : > { %v5235_v34 = vmax.f32 %v5171_v41, 0.0  ;;  %v5102_v5 = vadd.f32 %v4679_v15, %v4199_v0  ;;  %vm9035_vm8 = vcmp.lt.s32.totalorder %v1938_v28, 15  ;;  %v1952_v41 = vand.u32 15, %v1698_v30 }
 0x341   : > { %v5174_v19 = vadd.f32 %v8727_v29, %v5103_v53  ;;  %v7198_v47 = vpop.f32.mrf.mxu1  ;;  %v1700_v3 = vadd.s32 264, %v8681_v54  ;;  %vm9040_vm9 = vcmp.gt.s32.totalorder %v1959_v35, 0  ;;  %v1703_v15 = vadd.s32 288, %v8681_v54  ;;  %v9837_v35 = vld [vmem:[#allocation46_spill] sm:$0xff] }
 0x342   : > { %v5173_v31 = vadd.f32 %v8727_v29, %v5102_v5  ;;  %v5041_v63 = vsel %vm8987_vm4, %v7198_v47, 0.0  ;;  %7288 = vmatprep.mubr.msk.f32.mxu0 %vm1023_vm2, %v5235_v34  ;;  %v4206_v8 = vadd.f32 %v9831_v45, %v9830_v58  ;;  %v1973_v34 = vand.u32 15, %v1701_v13  ;;  %v9840_v13 = vld [vmem:[#allocation48_spill] sm:$0xff] }
 0x343   : > { %v5105_v10 = vadd.f32 %v5041_v63, %v4202_v60  ;;  %v4689_v42 = vpop.f32.mrf.mxu1  ;;  %7289 = vmatmul.mubr.msk.f32.gmra.mxu0 %vm1023_vm2, %v5236_v36  ;;  %v5238_v6 = vmax.f32 %v5174_v19, 0.0  ;;  %v9832_v60 = vld [vmem:[#allocation43_spill] sm:$0xff]  ;;  %v9833_v36 = vld [vmem:[#allocation10_spill] sm:$0xff]  ;;  %vm9059_vm10 = vcmp.lt.s32.totalorder %v1952_v41, 15  ;;  %v1966_v63 = vand.u32 15, %v1700_v3 }
 0x344   : > { %v5237_v43 = vmax.f32 %v5173_v31, 0.0  ;;  %v5104_v26 = vadd.f32 %v4689_v42, %v4201_v40  ;;  %v4205_v1 = vadd.f32 %v9832_v60, %v3430_v46  ;;  %v3432_v19 = vsel %vm9016_vm7, %v9833_v36, 0.0  ;;  %v9056_v40 = vpop.f32.mrf.mxu0 }
 0x345   : > { %v5176_v27 = vadd.f32 %v8727_v29, %v5105_v10  ;;  %v7201_v51 = vpop.f32.mrf.mxu1  ;;  %v1702_v10 = vadd.s32 280, %v8681_v54  ;;  %v1987_v42 = vand.u32 15, %v1703_v15  ;;  %v1705_v2 = vadd.s32 304, %v8681_v54  ;;  %v9846_v15 = vld [vmem:[#allocation11_spill] sm:$0xff] }
 0x346   : > { %v5175_v25 = vadd.f32 %v8727_v29, %v5104_v26  ;;  %v5043_v4 = vsel %vm9011_vm6, %v7201_v51, 0.0  ;;  %7291 = vmatprep.mubr.msk.f32.mxu0 %vm1023_vm2, %v5237_v43  ;;  %v4208_v43 = vadd.f32 %v9837_v35, %v9836_v11  ;;  %vm9067_vm11 = vcmp.gt.s32.totalorder %v1973_v34, 0  ;;  %v9080_v16 = vpop.f32.mrf.mxu0 }
 0x347   : > { %v5107_v0 = vadd.f32 %v5043_v4, %v4204_v21  ;;  %v4699_v62 = vpop.f32.mrf.mxu1  ;;  %7292 = vmatmul.mubr.msk.f32.gmra.mxu0 %vm1023_vm2, %v5238_v6  ;;  %v5240_v5 = vmax.f32 %v5176_v27, 0.0  ;;  %v4207_v6 = vadd.f32 %v9840_v13, %v3432_v19  ;;  %v9841_v27 = vld [vmem:[#allocation12_spill] sm:$0xff]  ;;  %vm9083_vm12 = vcmp.lt.s32.totalorder %v1966_v63, 15 }
 0x348   : > { %v5239_v56 = vmax.f32 %v5175_v25, 0.0  ;;  %v5106_v37 = vadd.f32 %v4699_v62, %v4203_v49  ;;  %v3434_v51 = vsel %vm9040_vm9, %v9841_v27, 0.0  ;;  %v1704_v62 = vadd.s32 296, %v8681_v54  ;;  %v9104_v19 = vpop.f32.mrf.mxu0 }
 0x349   : > { %v5178_v17 = vadd.f32 %v8727_v29, %v5107_v0  ;;  %v7204_v20 = vpop.f32.mrf.mxu1  ;;  %v1980_v0 = vand.u32 15, %v1702_v10  ;;  %vm9088_vm13 = vcmp.gt.s32.totalorder %v1987_v42, 0  ;;  %v2001_v41 = vand.u32 15, %v1705_v2 }
 0x34a   : > { %v5177_v47 = vadd.f32 %v8727_v29, %v5106_v37  ;;  %v5045_v57 = vsel %vm9035_vm8, %v7204_v20, 0.0  ;;  %7294 = vmatprep.mubr.msk.f32.mxu0 %vm1023_vm2, %v5239_v56  ;;  %v9847_v56 = vld [vmem:[#allocation51_spill] sm:$0xff]  ;;  %v1707_v58 = vadd.s32 320, %v8681_v54  ;;  %v9849_v20 = vld [vmem:[#allocation14_spill] sm:$0xff]  ;;  %v1706_v31 = vadd.s32 312, %v8681_v54  ;;  %v9128_v27 = vpop.f32.mrf.mxu0 }
 0x34b   : > { %v5109_v38 = vadd.f32 %v5045_v57, %v4206_v8  ;;  %v4709_v55 = vpop.f32.mrf.mxu1  ;;  %7295 = vmatmul.mubr.msk.f32.gmra.mxu0 %vm1023_vm2, %v5240_v5  ;;  %v5242_v44 = vmax.f32 %v5178_v17, 0.0  ;;  %v4210_v37 = vadd.f32 %v9847_v56, %v9846_v15  ;;  %v9848_v5 = vld [vmem:[#allocation53_spill] sm:$0xff]  ;;  %v3436_v60 = vsel %vm9067_vm11, %v9849_v20, 0.0 }
 0x34c   : > { %v5241_v28 = vmax.f32 %v5177_v47, 0.0  ;;  %v5108_v30 = vadd.f32 %v4709_v55, %v4205_v1  ;;  %v4209_v17 = vadd.f32 %v9848_v5, %v3434_v51  ;;  %vm9107_vm14 = vcmp.lt.s32.totalorder %v1980_v0, 15 }
 0x34d   : > { %v5180_v50 = vadd.f32 %v8727_v29, %v5109_v38  ;;  %v7207_v21 = vpop.f32.mrf.mxu1  ;;  %v1994_v55 = vand.u32 15, %v1704_v62  ;;  %vm9112_vm15 = vcmp.gt.s32.totalorder %v2001_v41, 0  ;;  %v1709_v10 = vadd.s32 336, %v8681_v54  ;;  %v9858_v62 = vld [vmem:[#allocation15_spill] sm:$0xff] }
 0x34e   : > { %v5179_v32 = vadd.f32 %v8727_v29, %v5108_v30  ;;  %v5047_v49 = vsel %vm9059_vm10, %v7207_v21, 0.0  ;;  %7297 = vmatprep.mubr.msk.f32.mxu0 %vm1023_vm2, %v5241_v28  ;;  %v9854_v28 = vld [vmem:[#allocation13_spill] sm:$0xff]  ;;  %v2015_v11 = vand.u32 15, %v1707_v58  ;;  %v4214_v61 = vadd.f32 %v8792_v48, %v9858_v62  ;;  %v9152_v48 = vpop.f32.mrf.mxu0 }
 0x34f   : > { %v5111_v46 = vadd.f32 %v5047_v49, %v4208_v43  ;;  %v4719_v25 = vpop.f32.mrf.mxu1  ;;  %7298 = vmatmul.mubr.msk.f32.gmra.mxu0 %vm1023_vm2, %v5242_v44  ;;  %v5244_v45 = vmax.f32 %v5180_v50, 0.0  ;;  %v4212_v30 = vadd.f32 %v8745_v39, %v9854_v28  ;;  %v4211_v44 = vadd.f32 %v8768_v9, %v3436_v60  ;;  %v9855_v50 = vld [vmem:[#allocation16_spill] sm:$0xff] }
 0x350   : > { %v5243_v3 = vmax.f32 %v5179_v32, 0.0  ;;  %v5110_v53 = vadd.f32 %v4719_v25, %v4207_v6  ;;  %v3438_v21 = vsel %vm9088_vm13, %v9855_v50, 0.0  ;;  %vm9131_vm1 = vcmp.lt.s32.totalorder %v1994_v55, 15  ;;  %v9885_v50 = vld [vmem:[#allocation26_spill] sm:$0xff] }
 0x351   : > { %v5182_v8 = vadd.f32 %v8727_v29, %v5111_v46  ;;  %v7210_v34 = vpop.f32.mrf.mxu1  ;;  %v2008_v9 = vand.u32 15, %v1706_v31  ;;  %v1708_v49 = vadd.s32 328, %v8681_v54  ;;  %v2029_v46 = vand.u32 15, %v1709_v10 }
 0x352   : > { %v5181_v1 = vadd.f32 %v8727_v29, %v5110_v53  ;;  %v5049_v36 = vsel %vm9083_vm12, %v7210_v34, 0.0  ;;  %7300 = vmatprep.mubr.msk.f32.mxu0 %vm1023_vm2, %v5243_v3  ;;  %v1711_v25 = vadd.s32 352, %v8681_v54  ;;  %vm9139_vm3 = vcmp.gt.s32.totalorder %v2015_v11, 0 }
 0x353   : > { %v5113_v47 = vadd.f32 %v5049_v36, %v4210_v37  ;;  %v4729_v57 = vpop.f32.mrf.mxu1  ;;  %7301 = vmatmul.mubr.msk.f32.gmra.mxu0 %vm1023_vm2, %v5244_v45  ;;  %v5246_v35 = vmax.f32 %v5182_v8, 0.0  ;;  %v4213_v56 = vadd.f32 %v8816_v33, %v3438_v21  ;;  %v9861_v37 = vld [vmem:[#allocation18_spill] sm:$0xff]  ;;  %vm9155_vm4 = vcmp.lt.s32.totalorder %v2008_v9, 15 }
 0x354   : > { %v5245_v42 = vmax.f32 %v5181_v1, 0.0  ;;  %v5112_v2 = vadd.f32 %v4729_v57, %v4209_v17  ;;  %v3440_v58 = vsel %vm9112_vm15, %v9861_v37, 0.0  ;;  %v2022_v33 = vand.u32 15, %v1708_v49  ;;  %v9866_v57 = vld [vmem:[#allocation17_spill] sm:$0xff] }
 0x355   : > { %v5184_v43 = vadd.f32 %v8727_v29, %v5113_v47  ;;  %v7213_v26 = vpop.f32.mrf.mxu1  ;;  %v1710_v20 = vadd.s32 344, %v8681_v54  ;;  %vm9160_vm5 = vcmp.gt.s32.totalorder %v2029_v46, 0  ;;  %v2043_v1 = vand.u32 15, %v1711_v25 }
 0x356   : > { %v5183_v13 = vadd.f32 %v8727_v29, %v5112_v2  ;;  %v5051_v6 = vsel %vm9107_vm14, %v7213_v26, 0.0  ;;  %7303 = vmatprep.mubr.msk.f32.mxu0 %vm1023_vm2, %v5245_v42  ;;  %v4216_v38 = vadd.f32 %v8840_v22, %v9866_v57  ;;  %v1713_v55 = vadd.s32 368, %v8681_v54  ;;  %v9867_v2 = vld [vmem:[#allocation20_spill] sm:$0xff]  ;;  %v9176_v22 = vpop.f32.mrf.mxu0 }
 0x357   : > { %v5115_v39 = vadd.f32 %v5051_v6, %v4212_v30  ;;  %v4739_v51 = vpop.f32.mrf.mxu1  ;;  %7304 = vmatmul.mubr.msk.f32.gmra.mxu0 %vm1023_vm2, %v5246_v35  ;;  %v5248_v3 = vmax.f32 %v5184_v43, 0.0  ;;  %v4215_v42 = vadd.f32 %v8864_v23, %v3440_v58  ;;  %v3442_v28 = vsel %vm9139_vm3, %v9867_v2, 0.0 }
 0x358   : > { %v5247_v4 = vmax.f32 %v5183_v13, 0.0  ;;  %v5114_v0 = vadd.f32 %v4739_v51, %v4211_v44  ;;  %vm9179_vm6 = vcmp.lt.s32.totalorder %v2022_v33, 15  ;;  %v2036_v23 = vand.u32 15, %v1710_v20  ;;  %v9200_v41 = vpop.f32.mrf.mxu0 }
 0x359   : > { %v5186_v53 = vadd.f32 %v8727_v29, %v5115_v39  ;;  %v7216_v15 = vpop.f32.mrf.mxu1  ;;  %v1712_v44 = vadd.s32 360, %v8681_v54  ;;  %vm9184_vm7 = vcmp.gt.s32.totalorder %v2043_v1, 0  ;;  %v1715_v21 = vadd.s32 384, %v8681_v54  ;;  %v9872_v39 = vld [vmem:[#allocation19_spill] sm:$0xff]  ;;  %v9879_v1 = vld [vmem:[#allocation24_spill] sm:$0xff] }
 0x35a   : > { %v5185_v45 = vadd.f32 %v8727_v29, %v5114_v0  ;;  %v5053_v8 = vsel %vm9131_vm1, %v7216_v15, 0.0  ;;  %7306 = vmatprep.mubr.msk.f32.mxu0 %vm1023_vm2, %v5247_v4  ;;  %v4218_v51 = vadd.f32 %v8888_v52, %v9872_v39  ;;  %v2057_v32 = vand.u32 15, %v1713_v55  ;;  %v9873_v4 = vld [vmem:[#allocation22_spill] sm:$0xff] }
 0x35b   : > { %v5117_v34 = vadd.f32 %v5053_v8, %v4214_v61  ;;  %v4749_v5 = vpop.f32.mrf.mxu1  ;;  %7307 = vmatmul.mubr.msk.f32.gmra.mxu0 %vm1023_vm2, %v5248_v3  ;;  %v5250_v31 = vmax.f32 %v5186_v53, 0.0  ;;  %v4217_v25 = vadd.f32 %v8912_v24, %v3442_v28  ;;  %v3444_v0 = vsel %vm9160_vm5, %v9873_v4, 0.0  ;;  %v9876_v8 = vld [vmem:[#allocation21_spill] sm:$0xff] }
 0x35c   : > { %v5249_v36 = vmax.f32 %v5185_v45, 0.0  ;;  %v5116_v47 = vadd.f32 %v4749_v5, %v4213_v56  ;;  %vm9203_vm8 = vcmp.lt.s32.totalorder %v2036_v23, 15  ;;  %v2050_v24 = vand.u32 15, %v1712_v44 }
 0x35d   : > { %v5188_v63 = vadd.f32 %v8727_v29, %v5117_v34  ;;  %v7219_v10 = vpop.f32.mrf.mxu1  ;;  %v1714_v15 = vadd.s32 376, %v8681_v54  ;;  %v2071_v56 = vand.u32 15, %v1715_v21  ;;  %v1717_v37 = vadd.s32 400, %v8681_v54 }
 0x35e   : > { %v5187_v30 = vadd.f32 %v8727_v29, %v5116_v47  ;;  %v5055_v11 = vsel %vm9155_vm4, %v7219_v10, 0.0  ;;  %7309 = vmatprep.mubr.msk.f32.mxu0 %vm1023_vm2, %v5249_v36  ;;  %v4220_v34 = vadd.f32 %v8936_v7, %v9876_v8  ;;  %vm9211_vm9 = vcmp.gt.s32.totalorder %v2057_v32, 0  ;;  %v9224_v7 = vpop.f32.mrf.mxu0  ;;  %v9903_v32 = vld [vmem:[#allocation36_spill] sm:$0xff] }
 0x35f   : > { %v5119_v35 = vadd.f32 %v5055_v11, %v4216_v38  ;;  %v4759_v43 = vpop.f32.mrf.mxu1  ;;  %7310 = vmatmul.mubr.msk.f32.gmra.mxu0 %vm1023_vm2, %v5250_v31  ;;  %v5252_v9 = vmax.f32 %v5188_v63, 0.0  ;;  %v4219_v60 = vadd.f32 %v8960_v18, %v3444_v0  ;;  %v3446_v36 = vsel %vm9184_vm7, %v9879_v1, 0.0  ;;  %v9890_v0 = vld [vmem:[#allocation25_spill] sm:$0xff]  ;;  %v9894_v1 = vld [vmem:[#allocation27_spill] sm:$0xff] }
 0x360   : > { %v5251_v13 = vmax.f32 %v5187_v30, 0.0  ;;  %v5118_v6 = vadd.f32 %v4759_v43, %v4215_v42  ;;  %vm9227_vm10 = vcmp.lt.s32.totalorder %v2050_v24, 15  ;;  %v2064_v18 = vand.u32 15, %v1714_v15  ;;  %v9884_v30 = vld [vmem:[#allocation23_spill] sm:$0xff]  ;;  %v9891_v15 = vld [vmem:[#allocation29_spill] sm:$0xff] }
 0x361   : > { %v5190_v49 = vadd.f32 %v8727_v29, %v5119_v35  ;;  %v7222_v46 = vpop.f32.mrf.mxu1  ;;  %v1716_v63 = vadd.s32 392, %v8681_v54  ;;  %vm9232_vm11 = vcmp.gt.s32.totalorder %v2071_v56, 0  ;;  %v2085_v42 = vand.u32 15, %v1717_v37 }
 0x362   : > { %v5189_v62 = vadd.f32 %v8727_v29, %v5118_v6  ;;  %v5057_v61 = vsel %vm9179_vm6, %v7222_v46, 0.0  ;;  %7312 = vmatprep.mubr.msk.f32.mxu0 %vm1023_vm2, %v5251_v13  ;;  %v4222_v11 = vadd.f32 %v8984_v12, %v9884_v30  ;;  %v1719_v35 = vadd.s32 416, %v8681_v54  ;;  %v9248_v12 = vpop.f32.mrf.mxu0 }
 0x363   : > { %v5121_v52 = vadd.f32 %v5057_v61, %v4218_v51  ;;  %v4769_v3 = vpop.f32.mrf.mxu1  ;;  %7313 = vmatmul.mubr.msk.f32.gmra.mxu0 %vm1023_vm2, %v5252_v9  ;;  %v5254_v17 = vmax.f32 %v5190_v49, 0.0  ;;  %v4221_v44 = vadd.f32 %v9008_v14, %v3446_v36  ;;  %v3448_v21 = vsel %vm9211_vm9, %v9885_v50, 0.0 }
 0x364   : > { %v5253_v58 = vmax.f32 %v5189_v62, 0.0  ;;  %v5120_v45 = vadd.f32 %v4769_v3, %v4217_v25  ;;  %vm9251_vm12 = vcmp.lt.s32.totalorder %v2064_v18, 15  ;;  %v2078_v14 = vand.u32 15, %v1716_v63  ;;  %v9897_v18 = vld [vmem:[#allocation32_spill] sm:$0xff] }
 0x365   : > { %v5192_v33 = vadd.f32 %v8727_v29, %v5121_v52  ;;  %v7225_v20 = vpop.f32.mrf.mxu1  ;;  %v1718_v9 = vadd.s32 408, %v8681_v54  ;;  %vm9256_vm13 = vcmp.gt.s32.totalorder %v2085_v42, 0  ;;  %v1721_v46 = vadd.s32 432, %v8681_v54 }
 0x366   : > { %v5191_v47 = vadd.f32 %v8727_v29, %v5120_v45  ;;  %v5059_v57 = vsel %vm9203_vm8, %v7225_v20, 0.0  ;;  %7315 = vmatprep.mubr.msk.f32.mxu0 %vm1023_vm2, %v5253_v58  ;;  %v4224_v62 = vadd.f32 %v9032_v59, %v9890_v0  ;;  %v2099_v61 = vand.u32 15, %v1719_v35  ;;  %v9272_v45 = vpop.f32.mrf.mxu0 }
 0x367   : > { %v5123_v38 = vadd.f32 %v5059_v57, %v4220_v34  ;;  %v4779_v55 = vpop.f32.mrf.mxu1  ;;  %7316 = vmatmul.mubr.msk.f32.gmra.mxu0 %vm1023_vm2, %v5254_v17  ;;  %v5256_v43 = vmax.f32 %v5192_v33, 0.0  ;;  %v4223_v24 = vadd.f32 %v9056_v40, %v3448_v21  ;;  %v3450_v56 = vsel %vm9232_vm11, %v9891_v15, 0.0 }
 0x368   : > { %v5255_v2 = vmax.f32 %v5191_v47, 0.0  ;;  %v5122_v28 = vadd.f32 %v4779_v55, %v4219_v60  ;;  %vm9275_vm14 = vcmp.lt.s32.totalorder %v2078_v14, 15  ;;  %v2092_v40 = vand.u32 15, %v1718_v9  ;;  %v9912_v47 = vld [vmem:[#allocation37_spill] sm:$0xff] }
 0x369   : > { %v5194_v26 = vadd.f32 %v8727_v29, %v5123_v38  ;;  %v7228_v23 = vpop.f32.mrf.mxu1  ;;  %v1720_v5 = vadd.s32 424, %v8681_v54  ;;  %v2113_v17 = vand.u32 15, %v1721_v46  ;;  %v1723_v33 = vadd.s32 448, %v8681_v54 }
 0x36a   : > { %v5193_v13 = vadd.f32 %v8727_v29, %v5122_v28  ;;  %v5061_v6 = vsel %vm9227_vm10, %v7228_v23, 0.0  ;;  %7318 = vmatprep.mubr.msk.f32.mxu0 %vm1023_vm2, %v5255_v2  ;;  %v4226_v36 = vadd.f32 %v9080_v16, %v9894_v1  ;;  %vm9283_vm15 = vcmp.gt.s32.totalorder %v2099_v61, 0  ;;  %v9296_v16 = vpop.f32.mrf.mxu0  ;;  %v9902_v23 = vld [vmem:[#allocation31_spill] sm:$0xff] }
 0x36b   : > { %v5125_v39 = vadd.f32 %v5061_v6, %v4222_v11  ;;  %v4789_v51 = vpop.f32.mrf.mxu1  ;;  %7319 = vmatmul.mubr.msk.f32.gmra.mxu0 %vm1023_vm2, %v5256_v43  ;;  %v5258_v52 = vmax.f32 %v5194_v26, 0.0  ;;  %v4225_v31 = vadd.f32 %v9104_v19, %v3450_v56  ;;  %v3452_v63 = vsel %vm9256_vm13, %v9897_v18, 0.0 }
 0x36c   : > { %v5257_v25 = vmax.f32 %v5193_v13, 0.0  ;;  %v5124_v4 = vadd.f32 %v4789_v51, %v4221_v44  ;;  %vm9299_vm1 = vcmp.lt.s32.totalorder %v2092_v40, 15  ;;  %v2106_v19 = vand.u32 15, %v1720_v5  ;;  %v9314_v13 = vld [vmem:[%s9707_s4] ss:$0 sm:$0xff]  ;;  %v9325_v49 = vpop.f32.mrf.mxu0 }
 0x36d   : > { %v5196_v3 = vadd.f32 %v8727_v29, %v5125_v39  ;;  %v7231_v53 = vpop.f32.mrf.mxu1  ;;  %v1722_v11 = vadd.s32 440, %v8681_v54  ;;  %vm9304_vm3 = vcmp.gt.s32.totalorder %v2113_v17, 0  ;;  %v2127_v35 = vand.u32 15, %v1723_v33 }
 0x36e   : > { %v5195_v37 = vadd.f32 %v8727_v29, %v5124_v4  ;;  %v5063_v58 = vsel %vm9251_vm12, %v7231_v53, 0.0  ;;  %7321 = vmatprep.mubr.msk.f32.mxu0 %vm1023_vm2, %v5257_v25  ;;  %v4228_v44 = vadd.f32 %v9128_v27, %v9902_v23  ;;  %v1725_v50 = vadd.s32 464, %v8681_v54  ;;  %v4148_v5 = vpop.f32.mrf.mxu0 }
 0x36f   : > { %v5127_v59 = vadd.f32 %v5063_v58, %v4224_v62  ;;  %v4799_v8 = vpop.f32.mrf.mxu1  ;;  %7322 = vmatmul.mubr.msk.f32.gmra.mxu0 %vm1023_vm2, %v5258_v52  ;;  %v5260_v57 = vmax.f32 %v5196_v3, 0.0  ;;  %v4227_v51 = vadd.f32 %v9152_v48, %v3452_v63  ;;  %v3454_v14 = vsel %vm9283_vm15, %v9903_v32, 0.0  ;;  %v9908_v3 = vld [vmem:[#allocation34_spill] sm:$0xff]  ;;  %v9919_v32 = vld [vmem:[#allocation45_spill] sm:$0xff] }
 0x370   : > { %v5259_v20 = vmax.f32 %v5195_v37, 0.0  ;;  %v5126_v60 = vadd.f32 %v4799_v8, %v4223_v24  ;;  %vm9328_vm4 = vcmp.lt.s32.totalorder %v2106_v19, 15  ;;  %v2120_v48 = vand.u32 15, %v1722_v11 }
 0x371   : > { %v5198_v38 = vadd.f32 %v8727_v29, %v5127_v59  ;;  %v7234_v55 = vpop.f32.mrf.mxu1  ;;  %v1724_v0 = vadd.s32 456, %v8681_v54  ;;  %vm9333_vm5 = vcmp.gt.s32.totalorder %v2127_v35, 0  ;;  %v4230_v53 = vadd.f32 %v9176_v22, %v9908_v3  ;;  %v9909_v59 = vld [vmem:[#allocation39_spill] sm:$0xff]  ;;  %v9924_v3 = vld [vmem:[#allocation44_spill] sm:$0xff] }
 0x372   : > { %v5197_v10 = vadd.f32 %v8727_v29, %v5126_v60  ;;  %v5065_v42 = vsel %vm9275_vm14, %v7234_v55, 0.0  ;;  %7324 = vmatprep.mubr.msk.f32.mxu0 %vm1023_vm2, %v5259_v20  ;;  %v2141_v24 = vand.u32 15, %v1725_v50  ;;  %v4229_v58 = vadd.f32 %v9200_v41, %v3454_v14 }
 0x373   : > { %v5129_v2 = vadd.f32 %v5065_v42, %v4226_v36  ;;  %v4809_v28 = vpop.f32.mrf.mxu1  ;;  %7325 = vmatmul.mubr.msk.f32.gmra.mxu0 %vm1023_vm2, %v5260_v57  ;;  %v5262_v21 = vmax.f32 %v5198_v38, 0.0  ;;  %v3456_v8 = vsel %vm9304_vm3, %v9909_v59, 0.0  ;;  %vm9349_vm6 = vcmp.lt.s32.totalorder %v2120_v48, 15  ;;  %v9925_v59 = vld [vmem:[#allocation49_spill] sm:$0xff] }
 0x374   : > { %v5261_v43 = vmax.f32 %v5197_v10, 0.0  ;;  %v5128_v26 = vadd.f32 %v4809_v28, %v4225_v31  ;;  %v2134_v41 = vand.u32 15, %v1724_v0  ;;  %v1726_v20 = vadd.s32 472, %v8681_v54  ;;  %v9915_v10 = vld [vmem:[#allocation42_spill] sm:$0xff] }
 0x375   : > { %v5200_v6 = vadd.f32 %v9314_v13, %v5129_v2  ;;  %v7237_v39 = vpop.f32.mrf.mxu1  ;;  %v1727_v60 = vadd.s32 480, %v8681_v54  ;;  %v4232_v57 = vadd.f32 %v9224_v7, %v9912_v47  ;;  %vm9357_vm7 = vcmp.gt.s32.totalorder %v2141_v24, 0  ;;  %v7152_v7 = vpop.f32.mrf.mxu0 }
 0x376   : > { %v5199_v9 = vadd.f32 %v9314_v13, %v5128_v26  ;;  %v5067_v27 = vsel %vm9299_vm1, %v7237_v39, 0.0  ;;  %7327 = vmatprep.mubr.msk.f32.mxu0 %vm1023_vm2, %v5261_v43  ;;  %v4231_v63 = vadd.f32 %v9248_v12, %v3456_v8  ;;  %v3458_v42 = vsel %vm9333_vm5, %v9915_v10, 0.0 }
 0x377   : > { %v5131_v46 = vadd.f32 %v5067_v27, %v4228_v44  ;;  %v4819_v25 = vpop.f32.mrf.mxu1  ;;  %7328 = vmatmul.mubr.msk.f32.gmra.mxu0 %vm1023_vm2, %v5262_v21  ;;  %v5264_v15 = vmax.f32 %v5200_v6, 0.0  ;;  %vm9371_vm8 = vcmp.lt.s32.totalorder %v2134_v41, 15  ;;  %v2148_v12 = vand.u32 15, %v1726_v20  ;;  %v9918_v44 = vld [vmem:[#allocation41_spill] sm:$0xff]  ;;  %v9928_v41 = vld [vmem:[#allocation47_spill] sm:$0xff] }
 0x378   : > { %v5263_v61 = vmax.f32 %v5199_v9, 0.0  ;;  %v5130_v52 = vadd.f32 %v4819_v25, %v4227_v51  ;;  %v1728_v29 = vadd.s32 488, %v8681_v54  ;;  %v2155_v35 = vand.u32 15, %v1727_v60 }
 0x379   : > { %v5202_v56 = vadd.f32 %v9314_v13, %v5131_v46  ;;  %v7240_v37 = vpop.f32.mrf.mxu1  ;;  %v1729_v43 = vadd.s32 496, %v8681_v54  ;;  %v4234_v50 = vadd.f32 %v9272_v45, %v9918_v44  ;;  %v4233_v51 = vadd.f32 %v9296_v16, %v3458_v42  ;;  %v4158_v46 = vpop.f32.mrf.mxu0 }
 0x37a   : > { %v5201_v34 = vadd.f32 %v9314_v13, %v5130_v52  ;;  %v5069_v40 = vsel %vm9328_vm4, %v7240_v37, 0.0  ;;  %7330 = vmatprep.mubr.msk.f32.mxu0 %vm1023_vm2, %v5263_v61  ;;  %v3460_v14 = vsel %vm9357_vm7, %v9919_v32, 0.0  ;;  %vm9389_vm9 = vcmp.lt.s32.totalorder %v2148_v12, 15  ;;  %v9435_v32 = vld [vmem:[%s9709_s6] ss:$0 sm:$0xff] }
 0x37b   : > { %v5133_v22 = vadd.f32 %v5069_v40, %v4230_v53  ;;  %v4829_v17 = vpop.f32.mrf.mxu1  ;;  %7331 = vmatmul.mubr.msk.f32.gmra.mxu0 %vm1023_vm2, %v5264_v15  ;;  %v5266_v55 = vmax.f32 %v5202_v56, 0.0  ;;  %v2162_v16 = vand.u32 15, %v1728_v29  ;;  %v1730_v48 = vadd.s32 504, %v8681_v54 }
 0x37c   : > { %v5265_v1 = vmax.f32 %v5201_v34, 0.0  ;;  %v5132_v36 = vadd.f32 %v4829_v17, %v4229_v58  ;;  %vm9394_vm10 = vcmp.gt.s32.totalorder %v2155_v35, 0  ;;  %v2169_v62 = vand.u32 15, %v1729_v43  ;;  %v7155_v34 = vpop.f32.mrf.mxu0 }
 0x37d   : > { %v5204_v31 = vadd.f32 %v9314_v13, %v5133_v22  ;;  %v7243_v18 = vpop.f32.mrf.mxu1  ;;  %v4236_v53 = vadd.f32 %v9325_v49, %v9924_v3  ;;  %v4235_v37 = vadd.f32 %v4148_v5, %v3460_v14  ;;  %v3462_v8 = vsel %vm9394_vm10, %v9925_v59, 0.0  ;;  %v5874_v5 = vld [vmem:[%s7443_s11 + $0x38] sm:$0xff] }
 0x37e   : > { %v5203_v2 = vadd.f32 %v9314_v13, %v5132_v36  ;;  %v5071_v28 = vsel %vm9349_vm6, %v7243_v18, 0.0  ;;  %7333 = vmatprep.mubr.msk.f32.mxu0 %vm1023_vm2, %v5265_v1  ;;  %vm2624_vm11 = vcmp.lt.s32.totalorder %v2162_v16, 15  ;;  %v2176_v49 = vand.u32 15, %v1730_v48  ;;  %v4168_v18 = vpop.f32.mrf.mxu0  ;;  %v5870_v16 = vld [vmem:[%s7443_s11 + $0x18] sm:$0xff] }
 0x37f   : > { %v5135_v30 = vadd.f32 %v5071_v28, %v4232_v57  ;;  %v4839_v19 = vpop.f32.mrf.mxu1  ;;  %7334 = vmatmul.mubr.msk.f32.gmra.mxu0 %vm1023_vm2, %v5266_v55  ;;  %v5268_v21 = vmax.f32 %v5204_v31, 0.0  ;;  %vm9409_vm12 = vcmp.gt.s32.totalorder %v2169_v62, 0  ;;  %v4238_v20 = vadd.f32 %v7152_v7, %v9928_v41  ;;  %v9929_v55 = vld [vmem:[#allocation52_spill] sm:$0xff]  ;;  %v9930_v28 = vld [vmem:[#allocation50_spill] sm:$0xff] }
 0x380   : > { %v5267_v26 = vmax.f32 %v5203_v2, 0.0  ;;  %v5134_v23 = vadd.f32 %v4839_v19, %v4231_v63  ;;  %v4237_v47 = vadd.f32 %v4158_v46, %v3462_v8  ;;  %v3464_v31 = vsel %vm9409_vm12, %v9929_v55, 0.0  ;;  %v5867_v46 = vld [vmem:[%s7443_s11] sm:$0xff] }
 0x381   : > { %v5206_v6 = vadd.f32 %v9314_v13, %v5135_v30  ;;  %v7246_v39 = vpop.f32.mrf.mxu1  ;;  %vm2626_vm13 = vcmp.lt.s32.totalorder %v2176_v49, 15  ;;  %v4240_v7 = vadd.f32 %v7155_v34, %v9930_v28  ;;  %v4239_v12 = vadd.f32 %v4168_v18, %v3464_v31  ;;  %v5871_v8 = vld [vmem:[%s7443_s11 + $0x20] sm:$0xff] }
 0x382   : > { %v5205_v9 = vadd.f32 %v9314_v13, %v5134_v23  ;;  %v5073_v27 = vsel %vm9371_vm8, %v7246_v39, 0.0  ;;  %7336 = vmatprep.mubr.msk.f32.mxu0 %vm1023_vm2, %v5267_v26 }
 0x383   : > { %v5137_v25 = vadd.f32 %v5073_v27, %v4234_v50  ;;  %v4849_v45 = vpop.f32.mrf.mxu1  ;;  %7337 = vmatmul.mubr.msk.f32.gmra.mxu0 %vm1023_vm2, %v5268_v21  ;;  %v5270_v24 = vmax.f32 %v5206_v6, 0.0 }
 0x384   : > { %v5269_v61 = vmax.f32 %v5205_v9, 0.0  ;;  %v5136_v52 = vadd.f32 %v4849_v45, %v4233_v51  ;;  %v5868_v9 = vld [vmem:[%s7443_s11 + $0x8] sm:$0xff] }
 0x385   : > { %v5208_v15 = vadd.f32 %v9314_v13, %v5137_v25  ;;  %v7249_v56 = vpop.f32.mrf.mxu1 }
 0x386   : > { %v5207_v58 = vadd.f32 %v9314_v13, %v5136_v52  ;;  %v5075_v54 = vsel %vm9389_vm9, %v7249_v56, 0.0  ;;  %7339 = vmatprep.mubr.msk.f32.mxu0 %vm1023_vm2, %v5269_v61  ;;  %v5869_v52 = vld [vmem:[%s7443_s11 + $0x10] sm:$0xff]  ;;  %v5872_v56 = vld [vmem:[%s7443_s11 + $0x28] sm:$0xff] }
 0x387   : > { %v5139_v40 = vadd.f32 %v5075_v54, %v4236_v53  ;;  %v4859_v22 = vpop.f32.mrf.mxu1  ;;  %7340 = vmatmul.mubr.msk.f32.gmra.mxu0 %vm1023_vm2, %v5270_v24  ;;  %v5272_v60 = vmax.f32 %v5208_v15, 0.0 }
 0x388   : > { %v5271_v17 = vmax.f32 %v5207_v58, 0.0  ;;  %v5138_v33 = vadd.f32 %v4859_v22, %v4235_v37 }
 0x389   : > { %v5210_v1 = vadd.f32 %v9314_v13, %v5139_v40  ;;  %v7252_v36 = vpop.f32.mrf.mxu1 }
 0x38a   : > { %v5209_v57 = vadd.f32 %v9314_v13, %v5138_v33  ;;  %v5077_v38 = vsel %vm2624_vm11, %v7252_v36, 0.0  ;;  %7342 = vmatprep.mubr.msk.f32.mxu0 %vm1023_vm2, %v5271_v17 }
 0x38b   : > { %v5141_v63 = vadd.f32 %v5077_v38, %v4238_v20  ;;  %v4869_v10 = vpop.f32.mrf.mxu1  ;;  %7343 = vmatmul.mubr.msk.f32.gmra.mxu0 %vm1023_vm2, %v5272_v60  ;;  %v5274_v30 = vmax.f32 %v5210_v1, 0.0  ;;  %v5873_v60 = vld [vmem:[%s7443_s11 + $0x30] sm:$0xff]  ;;  %v5876_v38 = vld [vmem:[%s7443_s11 + $0x48] sm:$0xff] }
 0x38c   : > { %v5273_v42 = vmax.f32 %v5209_v57, 0.0  ;;  %v5140_v2 = vadd.f32 %v4869_v10, %v4237_v47  ;;  %v5875_v10 = vld [vmem:[%s7443_s11 + $0x40] sm:$0xff] }
 0x38d   : > { %v5212_v19 = vadd.f32 %v9314_v13, %v5141_v63  ;;  %v7255_v11 = vpop.f32.mrf.mxu1 }
 0x38e   : > { %v5211_v29 = vadd.f32 %v9314_v13, %v5140_v2  ;;  %v5079_v35 = vsel %vm2626_vm13, %v7255_v11, 0.0  ;;  %7345 = vmatprep.mubr.msk.f32.mxu0 %vm1023_vm2, %v5273_v42 }
 0x38f   : > { %v5143_v43 = vadd.f32 %v5079_v35, %v4240_v7  ;;  %v4879_v26 = vpop.f32.mrf.mxu1  ;;  %7346 = vmatmul.mubr.msk.f32.gmra.mxu0 %vm1023_vm2, %v5274_v30  ;;  %v5276_v50 = vmax.f32 %v5212_v19, 0.0  ;;  %v5878_v30 = vld [vmem:[%s7443_s11 + $0x58] sm:$0xff]  ;;  %v5877_v35 = vld [vmem:[%s7443_s11 + $0x50] sm:$0xff] }
 0x390   : > { %v5275_v23 = vmax.f32 %v5211_v29, 0.0  ;;  %v5142_v44 = vadd.f32 %v4879_v26, %v4239_v12 }
 0x391   : > { %v5214_v21 = vadd.f32 %v9314_v13, %v5143_v43 }
 0x392   : > { %v5213_v6 = vadd.f32 %v9314_v13, %v5142_v44  ;;  %7348 = vmatprep.mubr.msk.f32.mxu0 %vm1023_vm2, %v5275_v23 }
 0x393   : > { %7349 = vmatmul.mubr.msk.f32.gmra.mxu0 %vm1023_vm2, %v5276_v50  ;;  %v5278_v51 = vmax.f32 %v5214_v21, 0.0  ;;  %v5880_v50 = vld [vmem:[%s7443_s11 + $0x68] sm:$0xff] }
 0x394   : > { %v5277_v39 = vmax.f32 %v5213_v6, 0.0 }
 0x396   : > { %7351 = vmatprep.mubr.msk.f32.mxu0 %vm1023_vm2, %v5277_v39 }
 0x397   : > { %7352 = vmatmul.mubr.msk.f32.gmra.mxu0 %vm1023_vm2, %v5278_v51 }
 0x3db   : > { %v7260_v14 = vpop.f32.mrf.mxu0 }
 0x3dc   : > { %v5554_v13 = vadd.f32 %v7260_v14, %v9435_v32  ;;  %v5879_v14 = vld [vmem:[%s7443_s11 + $0x60] sm:$0xff] }
 0x3dd   : > { %v5548_v27 = vpop.f32.mrf.mxu0 }
 0x3de   : > { %v5932_v25 = vadd.f32 %v5868_v9, %v5554_v13  ;;  %v5549_v45 = vadd.f32 %v9435_v32, %v5548_v27 }
 0x3df   : > { %v7263_v4 = vpop.f32.mrf.mxu0 }
 0x3e0   : > { %v5996_v48 = vmax.f32 %v5932_v25, 0.0  ;;  %v5931_v0 = vadd.f32 %v5867_v46, %v5549_v45  ;;  %v5564_v62 = vadd.f32 %v7263_v4, %v9435_v32  ;;  %v5882_v25 = vld [vmem:[%s7443_s11 + $0x78] sm:$0xff] }
 0x3e1   : > { %v5558_v61 = vpop.f32.mrf.mxu0 }
 0x3e2   : > { %6060 = vst.msk [vmem:[%s9446_s19 + $0x8] sm:$0xff] %vm360_vm0, %v5996_v48  ;;  %v5995_v3 = vmax.f32 %v5931_v0, 0.0  ;;  %v5934_v53 = vadd.f32 %v5870_v16, %v5564_v62  ;;  %v5559_v24 = vadd.f32 %v9435_v32, %v5558_v61  ;;  %v5881_v0 = vld [vmem:[%s7443_s11 + $0x70] sm:$0xff] }
 0x3e3   : > { %v7266_v15 = vpop.f32.mrf.mxu0 }
 0x3e4   : > { %6059 = vst.msk [vmem:[%s9446_s19] sm:$0xff] %vm360_vm0, %v5995_v3  ;;  %v5998_v37 = vmax.f32 %v5934_v53, 0.0  ;;  %v5933_v58 = vadd.f32 %v5869_v52, %v5559_v24  ;;  %v5574_v54 = vadd.f32 %v7266_v15, %v9435_v32  ;;  %v5884_v53 = vld [vmem:[%s7443_s11 + $0x88] sm:$0xff] }
 0x3e5   : > { %v5568_v59 = vpop.f32.mrf.mxu0 }
 0x3e6   : > { %6062 = vst.msk [vmem:[%s9446_s19 + $0x18] sm:$0xff] %vm360_vm0, %v5998_v37  ;;  %v5997_v34 = vmax.f32 %v5933_v58, 0.0  ;;  %v5936_v40 = vadd.f32 %v5872_v56, %v5574_v54  ;;  %v5569_v22 = vadd.f32 %v9435_v32, %v5568_v59  ;;  %v5883_v58 = vld [vmem:[%s7443_s11 + $0x80] sm:$0xff] }
 0x3e7   : > { %v7269_v49 = vpop.f32.mrf.mxu0 }
 0x3e8   : > { %6061 = vst.msk [vmem:[%s9446_s19 + $0x10] sm:$0xff] %vm360_vm0, %v5997_v34  ;;  %v6000_v17 = vmax.f32 %v5936_v40, 0.0  ;;  %v5935_v33 = vadd.f32 %v5871_v8, %v5569_v22  ;;  %v5584_v41 = vadd.f32 %v7269_v49, %v9435_v32  ;;  %v5886_v40 = vld [vmem:[%s7443_s11 + $0x98] sm:$0xff] }
 0x3e9   : > { %v5578_v20 = vpop.f32.mrf.mxu0 }
 0x3ea   : > { %6064 = vst.msk [vmem:[%s9446_s19 + $0x28] sm:$0xff] %vm360_vm0, %v6000_v17  ;;  %v5999_v1 = vmax.f32 %v5935_v33, 0.0  ;;  %v5938_v36 = vadd.f32 %v5874_v5, %v5584_v41  ;;  %v5579_v47 = vadd.f32 %v9435_v32, %v5578_v20  ;;  %v5885_v33 = vld [vmem:[%s7443_s11 + $0x90] sm:$0xff] }
 0x3eb   : > { %v7272_v57 = vpop.f32.mrf.mxu0 }
 0x3ec   : > { %6063 = vst.msk [vmem:[%s9446_s19 + $0x20] sm:$0xff] %vm360_vm0, %v5999_v1  ;;  %v6002_v55 = vmax.f32 %v5938_v36, 0.0  ;;  %v5937_v31 = vadd.f32 %v5873_v60, %v5579_v47  ;;  %v5594_v18 = vadd.f32 %v7272_v57, %v9435_v32  ;;  %v5888_v36 = vld [vmem:[%s7443_s11 + $0xa8] sm:$0xff] }
 0x3ed   : > { %v5588_v63 = vpop.f32.mrf.mxu0 }
 0x3ee   : > { %6066 = vst.msk [vmem:[%s9446_s19 + $0x38] sm:$0xff] %vm360_vm0, %v6002_v55  ;;  %v6001_v42 = vmax.f32 %v5937_v31, 0.0  ;;  %v5940_v2 = vadd.f32 %v5876_v38, %v5594_v18  ;;  %v5589_v28 = vadd.f32 %v9435_v32, %v5588_v63  ;;  %v5887_v31 = vld [vmem:[%s7443_s11 + $0xa0] sm:$0xff] }
 0x3ef   : > { %v7275_v7 = vpop.f32.mrf.mxu0 }
 0x3f0   : > { %6065 = vst.msk [vmem:[%s9446_s19 + $0x30] sm:$0xff] %vm360_vm0, %v6001_v42  ;;  %v6004_v19 = vmax.f32 %v5940_v2, 0.0  ;;  %v5939_v11 = vadd.f32 %v5875_v10, %v5589_v28  ;;  %v5604_v12 = vadd.f32 %v7275_v7, %v9435_v32  ;;  %v5890_v2 = vld [vmem:[%s7443_s11 + $0xb8] sm:$0xff] }
 0x3f1   : > { %v5598_v29 = vpop.f32.mrf.mxu0 }
 0x3f2   : > { %6068 = vst.msk [vmem:[%s9446_s19 + $0x48] sm:$0xff] %vm360_vm0, %v6004_v19  ;;  %v6003_v43 = vmax.f32 %v5939_v11, 0.0  ;;  %v5942_v26 = vadd.f32 %v5878_v30, %v5604_v12  ;;  %v5599_v23 = vadd.f32 %v9435_v32, %v5598_v29  ;;  %v5889_v11 = vld [vmem:[%s7443_s11 + $0xb0] sm:$0xff] }
 0x3f3   : > { %v7278_v44 = vpop.f32.mrf.mxu0 }
 0x3f4   : > { %6067 = vst.msk [vmem:[%s9446_s19 + $0x40] sm:$0xff] %vm360_vm0, %v6003_v43  ;;  %v6006_v21 = vmax.f32 %v5942_v26, 0.0  ;;  %v5941_v6 = vadd.f32 %v5877_v35, %v5599_v23  ;;  %v5614_v39 = vadd.f32 %v7278_v44, %v9435_v32  ;;  %v5892_v26 = vld [vmem:[%s7443_s11 + $0xc8] sm:$0xff] }
 0x3f5   : > { %v5608_v51 = vpop.f32.mrf.mxu0 }
 0x3f6   : > { %6070 = vst.msk [vmem:[%s9446_s19 + $0x58] sm:$0xff] %vm360_vm0, %v6006_v21  ;;  %v6005_v9 = vmax.f32 %v5941_v6, 0.0  ;;  %v5944_v13 = vadd.f32 %v5880_v50, %v5614_v39  ;;  %v5609_v27 = vadd.f32 %v9435_v32, %v5608_v51  ;;  %v5891_v6 = vld [vmem:[%s7443_s11 + $0xc0] sm:$0xff] }
 0x3f7   : > { %v7281_v46 = vpop.f32.mrf.mxu0 }
 0x3f8   : > { %6069 = vst.msk [vmem:[%s9446_s19 + $0x50] sm:$0xff] %vm360_vm0, %v6005_v9  ;;  %v6008_v45 = vmax.f32 %v5944_v13, 0.0  ;;  %v5943_v4 = vadd.f32 %v5879_v14, %v5609_v27  ;;  %v5624_v16 = vadd.f32 %v7281_v46, %v9435_v32  ;;  %v5894_v13 = vld [vmem:[%s7443_s11 + $0xd8] sm:$0xff] }
 0x3f9   : > { %v5618_v48 = vpop.f32.mrf.mxu0 }
 0x3fa   : > { %6072 = vst.msk [vmem:[%s9446_s19 + $0x68] sm:$0xff] %vm360_vm0, %v6008_v45  ;;  %v6007_v62 = vmax.f32 %v5943_v4, 0.0  ;;  %v5946_v61 = vadd.f32 %v5882_v25, %v5624_v16  ;;  %v5619_v52 = vadd.f32 %v9435_v32, %v5618_v48  ;;  %v5893_v4 = vld [vmem:[%s7443_s11 + $0xd0] sm:$0xff] }
 0x3fb   : > { %v7284_v3 = vpop.f32.mrf.mxu0 }
 0x3fc   : > { %6071 = vst.msk [vmem:[%s9446_s19 + $0x60] sm:$0xff] %vm360_vm0, %v6007_v62  ;;  %v6010_v24 = vmax.f32 %v5946_v61, 0.0  ;;  %v5945_v15 = vadd.f32 %v5881_v0, %v5619_v52  ;;  %v5634_v56 = vadd.f32 %v7284_v3, %v9435_v32  ;;  %v5896_v61 = vld [vmem:[%s7443_s11 + $0xe8] sm:$0xff] }
 0x3fd   : > { %v5628_v37 = vpop.f32.mrf.mxu0 }
 0x3fe   : > { %6074 = vst.msk [vmem:[%s9446_s19 + $0x78] sm:$0xff] %vm360_vm0, %v6010_v24  ;;  %v6009_v54 = vmax.f32 %v5945_v15, 0.0  ;;  %v5948_v59 = vadd.f32 %v5884_v53, %v5634_v56  ;;  %v5629_v8 = vadd.f32 %v9435_v32, %v5628_v37  ;;  %v5895_v15 = vld [vmem:[%s7443_s11 + $0xe0] sm:$0xff] }
 0x3ff   : > { %v7287_v34 = vpop.f32.mrf.mxu0 }
 0x400   : > { %6073 = vst.msk [vmem:[%s9446_s19 + $0x70] sm:$0xff] %vm360_vm0, %v6009_v54  ;;  %v6012_v22 = vmax.f32 %v5948_v59, 0.0  ;;  %v5947_v49 = vadd.f32 %v5883_v58, %v5629_v8  ;;  %v5644_v5 = vadd.f32 %v7287_v34, %v9435_v32  ;;  %v5898_v59 = vld [vmem:[%s7443_s11 + $0xf8] sm:$0xff] }
 0x401   : > { %v5638_v17 = vpop.f32.mrf.mxu0 }
 0x402   : > { %6076 = vst.msk [vmem:[%s9446_s19 + $0x88] sm:$0xff] %vm360_vm0, %v6012_v22  ;;  %v6011_v41 = vmax.f32 %v5947_v49, 0.0  ;;  %v5950_v20 = vadd.f32 %v5886_v40, %v5644_v5  ;;  %v5639_v60 = vadd.f32 %v9435_v32, %v5638_v17  ;;  %v5897_v49 = vld [vmem:[%s7443_s11 + $0xf0] sm:$0xff] }
 0x403   : > { %v7290_v1 = vpop.f32.mrf.mxu0 }
 0x404   : > { %6075 = vst.msk [vmem:[%s9446_s19 + $0x80] sm:$0xff] %vm360_vm0, %v6011_v41  ;;  %v6014_v47 = vmax.f32 %v5950_v20, 0.0  ;;  %v5949_v57 = vadd.f32 %v5885_v33, %v5639_v60  ;;  %v5654_v38 = vadd.f32 %v7290_v1, %v9435_v32  ;;  %v5900_v20 = vld [vmem:[%s7443_s11 + $0x108] sm:$0xff] }
 0x405   : > { %v5648_v55 = vpop.f32.mrf.mxu0 }
 0x406   : > { %6078 = vst.msk [vmem:[%s9446_s19 + $0x98] sm:$0xff] %vm360_vm0, %v6014_v47  ;;  %v6013_v18 = vmax.f32 %v5949_v57, 0.0  ;;  %v5952_v63 = vadd.f32 %v5888_v36, %v5654_v38  ;;  %v5649_v10 = vadd.f32 %v9435_v32, %v5648_v55  ;;  %v5899_v57 = vld [vmem:[%s7443_s11 + $0x100] sm:$0xff] }
 0x407   : > { %v7293_v42 = vpop.f32.mrf.mxu0 }
 0x408   : > { %6077 = vst.msk [vmem:[%s9446_s19 + $0x90] sm:$0xff] %vm360_vm0, %v6013_v18  ;;  %v6016_v28 = vmax.f32 %v5952_v63, 0.0  ;;  %v5951_v7 = vadd.f32 %v5887_v31, %v5649_v10  ;;  %v5664_v30 = vadd.f32 %v7293_v42, %v9435_v32  ;;  %v5902_v63 = vld [vmem:[%s7443_s11 + $0x118] sm:$0xff] }
 0x409   : > { %v5658_v19 = vpop.f32.mrf.mxu0 }
 0x40a   : > { %6080 = vst.msk [vmem:[%s9446_s19 + $0xa8] sm:$0xff] %vm360_vm0, %v6016_v28  ;;  %v6015_v12 = vmax.f32 %v5951_v7, 0.0  ;;  %v5954_v29 = vadd.f32 %v5890_v2, %v5664_v30  ;;  %v5659_v35 = vadd.f32 %v9435_v32, %v5658_v19  ;;  %v5901_v7 = vld [vmem:[%s7443_s11 + $0x110] sm:$0xff] }
 0x40b   : > { %v7296_v43 = vpop.f32.mrf.mxu0 }
 0x40c   : > { %6079 = vst.msk [vmem:[%s9446_s19 + $0xa0] sm:$0xff] %vm360_vm0, %v6015_v12  ;;  %v6018_v23 = vmax.f32 %v5954_v29, 0.0  ;;  %v5953_v44 = vadd.f32 %v5889_v11, %v5659_v35  ;;  %v5674_v50 = vadd.f32 %v7296_v43, %v9435_v32  ;;  %v5904_v29 = vld [vmem:[%s7443_s11 + $0x128] sm:$0xff] }
 0x40d   : > { %v5668_v21 = vpop.f32.mrf.mxu0 }
 0x40e   : > { %6082 = vst.msk [vmem:[%s9446_s19 + $0xb8] sm:$0xff] %vm360_vm0, %v6018_v23  ;;  %v6017_v39 = vmax.f32 %v5953_v44, 0.0  ;;  %v5956_v51 = vadd.f32 %v5892_v26, %v5674_v50  ;;  %v5669_v14 = vadd.f32 %v9435_v32, %v5668_v21  ;;  %v5903_v44 = vld [vmem:[%s7443_s11 + $0x120] sm:$0xff] }
 0x40f   : > { %v7299_v9 = vpop.f32.mrf.mxu0 }
 0x410   : > { %6081 = vst.msk [vmem:[%s9446_s19 + $0xb0] sm:$0xff] %vm360_vm0, %v6017_v39  ;;  %v6020_v27 = vmax.f32 %v5956_v51, 0.0  ;;  %v5955_v46 = vadd.f32 %v5891_v6, %v5669_v14  ;;  %v5684_v25 = vadd.f32 %v7299_v9, %v9435_v32  ;;  %v5906_v51 = vld [vmem:[%s7443_s11 + $0x138] sm:$0xff] }
 0x411   : > { %v5678_v45 = vpop.f32.mrf.mxu0 }
 0x412   : > { %6084 = vst.msk [vmem:[%s9446_s19 + $0xc8] sm:$0xff] %vm360_vm0, %v6020_v27  ;;  %v6019_v16 = vmax.f32 %v5955_v46, 0.0  ;;  %v5958_v48 = vadd.f32 %v5894_v13, %v5684_v25  ;;  %v5679_v0 = vadd.f32 %v9435_v32, %v5678_v45  ;;  %v5905_v46 = vld [vmem:[%s7443_s11 + $0x130] sm:$0xff] }
 0x413   : > { %v7302_v62 = vpop.f32.mrf.mxu0 }
 0x414   : > { %6083 = vst.msk [vmem:[%s9446_s19 + $0xc0] sm:$0xff] %vm360_vm0, %v6019_v16  ;;  %v6022_v52 = vmax.f32 %v5958_v48, 0.0  ;;  %v5957_v3 = vadd.f32 %v5893_v4, %v5679_v0  ;;  %v5694_v53 = vadd.f32 %v7302_v62, %v9435_v32  ;;  %v5908_v48 = vld [vmem:[%s7443_s11 + $0x148] sm:$0xff] }
 0x415   : > { %v5688_v24 = vpop.f32.mrf.mxu0 }
 0x416   : > { %6086 = vst.msk [vmem:[%s9446_s19 + $0xd8] sm:$0xff] %vm360_vm0, %v6022_v52  ;;  %v6021_v56 = vmax.f32 %v5957_v3, 0.0  ;;  %v5960_v37 = vadd.f32 %v5896_v61, %v5694_v53  ;;  %v5689_v58 = vadd.f32 %v9435_v32, %v5688_v24  ;;  %v5907_v3 = vld [vmem:[%s7443_s11 + $0x140] sm:$0xff] }
 0x417   : > { %v7305_v54 = vpop.f32.mrf.mxu0 }
 0x418   : > { %6085 = vst.msk [vmem:[%s9446_s19 + $0xd0] sm:$0xff] %vm360_vm0, %v6021_v56  ;;  %v6024_v8 = vmax.f32 %v5960_v37, 0.0  ;;  %v5959_v34 = vadd.f32 %v5895_v15, %v5689_v58  ;;  %v5704_v40 = vadd.f32 %v7305_v54, %v9435_v32  ;;  %v5910_v37 = vld [vmem:[%s7443_s11 + $0x158] sm:$0xff] }
 0x419   : > { %v5698_v22 = vpop.f32.mrf.mxu0 }
 0x41a   : > { %6088 = vst.msk [vmem:[%s9446_s19 + $0xe8] sm:$0xff] %vm360_vm0, %v6024_v8  ;;  %v6023_v5 = vmax.f32 %v5959_v34, 0.0  ;;  %v5962_v17 = vadd.f32 %v5898_v59, %v5704_v40  ;;  %v5699_v33 = vadd.f32 %v9435_v32, %v5698_v22  ;;  %v5909_v34 = vld [vmem:[%s7443_s11 + $0x150] sm:$0xff] }
 0x41b   : > { %v7308_v41 = vpop.f32.mrf.mxu0 }
 0x41c   : > { %6087 = vst.msk [vmem:[%s9446_s19 + $0xe0] sm:$0xff] %vm360_vm0, %v6023_v5  ;;  %v6026_v60 = vmax.f32 %v5962_v17, 0.0  ;;  %v5961_v1 = vadd.f32 %v5897_v49, %v5699_v33  ;;  %v5714_v36 = vadd.f32 %v7308_v41, %v9435_v32  ;;  %v5912_v17 = vld [vmem:[%s7443_s11 + $0x168] sm:$0xff] }
 0x41d   : > { %v5708_v47 = vpop.f32.mrf.mxu0 }
 0x41e   : > { %6090 = vst.msk [vmem:[%s9446_s19 + $0xf8] sm:$0xff] %vm360_vm0, %v6026_v60  ;;  %v6025_v38 = vmax.f32 %v5961_v1, 0.0  ;;  %v5964_v55 = vadd.f32 %v5900_v20, %v5714_v36  ;;  %v5709_v31 = vadd.f32 %v9435_v32, %v5708_v47  ;;  %v5911_v1 = vld [vmem:[%s7443_s11 + $0x160] sm:$0xff] }
 0x41f   : > { %v7311_v18 = vpop.f32.mrf.mxu0 }
 0x420   : > { %6089 = vst.msk [vmem:[%s9446_s19 + $0xf0] sm:$0xff] %vm360_vm0, %v6025_v38  ;;  %v6028_v10 = vmax.f32 %v5964_v55, 0.0  ;;  %v5963_v42 = vadd.f32 %v5899_v57, %v5709_v31  ;;  %v5724_v2 = vadd.f32 %v7311_v18, %v9435_v32  ;;  %v5914_v55 = vld [vmem:[%s7443_s11 + $0x178] sm:$0xff] }
 0x421   : > { %v5718_v28 = vpop.f32.mrf.mxu0 }
 0x422   : > { %6092 = vst.msk [vmem:[%s9446_s19 + $0x108] sm:$0xff] %vm360_vm0, %v6028_v10  ;;  %v6027_v30 = vmax.f32 %v5963_v42, 0.0  ;;  %v5966_v19 = vadd.f32 %v5902_v63, %v5724_v2  ;;  %v5719_v11 = vadd.f32 %v9435_v32, %v5718_v28  ;;  %v5913_v42 = vld [vmem:[%s7443_s11 + $0x170] sm:$0xff] }
 0x423   : > { %v7314_v12 = vpop.f32.mrf.mxu0 }
 0x424   : > { %6091 = vst.msk [vmem:[%s9446_s19 + $0x100] sm:$0xff] %vm360_vm0, %v6027_v30  ;;  %v6030_v35 = vmax.f32 %v5966_v19, 0.0  ;;  %v5965_v43 = vadd.f32 %v5901_v7, %v5719_v11  ;;  %v5734_v26 = vadd.f32 %v7314_v12, %v9435_v32  ;;  %v5916_v19 = vld [vmem:[%s7443_s11 + $0x188] sm:$0xff] }
 0x425   : > { %v5728_v23 = vpop.f32.mrf.mxu0 }
 0x426   : > { %6094 = vst.msk [vmem:[%s9446_s19 + $0x118] sm:$0xff] %vm360_vm0, %v6030_v35  ;;  %v6029_v50 = vmax.f32 %v5965_v43, 0.0  ;;  %v5968_v21 = vadd.f32 %v5904_v29, %v5734_v26  ;;  %v5729_v6 = vadd.f32 %v9435_v32, %v5728_v23  ;;  %v5915_v43 = vld [vmem:[%s7443_s11 + $0x180] sm:$0xff] }
 0x427   : > { %v7317_v39 = vpop.f32.mrf.mxu0 }
 0x428   : > { %6093 = vst.msk [vmem:[%s9446_s19 + $0x110] sm:$0xff] %vm360_vm0, %v6029_v50  ;;  %v6032_v14 = vmax.f32 %v5968_v21, 0.0  ;;  %v5967_v9 = vadd.f32 %v5903_v44, %v5729_v6  ;;  %v5744_v13 = vadd.f32 %v7317_v39, %v9435_v32  ;;  %v5918_v21 = vld [vmem:[%s7443_s11 + $0x198] sm:$0xff] }
 0x429   : > { %v5738_v27 = vpop.f32.mrf.mxu0 }
 0x42a   : > { %6096 = vst.msk [vmem:[%s9446_s19 + $0x128] sm:$0xff] %vm360_vm0, %v6032_v14  ;;  %v6031_v25 = vmax.f32 %v5967_v9, 0.0  ;;  %v5970_v45 = vadd.f32 %v5906_v51, %v5744_v13  ;;  %v5739_v4 = vadd.f32 %v9435_v32, %v5738_v27  ;;  %v5917_v9 = vld [vmem:[%s7443_s11 + $0x190] sm:$0xff] }
 0x42b   : > { %v7320_v16 = vpop.f32.mrf.mxu0 }
 0x42c   : > { %6095 = vst.msk [vmem:[%s9446_s19 + $0x120] sm:$0xff] %vm360_vm0, %v6031_v25  ;;  %v6034_v0 = vmax.f32 %v5970_v45, 0.0  ;;  %v5969_v62 = vadd.f32 %v5905_v46, %v5739_v4  ;;  %v5754_v61 = vadd.f32 %v7320_v16, %v9435_v32  ;;  %v5920_v45 = vld [vmem:[%s7443_s11 + $0x1a8] sm:$0xff] }
 0x42d   : > { %v5748_v52 = vpop.f32.mrf.mxu0 }
 0x42e   : > { %6098 = vst.msk [vmem:[%s9446_s19 + $0x138] sm:$0xff] %vm360_vm0, %v6034_v0  ;;  %v6033_v53 = vmax.f32 %v5969_v62, 0.0  ;;  %v5972_v24 = vadd.f32 %v5908_v48, %v5754_v61  ;;  %v5749_v15 = vadd.f32 %v9435_v32, %v5748_v52  ;;  %v5919_v62 = vld [vmem:[%s7443_s11 + $0x1a0] sm:$0xff] }
 0x42f   : > { %v7323_v56 = vpop.f32.mrf.mxu0 }
 0x430   : > { %6097 = vst.msk [vmem:[%s9446_s19 + $0x130] sm:$0xff] %vm360_vm0, %v6033_v53  ;;  %v6036_v58 = vmax.f32 %v5972_v24, 0.0  ;;  %v5971_v54 = vadd.f32 %v5907_v3, %v5749_v15  ;;  %v5764_v59 = vadd.f32 %v7323_v56, %v9435_v32  ;;  %v5922_v24 = vld [vmem:[%s7443_s11 + $0x1b8] sm:$0xff] }
 0x431   : > { %v5758_v8 = vpop.f32.mrf.mxu0 }
 0x432   : > { %6100 = vst.msk [vmem:[%s9446_s19 + $0x148] sm:$0xff] %vm360_vm0, %v6036_v58  ;;  %v6035_v40 = vmax.f32 %v5971_v54, 0.0  ;;  %v5974_v22 = vadd.f32 %v5910_v37, %v5764_v59  ;;  %v5759_v49 = vadd.f32 %v9435_v32, %v5758_v8  ;;  %v5921_v54 = vld [vmem:[%s7443_s11 + $0x1b0] sm:$0xff] }
 0x433   : > { %v7326_v5 = vpop.f32.mrf.mxu0 }
 0x434   : > { %6099 = vst.msk [vmem:[%s9446_s19 + $0x140] sm:$0xff] %vm360_vm0, %v6035_v40  ;;  %v6038_v33 = vmax.f32 %v5974_v22, 0.0  ;;  %v5973_v41 = vadd.f32 %v5909_v34, %v5759_v49  ;;  %v5774_v20 = vadd.f32 %v7326_v5, %v9435_v32  ;;  %v5924_v22 = vld [vmem:[%s7443_s11 + $0x1c8] sm:$0xff] }
 0x435   : > { %v5768_v60 = vpop.f32.mrf.mxu0 }
 0x436   : > { %6102 = vst.msk [vmem:[%s9446_s19 + $0x158] sm:$0xff] %vm360_vm0, %v6038_v33  ;;  %v6037_v36 = vmax.f32 %v5973_v41, 0.0  ;;  %v5976_v47 = vadd.f32 %v5912_v17, %v5774_v20  ;;  %v5769_v57 = vadd.f32 %v9435_v32, %v5768_v60  ;;  %v5923_v41 = vld [vmem:[%s7443_s11 + $0x1c0] sm:$0xff] }
 0x437   : > { %v7329_v38 = vpop.f32.mrf.mxu0 }
 0x438   : > { %6101 = vst.msk [vmem:[%s9446_s19 + $0x150] sm:$0xff] %vm360_vm0, %v6037_v36  ;;  %v6040_v31 = vmax.f32 %v5976_v47, 0.0  ;;  %v5975_v18 = vadd.f32 %v5911_v1, %v5769_v57  ;;  %v5784_v63 = vadd.f32 %v7329_v38, %v9435_v32  ;;  %v5926_v47 = vld [vmem:[%s7443_s11 + $0x1d8] sm:$0xff] }
 0x439   : > { %v5778_v10 = vpop.f32.mrf.mxu0 }
 0x43a   : > { %6104 = vst.msk [vmem:[%s9446_s19 + $0x168] sm:$0xff] %vm360_vm0, %v6040_v31  ;;  %v6039_v2 = vmax.f32 %v5975_v18, 0.0  ;;  %v5978_v28 = vadd.f32 %v5914_v55, %v5784_v63  ;;  %v5779_v7 = vadd.f32 %v9435_v32, %v5778_v10  ;;  %v5925_v18 = vld [vmem:[%s7443_s11 + $0x1d0] sm:$0xff] }
 0x43b   : > { %v7332_v30 = vpop.f32.mrf.mxu0 }
 0x43c   : > { %6103 = vst.msk [vmem:[%s9446_s19 + $0x160] sm:$0xff] %vm360_vm0, %v6039_v2  ;;  %v6042_v11 = vmax.f32 %v5978_v28, 0.0  ;;  %v5977_v12 = vadd.f32 %v5913_v42, %v5779_v7  ;;  %v5794_v29 = vadd.f32 %v7332_v30, %v9435_v32  ;;  %v5928_v28 = vld [vmem:[%s7443_s11 + $0x1e8] sm:$0xff] }
 0x43d   : > { %v5788_v35 = vpop.f32.mrf.mxu0 }
 0x43e   : > { %6106 = vst.msk [vmem:[%s9446_s19 + $0x178] sm:$0xff] %vm360_vm0, %v6042_v11  ;;  %v6041_v26 = vmax.f32 %v5977_v12, 0.0  ;;  %v5980_v23 = vadd.f32 %v5916_v19, %v5794_v29  ;;  %v5789_v44 = vadd.f32 %v9435_v32, %v5788_v35  ;;  %v5927_v12 = vld [vmem:[%s7443_s11 + $0x1e0] sm:$0xff] }
 0x43f   : > { %v7335_v50 = vpop.f32.mrf.mxu0 }
 0x440   : > { %6105 = vst.msk [vmem:[%s9446_s19 + $0x170] sm:$0xff] %vm360_vm0, %v6041_v26  ;;  %v6044_v6 = vmax.f32 %v5980_v23, 0.0  ;;  %v5979_v39 = vadd.f32 %v5915_v43, %v5789_v44  ;;  %v5804_v51 = vadd.f32 %v7335_v50, %v9435_v32  ;;  %v5930_v23 = vld [vmem:[%s7443_s11 + $0x1f8] sm:$0xff] }
 0x441   : > { %v5798_v14 = vpop.f32.mrf.mxu0 }
 0x442   : > { %6108 = vst.msk [vmem:[%s9446_s19 + $0x188] sm:$0xff] %vm360_vm0, %v6044_v6  ;;  %v6043_v13 = vmax.f32 %v5979_v39, 0.0  ;;  %v5982_v27 = vadd.f32 %v5918_v21, %v5804_v51  ;;  %v5799_v46 = vadd.f32 %v9435_v32, %v5798_v14  ;;  %v5929_v39 = vld [vmem:[%s7443_s11 + $0x1f0] sm:$0xff] }
 0x443   : > { %v7338_v25 = vpop.f32.mrf.mxu0 }
 0x444   : > { %6107 = vst.msk [vmem:[%s9446_s19 + $0x180] sm:$0xff] %vm360_vm0, %v6043_v13  ;;  %v6046_v4 = vmax.f32 %v5982_v27, 0.0  ;;  %v5981_v16 = vadd.f32 %v5917_v9, %v5799_v46  ;;  %v5814_v48 = vadd.f32 %v7338_v25, %v9435_v32 }
 0x445   : > { %v5808_v0 = vpop.f32.mrf.mxu0 }
 0x446   : > { %6110 = vst.msk [vmem:[%s9446_s19 + $0x198] sm:$0xff] %vm360_vm0, %v6046_v4  ;;  %v6045_v61 = vmax.f32 %v5981_v16, 0.0  ;;  %v5984_v52 = vadd.f32 %v5920_v45, %v5814_v48  ;;  %v5809_v3 = vadd.f32 %v9435_v32, %v5808_v0 }
 0x447   : > { %v7341_v53 = vpop.f32.mrf.mxu0 }
 0x448   : > { %6109 = vst.msk [vmem:[%s9446_s19 + $0x190] sm:$0xff] %vm360_vm0, %v6045_v61  ;;  %v6048_v15 = vmax.f32 %v5984_v52, 0.0  ;;  %v5983_v56 = vadd.f32 %v5919_v62, %v5809_v3  ;;  %v5824_v37 = vadd.f32 %v7341_v53, %v9435_v32 }
 0x449   : > { %v5818_v58 = vpop.f32.mrf.mxu0 }
 0x44a   : > { %6112 = vst.msk [vmem:[%s9446_s19 + $0x1a8] sm:$0xff] %vm360_vm0, %v6048_v15  ;;  %v6047_v59 = vmax.f32 %v5983_v56, 0.0  ;;  %v5986_v8 = vadd.f32 %v5922_v24, %v5824_v37  ;;  %v5819_v34 = vadd.f32 %v9435_v32, %v5818_v58 }
 0x44b   : > { %v7344_v40 = vpop.f32.mrf.mxu0 }
 0x44c   : > { %6111 = vst.msk [vmem:[%s9446_s19 + $0x1a0] sm:$0xff] %vm360_vm0, %v6047_v59  ;;  %v6050_v49 = vmax.f32 %v5986_v8, 0.0  ;;  %v5985_v5 = vadd.f32 %v5921_v54, %v5819_v34  ;;  %v5834_v17 = vadd.f32 %v7344_v40, %v9435_v32 }
 0x44d   : > { %v5828_v33 = vpop.f32.mrf.mxu0 }
 0x44e   : > { %6114 = vst.msk [vmem:[%s9446_s19 + $0x1b8] sm:$0xff] %vm360_vm0, %v6050_v49  ;;  %v6049_v20 = vmax.f32 %v5985_v5, 0.0  ;;  %v5988_v60 = vadd.f32 %v5924_v22, %v5834_v17  ;;  %v5829_v1 = vadd.f32 %v9435_v32, %v5828_v33 }
 0x44f   : > { %v7347_v36 = vpop.f32.mrf.mxu0 }
 0x450   : > { %6113 = vst.msk [vmem:[%s9446_s19 + $0x1b0] sm:$0xff] %vm360_vm0, %v6049_v20  ;;  %v6052_v57 = vmax.f32 %v5988_v60, 0.0  ;;  %v5987_v38 = vadd.f32 %v5923_v41, %v5829_v1  ;;  %v5844_v55 = vadd.f32 %v7347_v36, %v9435_v32 }
 0x451   : > { %v5838_v31 = vpop.f32.mrf.mxu0 }
 0x452   : > { %6116 = vst.msk [vmem:[%s9446_s19 + $0x1c8] sm:$0xff] %vm360_vm0, %v6052_v57  ;;  %v6051_v63 = vmax.f32 %v5987_v38, 0.0  ;;  %v5990_v10 = vadd.f32 %v5926_v47, %v5844_v55  ;;  %v5839_v42 = vadd.f32 %v9435_v32, %v5838_v31 }
 0x453   : > { %v7350_v2 = vpop.f32.mrf.mxu0 }
 0x454   : > { %6115 = vst.msk [vmem:[%s9446_s19 + $0x1c0] sm:$0xff] %vm360_vm0, %v6051_v63  ;;  %v6054_v7 = vmax.f32 %v5990_v10, 0.0  ;;  %v5989_v30 = vadd.f32 %v5925_v18, %v5839_v42  ;;  %v5854_v19 = vadd.f32 %v7350_v2, %v9435_v32 }
 0x455   : > { %v5848_v11 = vpop.f32.mrf.mxu0 }
 0x456   : > { %6118 = vst.msk [vmem:[%s9446_s19 + $0x1d8] sm:$0xff] %vm360_vm0, %v6054_v7  ;;  %v6053_v29 = vmax.f32 %v5989_v30, 0.0  ;;  %v5992_v35 = vadd.f32 %v5928_v28, %v5854_v19  ;;  %v5849_v43 = vadd.f32 %v9435_v32, %v5848_v11 }
 0x457   : > { %v7353_v26 = vpop.f32.mrf.mxu0 }
 0x458   : > { %6117 = vst.msk [vmem:[%s9446_s19 + $0x1d0] sm:$0xff] %vm360_vm0, %v6053_v29  ;;  %v6056_v44 = vmax.f32 %v5992_v35, 0.0  ;;  %v5991_v50 = vadd.f32 %v5927_v12, %v5849_v43  ;;  %v5864_v21 = vadd.f32 %v7353_v26, %v9435_v32 }
 0x459   : > { %v5858_v6 = vpop.f32.mrf.mxu0 }
 0x45a   : > { %6120 = vst.msk [vmem:[%s9446_s19 + $0x1e8] sm:$0xff] %vm360_vm0, %v6056_v44  ;;  %v6055_v51 = vmax.f32 %v5991_v50, 0.0  ;;  %v5994_v14 = vadd.f32 %v5930_v23, %v5864_v21  ;;  %v5859_v9 = vadd.f32 %v9435_v32, %v5858_v6 }
 0x45c   : > { %6119 = vst.msk [vmem:[%s9446_s19 + $0x1e0] sm:$0xff] %vm360_vm0, %v6055_v51  ;;  %v6058_v13 = vmax.f32 %v5994_v14, 0.0  ;;  %v5993_v27 = vadd.f32 %v5929_v39, %v5859_v9 }
 0x45e   : > { %6122 = vst.msk [vmem:[%s9446_s19 + $0x1f8] sm:$0xff] %vm360_vm0, %v6058_v13  ;;  %v6057_v46 = vmax.f32 %v5993_v27, 0.0 }
 0x460   : > { %6121 = vst.msk [vmem:[%s9446_s19 + $0x1f0] sm:$0xff] %vm360_vm0, %v6057_v46 }
 0x461 PF: > { %s17_s24 = sadd.s32 1, %s7376_s24  }
 0x462   : > { %p14_p4 = scmp.ge.s32.totalorder %s17_s24, 4  }
 0x464   :  { %16 = sbr.rel (!%p14_p4) target bundleno = 1 (0x1), region = 80 }

</bundles_post_ra>
